<compile_context>
chip_gen: v6e
topology: v6e:2x2x1
jax: 0.10.0
libtpu: 0.0.40
codegen_flags: <defaults>
</compile_context>

<pallas_src>
import math

import jax
import jax.numpy as jnp
from jax.experimental import pallas as pl
from jax.experimental.pallas import tpu as pltpu

# ---------------- config (small, consistent with the module) ----------------
B = 2          # batch
L = 16         # sequence length
BL = B * L     # packed rows
H = 32         # hidden size
NH = 4         # attention heads
HD = H // NH   # head dim
FF = 64        # intermediate size
NLAYERS = 2
VOCAB = 64
MAXPOS = 64
EPS = 1e-5     # RoBERTa layer_norm_eps


# ---------------- small in-kernel helpers (pure jnp, traced in kernel) ------
def _layernorm(x, g, b):
    mean = jnp.mean(x, axis=-1, keepdims=True)
    var = jnp.mean((x - mean) ** 2, axis=-1, keepdims=True)
    return (x - mean) * jax.lax.rsqrt(var + EPS) * g + b


def _gelu(x):
    # tanh approximation of GELU (EUP-friendly)
    # TODO(synk): HF default act is exact erf GELU; tanh approx deviates slightly.
    c = math.sqrt(2.0 / math.pi)
    return 0.5 * x * (1.0 + jnp.tanh(c * (x + 0.044715 * x * x * x)))


# ---------------- the single fused encoder kernel ----------------------------
def encoder_kernel(pos_col_ref, pos_row_ref, attn_ref, we_ref, pe_ref,
                   te_ref, eg_ref, eb_ref,
                   wqkv_ref, bqkv_ref, wo_ref, bo_ref, ag_ref, ab_ref,
                   w1_ref, b1_ref, w2_ref, b2_ref, fg_ref, fb_ref,
                   pw_ref, pb_ref, out_ref):
    f32 = jnp.float32
    bf16 = jnp.bfloat16
    scale = 1.0 / math.sqrt(HD)

    # ---- graph-guided node embedding averaging (block-diagonal packed) ----
    am = attn_ref[...]                                    # (BL, BL) f32 block-diag
    we = we_ref[...]                                      # (BL, H)  f32
    nodes_col = (pos_col_ref[...] == 0).astype(f32)       # (BL, 1)
    token_row = (pos_row_ref[...] >= 2).astype(f32)       # (1, BL)
    ntm = nodes_col * token_row * (am != 0.0).astype(f32)  # (BL, BL)
    denom = jnp.sum(ntm, axis=-1, keepdims=True) + 1e-10
    ntm = ntm * pl.reciprocal(denom, approx=True)
    avg = jnp.dot(ntm.astype(bf16), we.astype(bf16),
                  preferred_element_type=f32)              # (BL, H)
    mixed = we * (1.0 - nodes_col) + avg * nodes_col

    # ---- embeddings: + position + token_type, LayerNorm ----
    x = _layernorm(mixed + pe_ref[...] + te_ref[...], eg_ref[...], eb_ref[...])

    # extended attention bias (HF convention), hoisted out of the layer loop
    neg_bias = (1.0 - am) * -10000.0                       # (BL, BL) f32

    # ---- transformer layers (static unrolled) ----
    for l in range(NLAYERS):
        # fused QKV projection: one (BL,H)@(H,3H) matmul
        qkv = jnp.dot(x.astype(bf16), wqkv_ref[l],
                      preferred_element_type=f32) + bqkv_ref[l]   # (BL, 3H)
        head_ctx = []
        for h in range(NH):                               # per-head scores/ctx only
            qh = qkv[:, h * HD:(h + 1) * HD].astype(bf16)
            kh = qkv[:, H + h * HD:H + (h + 1) * HD].astype(bf16)
            vh = qkv[:, 2 * H + h * HD:2 * H + (h + 1) * HD].astype(bf16)
            s = jax.lax.dot_general(qh, kh, (((1,), (1,)), ((), ())),
                                    preferred_element_type=f32) * scale + neg_bias
            m = jnp.max(s, axis=-1, keepdims=True)
            p = jnp.exp(s - m)
            p = p * pl.reciprocal(jnp.sum(p, axis=-1, keepdims=True), approx=True)
            head_ctx.append(jnp.dot(p.astype(bf16), vh,
                                    preferred_element_type=f32))  # (BL, HD)
        ctx = jnp.concatenate(head_ctx, axis=-1)           # (BL, H)
        attn = jnp.dot(ctx.astype(bf16), wo_ref[l],
                       preferred_element_type=f32) + bo_ref[l]
        x = _layernorm(attn + x, ag_ref[l], ab_ref[l])

        # feed-forward
        h1 = _gelu(jnp.dot(x.astype(bf16), w1_ref[l],
                           preferred_element_type=f32) + b1_ref[l])
        h2 = jnp.dot(h1.astype(bf16), w2_ref[l],
                     preferred_element_type=f32) + b2_ref[l]
        x = _layernorm(h2 + x, fg_ref[l], fb_ref[l])

    # ---- pooler on the CLS row of each batch element ----
    cls = jnp.concatenate([x[b * L:b * L + 1, :] for b in range(B)], axis=0)  # (B, H)
    out_ref[...] = jnp.tanh(jnp.dot(cls.astype(bf16), pw_ref[...],
                                    preferred_element_type=f32) + pb_ref[...])


def _full_spec(shape):
    nd = len(shape)
    return pl.BlockSpec(tuple(shape), lambda i, _nd=nd: (0,) * _nd)


def fused_encoder(pos_col, pos_row, attn_big, we, pe, p):
    args = [pos_col, pos_row, attn_big, we, pe,
            p["type_emb"], p["emb_ln_g"], p["emb_ln_b"],
            p["wqkv"], p["bqkv"], p["wo"], p["bo"],
            p["attn_ln_g"], p["attn_ln_b"],
            p["w1"], p["b1"], p["w2"], p["b2"],
            p["ffn_ln_g"], p["ffn_ln_b"],
            p["pooler_w"], p["pooler_b"]]
    return pl.pallas_call(
        encoder_kernel,
        grid=(1,),
        in_specs=[_full_spec(a.shape) for a in args],
        out_specs=_full_spec((B, H)),
        out_shape=jax.ShapeDtypeStruct((B, H), jnp.float32),
        compiler_params=pltpu.CompilerParams(dimension_semantics=("arbitrary",)),
    )(*args)


# ---------------- parameter init (deterministic, synthetic) ------------------
def init_params(key):
    n_rand = 4 + NLAYERS * 6
    keys = iter(jax.random.split(key, n_rand))

    def nrm(shape):
        return 0.02 * jax.random.normal(next(keys), shape, jnp.float32)

    def zeros(shape):
        return jnp.zeros(shape, jnp.float32)

    def ones(shape):
        return jnp.ones(shape, jnp.float32)

    wqkv, bqkv, wo, bo, ag, ab = [], [], [], [], [], []
    w1, b1, w2, b2, fg, fb = [], [], [], [], [], []
    for _ in range(NLAYERS):
        wq, wk, wv = nrm((H, H)), nrm((H, H)), nrm((H, H))
        wqkv.append(jnp.concatenate([wq, wk, wv], axis=1))   # (H, 3H)
        bqkv.append(zeros((1, 3 * H)))
        wo.append(nrm((H, H))); bo.append(zeros((1, H)))
        ag.append(ones((1, H))); ab.append(zeros((1, H)))
        w1.append(nrm((H, FF))); b1.append(zeros((1, FF)))
        w2.append(nrm((FF, H))); b2.append(zeros((1, H)))
        fg.append(ones((1, H))); fb.append(zeros((1, H)))

    params = {
        "word_emb": nrm((VOCAB, H)),
        "pos_emb": nrm((MAXPOS, H)),
        "type_emb": nrm((1, H)),
        "emb_ln_g": ones((1, H)),
        "emb_ln_b": zeros((1, H)),
        # matmul weights stored bf16 (MXU-native); biases / LN params stay f32
        "pooler_w": nrm((H, H)).astype(jnp.bfloat16),
        "pooler_b": zeros((1, H)),
        "wqkv": jnp.stack(wqkv).astype(jnp.bfloat16),        # (NLAYERS, H, 3H)
        "bqkv": jnp.stack(bqkv),                             # (NLAYERS, 1, 3H)
        "wo": jnp.stack(wo).astype(jnp.bfloat16),            # (NLAYERS, H, H)
        "bo": jnp.stack(bo),
        "attn_ln_g": jnp.stack(ag), "attn_ln_b": jnp.stack(ab),
        "w1": jnp.stack(w1).astype(jnp.bfloat16),            # (NLAYERS, H, FF)
        "b1": jnp.stack(b1),
        "w2": jnp.stack(w2).astype(jnp.bfloat16),            # (NLAYERS, FF, H)
        "b2": jnp.stack(b2),
        "ffn_ln_g": jnp.stack(fg), "ffn_ln_b": jnp.stack(fb),
    }
    return params


# ---------------- full forward (code_inputs path of GraphCodeBertModel) ------
@jax.jit
def graphcodebert_forward(params, code_inputs, attn_mask, position_idx):
    # plain-JAX glue: embedding gathers + block-diagonal mask packing
    we = jnp.take(params["word_emb"], code_inputs, axis=0).reshape(BL, H)
    pe = jnp.take(params["pos_emb"], position_idx, axis=0).reshape(BL, H)
    pos_col = position_idx.astype(jnp.int32).reshape(BL, 1)
    pos_row = position_idx.astype(jnp.int32).reshape(1, BL)
    amf = attn_mask.astype(jnp.float32)                          # (B, L, L)
    eye_b = jnp.eye(B, dtype=jnp.float32)
    attn_big = (amf[:, :, None, :] * eye_b[:, None, :, None]).reshape(BL, BL)
    # fused Pallas encoder returns the pooled output == encoder(...)[1]
    return fused_encoder(pos_col, pos_row, attn_big, we, pe, params)

# TODO(synk): nl_inputs-only branch (encoder(nl_inputs, attention_mask=nl_inputs.ne(1)))
#             is not exercised here; only the code_inputs path is implemented.


if __name__ == "__main__":
    key = jax.random.PRNGKey(0)
    pkey, ikey = jax.random.split(key)
    params = init_params(pkey)

    # inputs: tokens get position ids >= 2, DFG nodes get 0, padding gets 1
    code_inputs = jax.random.randint(ikey, (B, L), 0, VOCAB, dtype=jnp.int32)
    n_tok, n_node = 10, 4
    row = jnp.concatenate([
        jnp.arange(2, 2 + n_tok, dtype=jnp.int32),
        jnp.zeros((n_node,), jnp.int32),
        jnp.ones((L - n_tok - n_node,), jnp.int32),
    ])
    position_idx = jnp.tile(row[None, :], (B, 1))                # (B, L)
    not_pad = (position_idx != 1).astype(jnp.float32)            # (B, L)
    attn_mask = not_pad[:, :, None] * not_pad[:, None, :]        # (B, L, L)

    out = graphcodebert_forward(params, code_inputs, attn_mask, position_idx)
    out = jax.block_until_ready(out)
    assert out.shape == (B, H), out.shape
    assert bool(jnp.all(jnp.isfinite(out)))
    print("KERNEL_OK")
</pallas_src>

<mosaic_0001>
module attributes {stable_mosaic.version = 11 : i64} {
  func.func @encoder_kernel(%arg0: i32, %arg1: memref<32x1xi32, #tpu.memory_space<vmem>>, %arg2: memref<1x32xi32, #tpu.memory_space<vmem>>, %arg3: memref<32x32xf32, #tpu.memory_space<vmem>>, %arg4: memref<32x32xf32, #tpu.memory_space<vmem>>, %arg5: memref<32x32xf32, #tpu.memory_space<vmem>>, %arg6: memref<1x32xf32, #tpu.memory_space<vmem>>, %arg7: memref<1x32xf32, #tpu.memory_space<vmem>>, %arg8: memref<1x32xf32, #tpu.memory_space<vmem>>, %arg9: memref<2x32x96xbf16, #tpu.memory_space<vmem>>, %arg10: memref<2x1x96xf32, #tpu.memory_space<vmem>>, %arg11: memref<2x32x32xbf16, #tpu.memory_space<vmem>>, %arg12: memref<2x1x32xf32, #tpu.memory_space<vmem>>, %arg13: memref<2x1x32xf32, #tpu.memory_space<vmem>>, %arg14: memref<2x1x32xf32, #tpu.memory_space<vmem>>, %arg15: memref<2x32x64xbf16, #tpu.memory_space<vmem>>, %arg16: memref<2x1x64xf32, #tpu.memory_space<vmem>>, %arg17: memref<2x64x32xbf16, #tpu.memory_space<vmem>>, %arg18: memref<2x1x32xf32, #tpu.memory_space<vmem>>, %arg19: memref<2x1x32xf32, #tpu.memory_space<vmem>>, %arg20: memref<2x1x32xf32, #tpu.memory_space<vmem>>, %arg21: memref<32x32xbf16, #tpu.memory_space<vmem>>, %arg22: memref<1x32xf32, #tpu.memory_space<vmem>>, %arg23: memref<2x32xf32, #tpu.memory_space<vmem>>) attributes {dimension_semantics = [#tpu.dimension_semantics<arbitrary>], iteration_bounds = array<i64: 1>, scalar_prefetch = 0 : i64, scratch_operands = 0 : i64, tpu.core_type = #tpu.core_type<tc>, window_params = [{pipeline_mode = #tpu.pipeline_mode<synchronous>, transform_indices = @transform_0, window_bounds = array<i64: 32, 1>}, {pipeline_mode = #tpu.pipeline_mode<synchronous>, transform_indices = @transform_1, window_bounds = array<i64: 1, 32>}, {pipeline_mode = #tpu.pipeline_mode<synchronous>, transform_indices = @transform_2, window_bounds = array<i64: 32, 32>}, {pipeline_mode = #tpu.pipeline_mode<synchronous>, transform_indices = @transform_3, window_bounds = array<i64: 32, 32>}, {pipeline_mode = #tpu.pipeline_mode<synchronous>, transform_indices = @transform_4, window_bounds = array<i64: 32, 32>}, {pipeline_mode = #tpu.pipeline_mode<synchronous>, transform_indices = @transform_5, window_bounds = array<i64: 1, 32>}, {pipeline_mode = #tpu.pipeline_mode<synchronous>, transform_indices = @transform_6, window_bounds = array<i64: 1, 32>}, {pipeline_mode = #tpu.pipeline_mode<synchronous>, transform_indices = @transform_7, window_bounds = array<i64: 1, 32>}, {pipeline_mode = #tpu.pipeline_mode<synchronous>, transform_indices = @transform_8, window_bounds = array<i64: 2, 32, 96>}, {pipeline_mode = #tpu.pipeline_mode<synchronous>, transform_indices = @transform_9, window_bounds = array<i64: 2, 1, 96>}, {pipeline_mode = #tpu.pipeline_mode<synchronous>, transform_indices = @transform_10, window_bounds = array<i64: 2, 32, 32>}, {pipeline_mode = #tpu.pipeline_mode<synchronous>, transform_indices = @transform_11, window_bounds = array<i64: 2, 1, 32>}, {pipeline_mode = #tpu.pipeline_mode<synchronous>, transform_indices = @transform_12, window_bounds = array<i64: 2, 1, 32>}, {pipeline_mode = #tpu.pipeline_mode<synchronous>, transform_indices = @transform_13, window_bounds = array<i64: 2, 1, 32>}, {pipeline_mode = #tpu.pipeline_mode<synchronous>, transform_indices = @transform_14, window_bounds = array<i64: 2, 32, 64>}, {pipeline_mode = #tpu.pipeline_mode<synchronous>, transform_indices = @transform_15, window_bounds = array<i64: 2, 1, 64>}, {pipeline_mode = #tpu.pipeline_mode<synchronous>, transform_indices = @transform_16, window_bounds = array<i64: 2, 64, 32>}, {pipeline_mode = #tpu.pipeline_mode<synchronous>, transform_indices = @transform_17, window_bounds = array<i64: 2, 1, 32>}, {pipeline_mode = #tpu.pipeline_mode<synchronous>, transform_indices = @transform_18, window_bounds = array<i64: 2, 1, 32>}, {pipeline_mode = #tpu.pipeline_mode<synchronous>, transform_indices = @transform_19, window_bounds = array<i64: 2, 1, 32>}, {pipeline_mode = #tpu.pipeline_mode<synchronous>, transform_indices = @transform_20, window_bounds = array<i64: 32, 32>}, {pipeline_mode = #tpu.pipeline_mode<synchronous>, transform_indices = @transform_21, window_bounds = array<i64: 1, 32>}, {pipeline_mode = #tpu.pipeline_mode<synchronous>, transform_indices = @transform_22, window_bounds = array<i64: 2, 32>}]} {
    %c0 = arith.constant 0 : index
    %c0_0 = arith.constant 0 : index
    %0 = vector.load %arg3[%c0, %c0_0] : memref<32x32xf32, #tpu.memory_space<vmem>>, vector<32x32xf32>
    %c0_1 = arith.constant 0 : index
    %c0_2 = arith.constant 0 : index
    %1 = vector.load %arg4[%c0_1, %c0_2] : memref<32x32xf32, #tpu.memory_space<vmem>>, vector<32x32xf32>
    %c0_3 = arith.constant 0 : index
    %c0_4 = arith.constant 0 : index
    %2 = vector.load %arg1[%c0_3, %c0_4] : memref<32x1xi32, #tpu.memory_space<vmem>>, vector<32x1xi32>
    %c0_i32 = arith.constant 0 : i32
    %3 = vector.broadcast %c0_i32 : i32 to vector<32x1xi32>
    %4 = arith.cmpi eq, %2, %3 : vector<32x1xi32>
    %5 = arith.extui %4 : vector<32x1xi1> to vector<32x1xi32>
    %6 = arith.sitofp %5 : vector<32x1xi32> to vector<32x1xf32>
    %c0_5 = arith.constant 0 : index
    %c0_6 = arith.constant 0 : index
    %7 = vector.load %arg2[%c0_5, %c0_6] : memref<1x32xi32, #tpu.memory_space<vmem>>, vector<1x32xi32>
    %c2_i32 = arith.constant 2 : i32
    %8 = vector.broadcast %c2_i32 : i32 to vector<1x32xi32>
    %9 = arith.cmpi sge, %7, %8 : vector<1x32xi32>
    %10 = arith.extui %9 : vector<1x32xi1> to vector<1x32xi32>
    %11 = arith.sitofp %10 : vector<1x32xi32> to vector<1x32xf32>
    %12 = vector.broadcast %6 : vector<32x1xf32> to vector<32x32xf32>
    %13 = vector.broadcast %11 : vector<1x32xf32> to vector<32x32xf32>
    %14 = arith.mulf %12, %13 : vector<32x32xf32>
    %cst = arith.constant 0.000000e+00 : f32
    %15 = vector.broadcast %cst : f32 to vector<32x32xf32>
    %16 = arith.cmpf one, %0, %15 : vector<32x32xf32>
    %17 = arith.extui %16 : vector<32x32xi1> to vector<32x32xi32>
    %18 = arith.sitofp %17 : vector<32x32xi32> to vector<32x32xf32>
    %19 = arith.mulf %14, %18 : vector<32x32xf32>
    %cst_7 = arith.constant dense<0.000000e+00> : vector<32xf32>
    %20 = vector.multi_reduction <add>, %19, %cst_7 [1] : vector<32x32xf32> to vector<32xf32>
    %21 = vector.shape_cast %20 : vector<32xf32> to vector<32x1xf32>
    %cst_8 = arith.constant 1.000000e-10 : f32
    %22 = vector.broadcast %cst_8 : f32 to vector<32x1xf32>
    %23 = arith.addf %21, %22 : vector<32x1xf32>
    %24 = tpu.reciprocal %23 {approx = true} : vector<32x1xf32> -> vector<32x1xf32>
    %25 = vector.broadcast %24 : vector<32x1xf32> to vector<32x32xf32>
    %26 = arith.mulf %19, %25 : vector<32x32xf32>
    %27 = arith.truncf %26 : vector<32x32xf32> to vector<32x32xbf16>
    %28 = arith.truncf %1 : vector<32x32xf32> to vector<32x32xbf16>
    %cst_9 = arith.constant dense<0.000000e+00> : vector<32x32xf32>
    %29 = tpu.matmul %27, %28, %cst_9 {dimension_numbers = #tpu.dot_dimension_numbers<[1], [0], [0], [1], [0, 0, 1, 1], [], []>} : vector<32x32xbf16>, vector<32x32xbf16>, vector<32x32xf32> -> vector<32x32xf32>
    %cst_10 = arith.constant 1.000000e+00 : f32
    %30 = vector.broadcast %cst_10 : f32 to vector<32x1xf32>
    %31 = arith.subf %30, %6 : vector<32x1xf32>
    %32 = vector.broadcast %31 : vector<32x1xf32> to vector<32x32xf32>
    %33 = arith.mulf %1, %32 : vector<32x32xf32>
    %34 = vector.broadcast %6 : vector<32x1xf32> to vector<32x32xf32>
    %35 = arith.mulf %29, %34 : vector<32x32xf32>
    %36 = arith.addf %33, %35 : vector<32x32xf32>
    %c0_11 = arith.constant 0 : index
    %c0_12 = arith.constant 0 : index
    %37 = vector.load %arg5[%c0_11, %c0_12] : memref<32x32xf32, #tpu.memory_space<vmem>>, vector<32x32xf32>
    %38 = arith.addf %36, %37 : vector<32x32xf32>
    %c0_13 = arith.constant 0 : index
    %c0_14 = arith.constant 0 : index
    %39 = vector.load %arg6[%c0_13, %c0_14] : memref<1x32xf32, #tpu.memory_space<vmem>>, vector<1x32xf32>
    %40 = vector.broadcast %39 : vector<1x32xf32> to vector<32x32xf32>
    %41 = arith.addf %38, %40 : vector<32x32xf32>
    %c0_15 = arith.constant 0 : index
    %c0_16 = arith.constant 0 : index
    %42 = vector.load %arg7[%c0_15, %c0_16] : memref<1x32xf32, #tpu.memory_space<vmem>>, vector<1x32xf32>
    %c0_17 = arith.constant 0 : index
    %c0_18 = arith.constant 0 : index
    %43 = vector.load %arg8[%c0_17, %c0_18] : memref<1x32xf32, #tpu.memory_space<vmem>>, vector<1x32xf32>
    %cst_19 = arith.constant dense<0.000000e+00> : vector<32xf32>
    %44 = vector.multi_reduction <add>, %41, %cst_19 [1] : vector<32x32xf32> to vector<32xf32>
    %45 = vector.shape_cast %44 : vector<32xf32> to vector<32x1xf32>
    %cst_20 = arith.constant 3.200000e+01 : f32
    %46 = vector.broadcast %cst_20 : f32 to vector<32x1xf32>
    %47 = arith.divf %45, %46 : vector<32x1xf32>
    %48 = vector.broadcast %47 : vector<32x1xf32> to vector<32x32xf32>
    %49 = arith.subf %41, %48 : vector<32x32xf32>
    %50 = arith.mulf %49, %49 : vector<32x32xf32>
    %cst_21 = arith.constant dense<0.000000e+00> : vector<32xf32>
    %51 = vector.multi_reduction <add>, %50, %cst_21 [1] : vector<32x32xf32> to vector<32xf32>
    %52 = vector.shape_cast %51 : vector<32xf32> to vector<32x1xf32>
    %cst_22 = arith.constant 3.200000e+01 : f32
    %53 = vector.broadcast %cst_22 : f32 to vector<32x1xf32>
    %54 = arith.divf %52, %53 : vector<32x1xf32>
    %55 = vector.broadcast %47 : vector<32x1xf32> to vector<32x32xf32>
    %56 = arith.subf %41, %55 : vector<32x32xf32>
    %cst_23 = arith.constant 9.99999974E-6 : f32
    %57 = vector.broadcast %cst_23 : f32 to vector<32x1xf32>
    %58 = arith.addf %54, %57 : vector<32x1xf32>
    %59 = math.rsqrt %58 : vector<32x1xf32>
    %60 = vector.broadcast %59 : vector<32x1xf32> to vector<32x32xf32>
    %61 = arith.mulf %56, %60 : vector<32x32xf32>
    %62 = vector.broadcast %42 : vector<1x32xf32> to vector<32x32xf32>
    %63 = arith.mulf %61, %62 : vector<32x32xf32>
    %64 = vector.broadcast %43 : vector<1x32xf32> to vector<32x32xf32>
    %65 = arith.addf %63, %64 : vector<32x32xf32>
    %cst_24 = arith.constant 1.000000e+00 : f32
    %66 = vector.broadcast %cst_24 : f32 to vector<32x32xf32>
    %67 = arith.subf %66, %0 : vector<32x32xf32>
    %cst_25 = arith.constant -1.000000e+04 : f32
    %68 = vector.broadcast %cst_25 : f32 to vector<32x32xf32>
    %69 = arith.mulf %67, %68 : vector<32x32xf32>
    %70 = arith.truncf %65 : vector<32x32xf32> to vector<32x32xbf16>
    %c0_26 = arith.constant 0 : index
    %c0_27 = arith.constant 0 : index
    %c0_28 = arith.constant 0 : index
    %71 = vector.load %arg9[%c0_26, %c0_27, %c0_28] : memref<2x32x96xbf16, #tpu.memory_space<vmem>>, vector<1x32x96xbf16>
    %72 = vector.shape_cast %71 : vector<1x32x96xbf16> to vector<32x96xbf16>
    %cst_29 = arith.constant dense<0.000000e+00> : vector<32x96xf32>
    %73 = tpu.matmul %70, %72, %cst_29 {dimension_numbers = #tpu.dot_dimension_numbers<[1], [0], [0], [1], [0, 0, 1, 1], [], []>} : vector<32x32xbf16>, vector<32x96xbf16>, vector<32x96xf32> -> vector<32x96xf32>
    %c0_30 = arith.constant 0 : index
    %c0_31 = arith.constant 0 : index
    %c0_32 = arith.constant 0 : index
    %74 = vector.load %arg10[%c0_30, %c0_31, %c0_32] : memref<2x1x96xf32, #tpu.memory_space<vmem>>, vector<1x1x96xf32>
    %75 = vector.shape_cast %74 : vector<1x1x96xf32> to vector<1x96xf32>
    %76 = vector.broadcast %75 : vector<1x96xf32> to vector<32x96xf32>
    %77 = arith.addf %73, %76 : vector<32x96xf32>
    %78 = vector.extract_strided_slice %77 {offsets = [0, 0], sizes = [32, 8], strides = [1, 1]} : vector<32x96xf32> to vector<32x8xf32>
    %79 = arith.truncf %78 : vector<32x8xf32> to vector<32x8xbf16>
    %80 = vector.extract_strided_slice %77 {offsets = [0, 32], sizes = [32, 8], strides = [1, 1]} : vector<32x96xf32> to vector<32x8xf32>
    %81 = arith.truncf %80 : vector<32x8xf32> to vector<32x8xbf16>
    %82 = vector.extract_strided_slice %77 {offsets = [0, 64], sizes = [32, 8], strides = [1, 1]} : vector<32x96xf32> to vector<32x8xf32>
    %83 = arith.truncf %82 : vector<32x8xf32> to vector<32x8xbf16>
    %cst_33 = arith.constant dense<0.000000e+00> : vector<32x32xf32>
    %84 = tpu.matmul %79, %81, %cst_33 {dimension_numbers = #tpu.dot_dimension_numbers<[1], [1], [0], [0], [0, 0, 1, 0], [], []>} : vector<32x8xbf16>, vector<32x8xbf16>, vector<32x32xf32> -> vector<32x32xf32>
    %cst_34 = arith.constant 0.353553385 : f32
    %85 = vector.broadcast %cst_34 : f32 to vector<32x32xf32>
    %86 = arith.mulf %84, %85 : vector<32x32xf32>
    %87 = arith.addf %86, %69 : vector<32x32xf32>
    %cst_35 = arith.constant dense<0xFF800000> : vector<32xf32>
    %88 = vector.multi_reduction <maximumf>, %87, %cst_35 [1] : vector<32x32xf32> to vector<32xf32>
    %89 = vector.shape_cast %88 : vector<32xf32> to vector<32x1xf32>
    %90 = vector.broadcast %89 : vector<32x1xf32> to vector<32x32xf32>
    %91 = arith.subf %87, %90 : vector<32x32xf32>
    %92 = math.exp %91 : vector<32x32xf32>
    %cst_36 = arith.constant dense<0.000000e+00> : vector<32xf32>
    %93 = vector.multi_reduction <add>, %92, %cst_36 [1] : vector<32x32xf32> to vector<32xf32>
    %94 = vector.shape_cast %93 : vector<32xf32> to vector<32x1xf32>
    %95 = tpu.reciprocal %94 {approx = true} : vector<32x1xf32> -> vector<32x1xf32>
    %96 = vector.broadcast %95 : vector<32x1xf32> to vector<32x32xf32>
    %97 = arith.mulf %92, %96 : vector<32x32xf32>
    %98 = arith.truncf %97 : vector<32x32xf32> to vector<32x32xbf16>
    %cst_37 = arith.constant dense<0.000000e+00> : vector<32x8xf32>
    %99 = tpu.matmul %98, %83, %cst_37 {dimension_numbers = #tpu.dot_dimension_numbers<[1], [0], [0], [1], [0, 0, 1, 1], [], []>} : vector<32x32xbf16>, vector<32x8xbf16>, vector<32x8xf32> -> vector<32x8xf32>
    %100 = vector.extract_strided_slice %77 {offsets = [0, 8], sizes = [32, 8], strides = [1, 1]} : vector<32x96xf32> to vector<32x8xf32>
    %101 = arith.truncf %100 : vector<32x8xf32> to vector<32x8xbf16>
    %102 = vector.extract_strided_slice %77 {offsets = [0, 40], sizes = [32, 8], strides = [1, 1]} : vector<32x96xf32> to vector<32x8xf32>
    %103 = arith.truncf %102 : vector<32x8xf32> to vector<32x8xbf16>
    %104 = vector.extract_strided_slice %77 {offsets = [0, 72], sizes = [32, 8], strides = [1, 1]} : vector<32x96xf32> to vector<32x8xf32>
    %105 = arith.truncf %104 : vector<32x8xf32> to vector<32x8xbf16>
    %cst_38 = arith.constant dense<0.000000e+00> : vector<32x32xf32>
    %106 = tpu.matmul %101, %103, %cst_38 {dimension_numbers = #tpu.dot_dimension_numbers<[1], [1], [0], [0], [0, 0, 1, 0], [], []>} : vector<32x8xbf16>, vector<32x8xbf16>, vector<32x32xf32> -> vector<32x32xf32>
    %cst_39 = arith.constant 0.353553385 : f32
    %107 = vector.broadcast %cst_39 : f32 to vector<32x32xf32>
    %108 = arith.mulf %106, %107 : vector<32x32xf32>
    %109 = arith.addf %108, %69 : vector<32x32xf32>
    %cst_40 = arith.constant dense<0xFF800000> : vector<32xf32>
    %110 = vector.multi_reduction <maximumf>, %109, %cst_40 [1] : vector<32x32xf32> to vector<32xf32>
    %111 = vector.shape_cast %110 : vector<32xf32> to vector<32x1xf32>
    %112 = vector.broadcast %111 : vector<32x1xf32> to vector<32x32xf32>
    %113 = arith.subf %109, %112 : vector<32x32xf32>
    %114 = math.exp %113 : vector<32x32xf32>
    %cst_41 = arith.constant dense<0.000000e+00> : vector<32xf32>
    %115 = vector.multi_reduction <add>, %114, %cst_41 [1] : vector<32x32xf32> to vector<32xf32>
    %116 = vector.shape_cast %115 : vector<32xf32> to vector<32x1xf32>
    %117 = tpu.reciprocal %116 {approx = true} : vector<32x1xf32> -> vector<32x1xf32>
    %118 = vector.broadcast %117 : vector<32x1xf32> to vector<32x32xf32>
    %119 = arith.mulf %114, %118 : vector<32x32xf32>
    %120 = arith.truncf %119 : vector<32x32xf32> to vector<32x32xbf16>
    %cst_42 = arith.constant dense<0.000000e+00> : vector<32x8xf32>
    %121 = tpu.matmul %120, %105, %cst_42 {dimension_numbers = #tpu.dot_dimension_numbers<[1], [0], [0], [1], [0, 0, 1, 1], [], []>} : vector<32x32xbf16>, vector<32x8xbf16>, vector<32x8xf32> -> vector<32x8xf32>
    %122 = vector.extract_strided_slice %77 {offsets = [0, 16], sizes = [32, 8], strides = [1, 1]} : vector<32x96xf32> to vector<32x8xf32>
    %123 = arith.truncf %122 : vector<32x8xf32> to vector<32x8xbf16>
    %124 = vector.extract_strided_slice %77 {offsets = [0, 48], sizes = [32, 8], strides = [1, 1]} : vector<32x96xf32> to vector<32x8xf32>
    %125 = arith.truncf %124 : vector<32x8xf32> to vector<32x8xbf16>
    %126 = vector.extract_strided_slice %77 {offsets = [0, 80], sizes = [32, 8], strides = [1, 1]} : vector<32x96xf32> to vector<32x8xf32>
    %127 = arith.truncf %126 : vector<32x8xf32> to vector<32x8xbf16>
    %cst_43 = arith.constant dense<0.000000e+00> : vector<32x32xf32>
    %128 = tpu.matmul %123, %125, %cst_43 {dimension_numbers = #tpu.dot_dimension_numbers<[1], [1], [0], [0], [0, 0, 1, 0], [], []>} : vector<32x8xbf16>, vector<32x8xbf16>, vector<32x32xf32> -> vector<32x32xf32>
    %cst_44 = arith.constant 0.353553385 : f32
    %129 = vector.broadcast %cst_44 : f32 to vector<32x32xf32>
    %130 = arith.mulf %128, %129 : vector<32x32xf32>
    %131 = arith.addf %130, %69 : vector<32x32xf32>
    %cst_45 = arith.constant dense<0xFF800000> : vector<32xf32>
    %132 = vector.multi_reduction <maximumf>, %131, %cst_45 [1] : vector<32x32xf32> to vector<32xf32>
    %133 = vector.shape_cast %132 : vector<32xf32> to vector<32x1xf32>
    %134 = vector.broadcast %133 : vector<32x1xf32> to vector<32x32xf32>
    %135 = arith.subf %131, %134 : vector<32x32xf32>
    %136 = math.exp %135 : vector<32x32xf32>
    %cst_46 = arith.constant dense<0.000000e+00> : vector<32xf32>
    %137 = vector.multi_reduction <add>, %136, %cst_46 [1] : vector<32x32xf32> to vector<32xf32>
    %138 = vector.shape_cast %137 : vector<32xf32> to vector<32x1xf32>
    %139 = tpu.reciprocal %138 {approx = true} : vector<32x1xf32> -> vector<32x1xf32>
    %140 = vector.broadcast %139 : vector<32x1xf32> to vector<32x32xf32>
    %141 = arith.mulf %136, %140 : vector<32x32xf32>
    %142 = arith.truncf %141 : vector<32x32xf32> to vector<32x32xbf16>
    %cst_47 = arith.constant dense<0.000000e+00> : vector<32x8xf32>
    %143 = tpu.matmul %142, %127, %cst_47 {dimension_numbers = #tpu.dot_dimension_numbers<[1], [0], [0], [1], [0, 0, 1, 1], [], []>} : vector<32x32xbf16>, vector<32x8xbf16>, vector<32x8xf32> -> vector<32x8xf32>
    %144 = vector.extract_strided_slice %77 {offsets = [0, 24], sizes = [32, 8], strides = [1, 1]} : vector<32x96xf32> to vector<32x8xf32>
    %145 = arith.truncf %144 : vector<32x8xf32> to vector<32x8xbf16>
    %146 = vector.extract_strided_slice %77 {offsets = [0, 56], sizes = [32, 8], strides = [1, 1]} : vector<32x96xf32> to vector<32x8xf32>
    %147 = arith.truncf %146 : vector<32x8xf32> to vector<32x8xbf16>
    %148 = vector.extract_strided_slice %77 {offsets = [0, 88], sizes = [32, 8], strides = [1, 1]} : vector<32x96xf32> to vector<32x8xf32>
    %149 = arith.truncf %148 : vector<32x8xf32> to vector<32x8xbf16>
    %cst_48 = arith.constant dense<0.000000e+00> : vector<32x32xf32>
    %150 = tpu.matmul %145, %147, %cst_48 {dimension_numbers = #tpu.dot_dimension_numbers<[1], [1], [0], [0], [0, 0, 1, 0], [], []>} : vector<32x8xbf16>, vector<32x8xbf16>, vector<32x32xf32> -> vector<32x32xf32>
    %cst_49 = arith.constant 0.353553385 : f32
    %151 = vector.broadcast %cst_49 : f32 to vector<32x32xf32>
    %152 = arith.mulf %150, %151 : vector<32x32xf32>
    %153 = arith.addf %152, %69 : vector<32x32xf32>
    %cst_50 = arith.constant dense<0xFF800000> : vector<32xf32>
    %154 = vector.multi_reduction <maximumf>, %153, %cst_50 [1] : vector<32x32xf32> to vector<32xf32>
    %155 = vector.shape_cast %154 : vector<32xf32> to vector<32x1xf32>
    %156 = vector.broadcast %155 : vector<32x1xf32> to vector<32x32xf32>
    %157 = arith.subf %153, %156 : vector<32x32xf32>
    %158 = math.exp %157 : vector<32x32xf32>
    %cst_51 = arith.constant dense<0.000000e+00> : vector<32xf32>
    %159 = vector.multi_reduction <add>, %158, %cst_51 [1] : vector<32x32xf32> to vector<32xf32>
    %160 = vector.shape_cast %159 : vector<32xf32> to vector<32x1xf32>
    %161 = tpu.reciprocal %160 {approx = true} : vector<32x1xf32> -> vector<32x1xf32>
    %162 = vector.broadcast %161 : vector<32x1xf32> to vector<32x32xf32>
    %163 = arith.mulf %158, %162 : vector<32x32xf32>
    %164 = arith.truncf %163 : vector<32x32xf32> to vector<32x32xbf16>
    %cst_52 = arith.constant dense<0.000000e+00> : vector<32x8xf32>
    %165 = tpu.matmul %164, %149, %cst_52 {dimension_numbers = #tpu.dot_dimension_numbers<[1], [0], [0], [1], [0, 0, 1, 1], [], []>} : vector<32x32xbf16>, vector<32x8xbf16>, vector<32x8xf32> -> vector<32x8xf32>
    %166 = tpu.concatenate %99, %121, %143, %165 in 1 : vector<32x8xf32>, vector<32x8xf32>, vector<32x8xf32>, vector<32x8xf32> -> vector<32x32xf32>
    %167 = arith.truncf %166 : vector<32x32xf32> to vector<32x32xbf16>
    %c0_53 = arith.constant 0 : index
    %c0_54 = arith.constant 0 : index
    %c0_55 = arith.constant 0 : index
    %168 = vector.load %arg11[%c0_53, %c0_54, %c0_55] : memref<2x32x32xbf16, #tpu.memory_space<vmem>>, vector<1x32x32xbf16>
    %169 = vector.shape_cast %168 : vector<1x32x32xbf16> to vector<32x32xbf16>
    %cst_56 = arith.constant dense<0.000000e+00> : vector<32x32xf32>
    %170 = tpu.matmul %167, %169, %cst_56 {dimension_numbers = #tpu.dot_dimension_numbers<[1], [0], [0], [1], [0, 0, 1, 1], [], []>} : vector<32x32xbf16>, vector<32x32xbf16>, vector<32x32xf32> -> vector<32x32xf32>
    %c0_57 = arith.constant 0 : index
    %c0_58 = arith.constant 0 : index
    %c0_59 = arith.constant 0 : index
    %171 = vector.load %arg12[%c0_57, %c0_58, %c0_59] : memref<2x1x32xf32, #tpu.memory_space<vmem>>, vector<1x1x32xf32>
    %172 = vector.shape_cast %171 : vector<1x1x32xf32> to vector<1x32xf32>
    %173 = vector.broadcast %172 : vector<1x32xf32> to vector<32x32xf32>
    %174 = arith.addf %170, %173 : vector<32x32xf32>
    %175 = arith.addf %174, %65 : vector<32x32xf32>
    %c0_60 = arith.constant 0 : index
    %c0_61 = arith.constant 0 : index
    %c0_62 = arith.constant 0 : index
    %176 = vector.load %arg13[%c0_60, %c0_61, %c0_62] : memref<2x1x32xf32, #tpu.memory_space<vmem>>, vector<1x1x32xf32>
    %177 = vector.shape_cast %176 : vector<1x1x32xf32> to vector<1x32xf32>
    %c0_63 = arith.constant 0 : index
    %c0_64 = arith.constant 0 : index
    %c0_65 = arith.constant 0 : index
    %178 = vector.load %arg14[%c0_63, %c0_64, %c0_65] : memref<2x1x32xf32, #tpu.memory_space<vmem>>, vector<1x1x32xf32>
    %179 = vector.shape_cast %178 : vector<1x1x32xf32> to vector<1x32xf32>
    %cst_66 = arith.constant dense<0.000000e+00> : vector<32xf32>
    %180 = vector.multi_reduction <add>, %175, %cst_66 [1] : vector<32x32xf32> to vector<32xf32>
    %181 = vector.shape_cast %180 : vector<32xf32> to vector<32x1xf32>
    %cst_67 = arith.constant 3.200000e+01 : f32
    %182 = vector.broadcast %cst_67 : f32 to vector<32x1xf32>
    %183 = arith.divf %181, %182 : vector<32x1xf32>
    %184 = vector.broadcast %183 : vector<32x1xf32> to vector<32x32xf32>
    %185 = arith.subf %175, %184 : vector<32x32xf32>
    %186 = arith.mulf %185, %185 : vector<32x32xf32>
    %cst_68 = arith.constant dense<0.000000e+00> : vector<32xf32>
    %187 = vector.multi_reduction <add>, %186, %cst_68 [1] : vector<32x32xf32> to vector<32xf32>
    %188 = vector.shape_cast %187 : vector<32xf32> to vector<32x1xf32>
    %cst_69 = arith.constant 3.200000e+01 : f32
    %189 = vector.broadcast %cst_69 : f32 to vector<32x1xf32>
    %190 = arith.divf %188, %189 : vector<32x1xf32>
    %191 = vector.broadcast %183 : vector<32x1xf32> to vector<32x32xf32>
    %192 = arith.subf %175, %191 : vector<32x32xf32>
    %cst_70 = arith.constant 9.99999974E-6 : f32
    %193 = vector.broadcast %cst_70 : f32 to vector<32x1xf32>
    %194 = arith.addf %190, %193 : vector<32x1xf32>
    %195 = math.rsqrt %194 : vector<32x1xf32>
    %196 = vector.broadcast %195 : vector<32x1xf32> to vector<32x32xf32>
    %197 = arith.mulf %192, %196 : vector<32x32xf32>
    %198 = vector.broadcast %177 : vector<1x32xf32> to vector<32x32xf32>
    %199 = arith.mulf %197, %198 : vector<32x32xf32>
    %200 = vector.broadcast %179 : vector<1x32xf32> to vector<32x32xf32>
    %201 = arith.addf %199, %200 : vector<32x32xf32>
    %202 = arith.truncf %201 : vector<32x32xf32> to vector<32x32xbf16>
    %c0_71 = arith.constant 0 : index
    %c0_72 = arith.constant 0 : index
    %c0_73 = arith.constant 0 : index
    %203 = vector.load %arg15[%c0_71, %c0_72, %c0_73] : memref<2x32x64xbf16, #tpu.memory_space<vmem>>, vector<1x32x64xbf16>
    %204 = vector.shape_cast %203 : vector<1x32x64xbf16> to vector<32x64xbf16>
    %cst_74 = arith.constant dense<0.000000e+00> : vector<32x64xf32>
    %205 = tpu.matmul %202, %204, %cst_74 {dimension_numbers = #tpu.dot_dimension_numbers<[1], [0], [0], [1], [0, 0, 1, 1], [], []>} : vector<32x32xbf16>, vector<32x64xbf16>, vector<32x64xf32> -> vector<32x64xf32>
    %c0_75 = arith.constant 0 : index
    %c0_76 = arith.constant 0 : index
    %c0_77 = arith.constant 0 : index
    %206 = vector.load %arg16[%c0_75, %c0_76, %c0_77] : memref<2x1x64xf32, #tpu.memory_space<vmem>>, vector<1x1x64xf32>
    %207 = vector.shape_cast %206 : vector<1x1x64xf32> to vector<1x64xf32>
    %208 = vector.broadcast %207 : vector<1x64xf32> to vector<32x64xf32>
    %209 = arith.addf %205, %208 : vector<32x64xf32>
    %cst_78 = arith.constant 5.000000e-01 : f32
    %210 = vector.broadcast %cst_78 : f32 to vector<32x64xf32>
    %211 = arith.mulf %210, %209 : vector<32x64xf32>
    %cst_79 = arith.constant 4.471500e-02 : f32
    %212 = vector.broadcast %cst_79 : f32 to vector<32x64xf32>
    %213 = arith.mulf %212, %209 : vector<32x64xf32>
    %214 = arith.mulf %213, %209 : vector<32x64xf32>
    %215 = arith.mulf %214, %209 : vector<32x64xf32>
    %216 = arith.addf %209, %215 : vector<32x64xf32>
    %cst_80 = arith.constant 0.797884583 : f32
    %217 = vector.broadcast %cst_80 : f32 to vector<32x64xf32>
    %218 = arith.mulf %217, %216 : vector<32x64xf32>
    %219 = math.tanh %218 : vector<32x64xf32>
    %cst_81 = arith.constant 1.000000e+00 : f32
    %220 = vector.broadcast %cst_81 : f32 to vector<32x64xf32>
    %221 = arith.addf %220, %219 : vector<32x64xf32>
    %222 = arith.mulf %211, %221 : vector<32x64xf32>
    %223 = arith.truncf %222 : vector<32x64xf32> to vector<32x64xbf16>
    %c0_82 = arith.constant 0 : index
    %c0_83 = arith.constant 0 : index
    %c0_84 = arith.constant 0 : index
    %224 = vector.load %arg17[%c0_82, %c0_83, %c0_84] : memref<2x64x32xbf16, #tpu.memory_space<vmem>>, vector<1x64x32xbf16>
    %225 = vector.shape_cast %224 : vector<1x64x32xbf16> to vector<64x32xbf16>
    %cst_85 = arith.constant dense<0.000000e+00> : vector<32x32xf32>
    %226 = tpu.matmul %223, %225, %cst_85 {dimension_numbers = #tpu.dot_dimension_numbers<[1], [0], [0], [1], [0, 0, 1, 1], [], []>} : vector<32x64xbf16>, vector<64x32xbf16>, vector<32x32xf32> -> vector<32x32xf32>
    %c0_86 = arith.constant 0 : index
    %c0_87 = arith.constant 0 : index
    %c0_88 = arith.constant 0 : index
    %227 = vector.load %arg18[%c0_86, %c0_87, %c0_88] : memref<2x1x32xf32, #tpu.memory_space<vmem>>, vector<1x1x32xf32>
    %228 = vector.shape_cast %227 : vector<1x1x32xf32> to vector<1x32xf32>
    %229 = vector.broadcast %228 : vector<1x32xf32> to vector<32x32xf32>
    %230 = arith.addf %226, %229 : vector<32x32xf32>
    %231 = arith.addf %230, %201 : vector<32x32xf32>
    %c0_89 = arith.constant 0 : index
    %c0_90 = arith.constant 0 : index
    %c0_91 = arith.constant 0 : index
    %232 = vector.load %arg19[%c0_89, %c0_90, %c0_91] : memref<2x1x32xf32, #tpu.memory_space<vmem>>, vector<1x1x32xf32>
    %233 = vector.shape_cast %232 : vector<1x1x32xf32> to vector<1x32xf32>
    %c0_92 = arith.constant 0 : index
    %c0_93 = arith.constant 0 : index
    %c0_94 = arith.constant 0 : index
    %234 = vector.load %arg20[%c0_92, %c0_93, %c0_94] : memref<2x1x32xf32, #tpu.memory_space<vmem>>, vector<1x1x32xf32>
    %235 = vector.shape_cast %234 : vector<1x1x32xf32> to vector<1x32xf32>
    %cst_95 = arith.constant dense<0.000000e+00> : vector<32xf32>
    %236 = vector.multi_reduction <add>, %231, %cst_95 [1] : vector<32x32xf32> to vector<32xf32>
    %237 = vector.shape_cast %236 : vector<32xf32> to vector<32x1xf32>
    %cst_96 = arith.constant 3.200000e+01 : f32
    %238 = vector.broadcast %cst_96 : f32 to vector<32x1xf32>
    %239 = arith.divf %237, %238 : vector<32x1xf32>
    %240 = vector.broadcast %239 : vector<32x1xf32> to vector<32x32xf32>
    %241 = arith.subf %231, %240 : vector<32x32xf32>
    %242 = arith.mulf %241, %241 : vector<32x32xf32>
    %cst_97 = arith.constant dense<0.000000e+00> : vector<32xf32>
    %243 = vector.multi_reduction <add>, %242, %cst_97 [1] : vector<32x32xf32> to vector<32xf32>
    %244 = vector.shape_cast %243 : vector<32xf32> to vector<32x1xf32>
    %cst_98 = arith.constant 3.200000e+01 : f32
    %245 = vector.broadcast %cst_98 : f32 to vector<32x1xf32>
    %246 = arith.divf %244, %245 : vector<32x1xf32>
    %247 = vector.broadcast %239 : vector<32x1xf32> to vector<32x32xf32>
    %248 = arith.subf %231, %247 : vector<32x32xf32>
    %cst_99 = arith.constant 9.99999974E-6 : f32
    %249 = vector.broadcast %cst_99 : f32 to vector<32x1xf32>
    %250 = arith.addf %246, %249 : vector<32x1xf32>
    %251 = math.rsqrt %250 : vector<32x1xf32>
    %252 = vector.broadcast %251 : vector<32x1xf32> to vector<32x32xf32>
    %253 = arith.mulf %248, %252 : vector<32x32xf32>
    %254 = vector.broadcast %233 : vector<1x32xf32> to vector<32x32xf32>
    %255 = arith.mulf %253, %254 : vector<32x32xf32>
    %256 = vector.broadcast %235 : vector<1x32xf32> to vector<32x32xf32>
    %257 = arith.addf %255, %256 : vector<32x32xf32>
    %258 = arith.truncf %257 : vector<32x32xf32> to vector<32x32xbf16>
    %c1 = arith.constant 1 : index
    %c0_100 = arith.constant 0 : index
    %c0_101 = arith.constant 0 : index
    %259 = vector.load %arg9[%c1, %c0_100, %c0_101] : memref<2x32x96xbf16, #tpu.memory_space<vmem>>, vector<1x32x96xbf16>
    %260 = vector.shape_cast %259 : vector<1x32x96xbf16> to vector<32x96xbf16>
    %cst_102 = arith.constant dense<0.000000e+00> : vector<32x96xf32>
    %261 = tpu.matmul %258, %260, %cst_102 {dimension_numbers = #tpu.dot_dimension_numbers<[1], [0], [0], [1], [0, 0, 1, 1], [], []>} : vector<32x32xbf16>, vector<32x96xbf16>, vector<32x96xf32> -> vector<32x96xf32>
    %c1_103 = arith.constant 1 : index
    %c0_104 = arith.constant 0 : index
    %c0_105 = arith.constant 0 : index
    %262 = vector.load %arg10[%c1_103, %c0_104, %c0_105] : memref<2x1x96xf32, #tpu.memory_space<vmem>>, vector<1x1x96xf32>
    %263 = vector.shape_cast %262 : vector<1x1x96xf32> to vector<1x96xf32>
    %264 = vector.broadcast %263 : vector<1x96xf32> to vector<32x96xf32>
    %265 = arith.addf %261, %264 : vector<32x96xf32>
    %266 = vector.extract_strided_slice %265 {offsets = [0, 0], sizes = [32, 8], strides = [1, 1]} : vector<32x96xf32> to vector<32x8xf32>
    %267 = arith.truncf %266 : vector<32x8xf32> to vector<32x8xbf16>
    %268 = vector.extract_strided_slice %265 {offsets = [0, 32], sizes = [32, 8], strides = [1, 1]} : vector<32x96xf32> to vector<32x8xf32>
    %269 = arith.truncf %268 : vector<32x8xf32> to vector<32x8xbf16>
    %270 = vector.extract_strided_slice %265 {offsets = [0, 64], sizes = [32, 8], strides = [1, 1]} : vector<32x96xf32> to vector<32x8xf32>
    %271 = arith.truncf %270 : vector<32x8xf32> to vector<32x8xbf16>
    %cst_106 = arith.constant dense<0.000000e+00> : vector<32x32xf32>
    %272 = tpu.matmul %267, %269, %cst_106 {dimension_numbers = #tpu.dot_dimension_numbers<[1], [1], [0], [0], [0, 0, 1, 0], [], []>} : vector<32x8xbf16>, vector<32x8xbf16>, vector<32x32xf32> -> vector<32x32xf32>
    %cst_107 = arith.constant 0.353553385 : f32
    %273 = vector.broadcast %cst_107 : f32 to vector<32x32xf32>
    %274 = arith.mulf %272, %273 : vector<32x32xf32>
    %275 = arith.addf %274, %69 : vector<32x32xf32>
    %cst_108 = arith.constant dense<0xFF800000> : vector<32xf32>
    %276 = vector.multi_reduction <maximumf>, %275, %cst_108 [1] : vector<32x32xf32> to vector<32xf32>
    %277 = vector.shape_cast %276 : vector<32xf32> to vector<32x1xf32>
    %278 = vector.broadcast %277 : vector<32x1xf32> to vector<32x32xf32>
    %279 = arith.subf %275, %278 : vector<32x32xf32>
    %280 = math.exp %279 : vector<32x32xf32>
    %cst_109 = arith.constant dense<0.000000e+00> : vector<32xf32>
    %281 = vector.multi_reduction <add>, %280, %cst_109 [1] : vector<32x32xf32> to vector<32xf32>
    %282 = vector.shape_cast %281 : vector<32xf32> to vector<32x1xf32>
    %283 = tpu.reciprocal %282 {approx = true} : vector<32x1xf32> -> vector<32x1xf32>
    %284 = vector.broadcast %283 : vector<32x1xf32> to vector<32x32xf32>
    %285 = arith.mulf %280, %284 : vector<32x32xf32>
    %286 = arith.truncf %285 : vector<32x32xf32> to vector<32x32xbf16>
    %cst_110 = arith.constant dense<0.000000e+00> : vector<32x8xf32>
    %287 = tpu.matmul %286, %271, %cst_110 {dimension_numbers = #tpu.dot_dimension_numbers<[1], [0], [0], [1], [0, 0, 1, 1], [], []>} : vector<32x32xbf16>, vector<32x8xbf16>, vector<32x8xf32> -> vector<32x8xf32>
    %288 = vector.extract_strided_slice %265 {offsets = [0, 8], sizes = [32, 8], strides = [1, 1]} : vector<32x96xf32> to vector<32x8xf32>
    %289 = arith.truncf %288 : vector<32x8xf32> to vector<32x8xbf16>
    %290 = vector.extract_strided_slice %265 {offsets = [0, 40], sizes = [32, 8], strides = [1, 1]} : vector<32x96xf32> to vector<32x8xf32>
    %291 = arith.truncf %290 : vector<32x8xf32> to vector<32x8xbf16>
    %292 = vector.extract_strided_slice %265 {offsets = [0, 72], sizes = [32, 8], strides = [1, 1]} : vector<32x96xf32> to vector<32x8xf32>
    %293 = arith.truncf %292 : vector<32x8xf32> to vector<32x8xbf16>
    %cst_111 = arith.constant dense<0.000000e+00> : vector<32x32xf32>
    %294 = tpu.matmul %289, %291, %cst_111 {dimension_numbers = #tpu.dot_dimension_numbers<[1], [1], [0], [0], [0, 0, 1, 0], [], []>} : vector<32x8xbf16>, vector<32x8xbf16>, vector<32x32xf32> -> vector<32x32xf32>
    %cst_112 = arith.constant 0.353553385 : f32
    %295 = vector.broadcast %cst_112 : f32 to vector<32x32xf32>
    %296 = arith.mulf %294, %295 : vector<32x32xf32>
    %297 = arith.addf %296, %69 : vector<32x32xf32>
    %cst_113 = arith.constant dense<0xFF800000> : vector<32xf32>
    %298 = vector.multi_reduction <maximumf>, %297, %cst_113 [1] : vector<32x32xf32> to vector<32xf32>
    %299 = vector.shape_cast %298 : vector<32xf32> to vector<32x1xf32>
    %300 = vector.broadcast %299 : vector<32x1xf32> to vector<32x32xf32>
    %301 = arith.subf %297, %300 : vector<32x32xf32>
    %302 = math.exp %301 : vector<32x32xf32>
    %cst_114 = arith.constant dense<0.000000e+00> : vector<32xf32>
    %303 = vector.multi_reduction <add>, %302, %cst_114 [1] : vector<32x32xf32> to vector<32xf32>
    %304 = vector.shape_cast %303 : vector<32xf32> to vector<32x1xf32>
    %305 = tpu.reciprocal %304 {approx = true} : vector<32x1xf32> -> vector<32x1xf32>
    %306 = vector.broadcast %305 : vector<32x1xf32> to vector<32x32xf32>
    %307 = arith.mulf %302, %306 : vector<32x32xf32>
    %308 = arith.truncf %307 : vector<32x32xf32> to vector<32x32xbf16>
    %cst_115 = arith.constant dense<0.000000e+00> : vector<32x8xf32>
    %309 = tpu.matmul %308, %293, %cst_115 {dimension_numbers = #tpu.dot_dimension_numbers<[1], [0], [0], [1], [0, 0, 1, 1], [], []>} : vector<32x32xbf16>, vector<32x8xbf16>, vector<32x8xf32> -> vector<32x8xf32>
    %310 = vector.extract_strided_slice %265 {offsets = [0, 16], sizes = [32, 8], strides = [1, 1]} : vector<32x96xf32> to vector<32x8xf32>
    %311 = arith.truncf %310 : vector<32x8xf32> to vector<32x8xbf16>
    %312 = vector.extract_strided_slice %265 {offsets = [0, 48], sizes = [32, 8], strides = [1, 1]} : vector<32x96xf32> to vector<32x8xf32>
    %313 = arith.truncf %312 : vector<32x8xf32> to vector<32x8xbf16>
    %314 = vector.extract_strided_slice %265 {offsets = [0, 80], sizes = [32, 8], strides = [1, 1]} : vector<32x96xf32> to vector<32x8xf32>
    %315 = arith.truncf %314 : vector<32x8xf32> to vector<32x8xbf16>
    %cst_116 = arith.constant dense<0.000000e+00> : vector<32x32xf32>
    %316 = tpu.matmul %311, %313, %cst_116 {dimension_numbers = #tpu.dot_dimension_numbers<[1], [1], [0], [0], [0, 0, 1, 0], [], []>} : vector<32x8xbf16>, vector<32x8xbf16>, vector<32x32xf32> -> vector<32x32xf32>
    %cst_117 = arith.constant 0.353553385 : f32
    %317 = vector.broadcast %cst_117 : f32 to vector<32x32xf32>
    %318 = arith.mulf %316, %317 : vector<32x32xf32>
    %319 = arith.addf %318, %69 : vector<32x32xf32>
    %cst_118 = arith.constant dense<0xFF800000> : vector<32xf32>
    %320 = vector.multi_reduction <maximumf>, %319, %cst_118 [1] : vector<32x32xf32> to vector<32xf32>
    %321 = vector.shape_cast %320 : vector<32xf32> to vector<32x1xf32>
    %322 = vector.broadcast %321 : vector<32x1xf32> to vector<32x32xf32>
    %323 = arith.subf %319, %322 : vector<32x32xf32>
    %324 = math.exp %323 : vector<32x32xf32>
    %cst_119 = arith.constant dense<0.000000e+00> : vector<32xf32>
    %325 = vector.multi_reduction <add>, %324, %cst_119 [1] : vector<32x32xf32> to vector<32xf32>
    %326 = vector.shape_cast %325 : vector<32xf32> to vector<32x1xf32>
    %327 = tpu.reciprocal %326 {approx = true} : vector<32x1xf32> -> vector<32x1xf32>
    %328 = vector.broadcast %327 : vector<32x1xf32> to vector<32x32xf32>
    %329 = arith.mulf %324, %328 : vector<32x32xf32>
    %330 = arith.truncf %329 : vector<32x32xf32> to vector<32x32xbf16>
    %cst_120 = arith.constant dense<0.000000e+00> : vector<32x8xf32>
    %331 = tpu.matmul %330, %315, %cst_120 {dimension_numbers = #tpu.dot_dimension_numbers<[1], [0], [0], [1], [0, 0, 1, 1], [], []>} : vector<32x32xbf16>, vector<32x8xbf16>, vector<32x8xf32> -> vector<32x8xf32>
    %332 = vector.extract_strided_slice %265 {offsets = [0, 24], sizes = [32, 8], strides = [1, 1]} : vector<32x96xf32> to vector<32x8xf32>
    %333 = arith.truncf %332 : vector<32x8xf32> to vector<32x8xbf16>
    %334 = vector.extract_strided_slice %265 {offsets = [0, 56], sizes = [32, 8], strides = [1, 1]} : vector<32x96xf32> to vector<32x8xf32>
    %335 = arith.truncf %334 : vector<32x8xf32> to vector<32x8xbf16>
    %336 = vector.extract_strided_slice %265 {offsets = [0, 88], sizes = [32, 8], strides = [1, 1]} : vector<32x96xf32> to vector<32x8xf32>
    %337 = arith.truncf %336 : vector<32x8xf32> to vector<32x8xbf16>
    %cst_121 = arith.constant dense<0.000000e+00> : vector<32x32xf32>
    %338 = tpu.matmul %333, %335, %cst_121 {dimension_numbers = #tpu.dot_dimension_numbers<[1], [1], [0], [0], [0, 0, 1, 0], [], []>} : vector<32x8xbf16>, vector<32x8xbf16>, vector<32x32xf32> -> vector<32x32xf32>
    %cst_122 = arith.constant 0.353553385 : f32
    %339 = vector.broadcast %cst_122 : f32 to vector<32x32xf32>
    %340 = arith.mulf %338, %339 : vector<32x32xf32>
    %341 = arith.addf %340, %69 : vector<32x32xf32>
    %cst_123 = arith.constant dense<0xFF800000> : vector<32xf32>
    %342 = vector.multi_reduction <maximumf>, %341, %cst_123 [1] : vector<32x32xf32> to vector<32xf32>
    %343 = vector.shape_cast %342 : vector<32xf32> to vector<32x1xf32>
    %344 = vector.broadcast %343 : vector<32x1xf32> to vector<32x32xf32>
    %345 = arith.subf %341, %344 : vector<32x32xf32>
    %346 = math.exp %345 : vector<32x32xf32>
    %cst_124 = arith.constant dense<0.000000e+00> : vector<32xf32>
    %347 = vector.multi_reduction <add>, %346, %cst_124 [1] : vector<32x32xf32> to vector<32xf32>
    %348 = vector.shape_cast %347 : vector<32xf32> to vector<32x1xf32>
    %349 = tpu.reciprocal %348 {approx = true} : vector<32x1xf32> -> vector<32x1xf32>
    %350 = vector.broadcast %349 : vector<32x1xf32> to vector<32x32xf32>
    %351 = arith.mulf %346, %350 : vector<32x32xf32>
    %352 = arith.truncf %351 : vector<32x32xf32> to vector<32x32xbf16>
    %cst_125 = arith.constant dense<0.000000e+00> : vector<32x8xf32>
    %353 = tpu.matmul %352, %337, %cst_125 {dimension_numbers = #tpu.dot_dimension_numbers<[1], [0], [0], [1], [0, 0, 1, 1], [], []>} : vector<32x32xbf16>, vector<32x8xbf16>, vector<32x8xf32> -> vector<32x8xf32>
    %354 = tpu.concatenate %287, %309, %331, %353 in 1 : vector<32x8xf32>, vector<32x8xf32>, vector<32x8xf32>, vector<32x8xf32> -> vector<32x32xf32>
    %355 = arith.truncf %354 : vector<32x32xf32> to vector<32x32xbf16>
    %c1_126 = arith.constant 1 : index
    %c0_127 = arith.constant 0 : index
    %c0_128 = arith.constant 0 : index
    %356 = vector.load %arg11[%c1_126, %c0_127, %c0_128] : memref<2x32x32xbf16, #tpu.memory_space<vmem>>, vector<1x32x32xbf16>
    %357 = vector.shape_cast %356 : vector<1x32x32xbf16> to vector<32x32xbf16>
    %cst_129 = arith.constant dense<0.000000e+00> : vector<32x32xf32>
    %358 = tpu.matmul %355, %357, %cst_129 {dimension_numbers = #tpu.dot_dimension_numbers<[1], [0], [0], [1], [0, 0, 1, 1], [], []>} : vector<32x32xbf16>, vector<32x32xbf16>, vector<32x32xf32> -> vector<32x32xf32>
    %c1_130 = arith.constant 1 : index
    %c0_131 = arith.constant 0 : index
    %c0_132 = arith.constant 0 : index
    %359 = vector.load %arg12[%c1_130, %c0_131, %c0_132] : memref<2x1x32xf32, #tpu.memory_space<vmem>>, vector<1x1x32xf32>
    %360 = vector.shape_cast %359 : vector<1x1x32xf32> to vector<1x32xf32>
    %361 = vector.broadcast %360 : vector<1x32xf32> to vector<32x32xf32>
    %362 = arith.addf %358, %361 : vector<32x32xf32>
    %363 = arith.addf %362, %257 : vector<32x32xf32>
    %c1_133 = arith.constant 1 : index
    %c0_134 = arith.constant 0 : index
    %c0_135 = arith.constant 0 : index
    %364 = vector.load %arg13[%c1_133, %c0_134, %c0_135] : memref<2x1x32xf32, #tpu.memory_space<vmem>>, vector<1x1x32xf32>
    %365 = vector.shape_cast %364 : vector<1x1x32xf32> to vector<1x32xf32>
    %c1_136 = arith.constant 1 : index
    %c0_137 = arith.constant 0 : index
    %c0_138 = arith.constant 0 : index
    %366 = vector.load %arg14[%c1_136, %c0_137, %c0_138] : memref<2x1x32xf32, #tpu.memory_space<vmem>>, vector<1x1x32xf32>
    %367 = vector.shape_cast %366 : vector<1x1x32xf32> to vector<1x32xf32>
    %cst_139 = arith.constant dense<0.000000e+00> : vector<32xf32>
    %368 = vector.multi_reduction <add>, %363, %cst_139 [1] : vector<32x32xf32> to vector<32xf32>
    %369 = vector.shape_cast %368 : vector<32xf32> to vector<32x1xf32>
    %cst_140 = arith.constant 3.200000e+01 : f32
    %370 = vector.broadcast %cst_140 : f32 to vector<32x1xf32>
    %371 = arith.divf %369, %370 : vector<32x1xf32>
    %372 = vector.broadcast %371 : vector<32x1xf32> to vector<32x32xf32>
    %373 = arith.subf %363, %372 : vector<32x32xf32>
    %374 = arith.mulf %373, %373 : vector<32x32xf32>
    %cst_141 = arith.constant dense<0.000000e+00> : vector<32xf32>
    %375 = vector.multi_reduction <add>, %374, %cst_141 [1] : vector<32x32xf32> to vector<32xf32>
    %376 = vector.shape_cast %375 : vector<32xf32> to vector<32x1xf32>
    %cst_142 = arith.constant 3.200000e+01 : f32
    %377 = vector.broadcast %cst_142 : f32 to vector<32x1xf32>
    %378 = arith.divf %376, %377 : vector<32x1xf32>
    %379 = vector.broadcast %371 : vector<32x1xf32> to vector<32x32xf32>
    %380 = arith.subf %363, %379 : vector<32x32xf32>
    %cst_143 = arith.constant 9.99999974E-6 : f32
    %381 = vector.broadcast %cst_143 : f32 to vector<32x1xf32>
    %382 = arith.addf %378, %381 : vector<32x1xf32>
    %383 = math.rsqrt %382 : vector<32x1xf32>
    %384 = vector.broadcast %383 : vector<32x1xf32> to vector<32x32xf32>
    %385 = arith.mulf %380, %384 : vector<32x32xf32>
    %386 = vector.broadcast %365 : vector<1x32xf32> to vector<32x32xf32>
    %387 = arith.mulf %385, %386 : vector<32x32xf32>
    %388 = vector.broadcast %367 : vector<1x32xf32> to vector<32x32xf32>
    %389 = arith.addf %387, %388 : vector<32x32xf32>
    %390 = arith.truncf %389 : vector<32x32xf32> to vector<32x32xbf16>
    %c1_144 = arith.constant 1 : index
    %c0_145 = arith.constant 0 : index
    %c0_146 = arith.constant 0 : index
    %391 = vector.load %arg15[%c1_144, %c0_145, %c0_146] : memref<2x32x64xbf16, #tpu.memory_space<vmem>>, vector<1x32x64xbf16>
    %392 = vector.shape_cast %391 : vector<1x32x64xbf16> to vector<32x64xbf16>
    %cst_147 = arith.constant dense<0.000000e+00> : vector<32x64xf32>
    %393 = tpu.matmul %390, %392, %cst_147 {dimension_numbers = #tpu.dot_dimension_numbers<[1], [0], [0], [1], [0, 0, 1, 1], [], []>} : vector<32x32xbf16>, vector<32x64xbf16>, vector<32x64xf32> -> vector<32x64xf32>
    %c1_148 = arith.constant 1 : index
    %c0_149 = arith.constant 0 : index
    %c0_150 = arith.constant 0 : index
    %394 = vector.load %arg16[%c1_148, %c0_149, %c0_150] : memref<2x1x64xf32, #tpu.memory_space<vmem>>, vector<1x1x64xf32>
    %395 = vector.shape_cast %394 : vector<1x1x64xf32> to vector<1x64xf32>
    %396 = vector.broadcast %395 : vector<1x64xf32> to vector<32x64xf32>
    %397 = arith.addf %393, %396 : vector<32x64xf32>
    %cst_151 = arith.constant 5.000000e-01 : f32
    %398 = vector.broadcast %cst_151 : f32 to vector<32x64xf32>
    %399 = arith.mulf %398, %397 : vector<32x64xf32>
    %cst_152 = arith.constant 4.471500e-02 : f32
    %400 = vector.broadcast %cst_152 : f32 to vector<32x64xf32>
    %401 = arith.mulf %400, %397 : vector<32x64xf32>
    %402 = arith.mulf %401, %397 : vector<32x64xf32>
    %403 = arith.mulf %402, %397 : vector<32x64xf32>
    %404 = arith.addf %397, %403 : vector<32x64xf32>
    %cst_153 = arith.constant 0.797884583 : f32
    %405 = vector.broadcast %cst_153 : f32 to vector<32x64xf32>
    %406 = arith.mulf %405, %404 : vector<32x64xf32>
    %407 = math.tanh %406 : vector<32x64xf32>
    %cst_154 = arith.constant 1.000000e+00 : f32
    %408 = vector.broadcast %cst_154 : f32 to vector<32x64xf32>
    %409 = arith.addf %408, %407 : vector<32x64xf32>
    %410 = arith.mulf %399, %409 : vector<32x64xf32>
    %411 = arith.truncf %410 : vector<32x64xf32> to vector<32x64xbf16>
    %c1_155 = arith.constant 1 : index
    %c0_156 = arith.constant 0 : index
    %c0_157 = arith.constant 0 : index
    %412 = vector.load %arg17[%c1_155, %c0_156, %c0_157] : memref<2x64x32xbf16, #tpu.memory_space<vmem>>, vector<1x64x32xbf16>
    %413 = vector.shape_cast %412 : vector<1x64x32xbf16> to vector<64x32xbf16>
    %cst_158 = arith.constant dense<0.000000e+00> : vector<32x32xf32>
    %414 = tpu.matmul %411, %413, %cst_158 {dimension_numbers = #tpu.dot_dimension_numbers<[1], [0], [0], [1], [0, 0, 1, 1], [], []>} : vector<32x64xbf16>, vector<64x32xbf16>, vector<32x32xf32> -> vector<32x32xf32>
    %c1_159 = arith.constant 1 : index
    %c0_160 = arith.constant 0 : index
    %c0_161 = arith.constant 0 : index
    %415 = vector.load %arg18[%c1_159, %c0_160, %c0_161] : memref<2x1x32xf32, #tpu.memory_space<vmem>>, vector<1x1x32xf32>
    %416 = vector.shape_cast %415 : vector<1x1x32xf32> to vector<1x32xf32>
    %417 = vector.broadcast %416 : vector<1x32xf32> to vector<32x32xf32>
    %418 = arith.addf %414, %417 : vector<32x32xf32>
    %419 = arith.addf %418, %389 : vector<32x32xf32>
    %c1_162 = arith.constant 1 : index
    %c0_163 = arith.constant 0 : index
    %c0_164 = arith.constant 0 : index
    %420 = vector.load %arg19[%c1_162, %c0_163, %c0_164] : memref<2x1x32xf32, #tpu.memory_space<vmem>>, vector<1x1x32xf32>
    %421 = vector.shape_cast %420 : vector<1x1x32xf32> to vector<1x32xf32>
    %c1_165 = arith.constant 1 : index
    %c0_166 = arith.constant 0 : index
    %c0_167 = arith.constant 0 : index
    %422 = vector.load %arg20[%c1_165, %c0_166, %c0_167] : memref<2x1x32xf32, #tpu.memory_space<vmem>>, vector<1x1x32xf32>
    %423 = vector.shape_cast %422 : vector<1x1x32xf32> to vector<1x32xf32>
    %cst_168 = arith.constant dense<0.000000e+00> : vector<32xf32>
    %424 = vector.multi_reduction <add>, %419, %cst_168 [1] : vector<32x32xf32> to vector<32xf32>
    %425 = vector.shape_cast %424 : vector<32xf32> to vector<32x1xf32>
    %cst_169 = arith.constant 3.200000e+01 : f32
    %426 = vector.broadcast %cst_169 : f32 to vector<32x1xf32>
    %427 = arith.divf %425, %426 : vector<32x1xf32>
    %428 = vector.broadcast %427 : vector<32x1xf32> to vector<32x32xf32>
    %429 = arith.subf %419, %428 : vector<32x32xf32>
    %430 = arith.mulf %429, %429 : vector<32x32xf32>
    %cst_170 = arith.constant dense<0.000000e+00> : vector<32xf32>
    %431 = vector.multi_reduction <add>, %430, %cst_170 [1] : vector<32x32xf32> to vector<32xf32>
    %432 = vector.shape_cast %431 : vector<32xf32> to vector<32x1xf32>
    %cst_171 = arith.constant 3.200000e+01 : f32
    %433 = vector.broadcast %cst_171 : f32 to vector<32x1xf32>
    %434 = arith.divf %432, %433 : vector<32x1xf32>
    %435 = vector.broadcast %427 : vector<32x1xf32> to vector<32x32xf32>
    %436 = arith.subf %419, %435 : vector<32x32xf32>
    %cst_172 = arith.constant 9.99999974E-6 : f32
    %437 = vector.broadcast %cst_172 : f32 to vector<32x1xf32>
    %438 = arith.addf %434, %437 : vector<32x1xf32>
    %439 = math.rsqrt %438 : vector<32x1xf32>
    %440 = vector.broadcast %439 : vector<32x1xf32> to vector<32x32xf32>
    %441 = arith.mulf %436, %440 : vector<32x32xf32>
    %442 = vector.broadcast %421 : vector<1x32xf32> to vector<32x32xf32>
    %443 = arith.mulf %441, %442 : vector<32x32xf32>
    %444 = vector.broadcast %423 : vector<1x32xf32> to vector<32x32xf32>
    %445 = arith.addf %443, %444 : vector<32x32xf32>
    %446 = vector.extract_strided_slice %445 {offsets = [0, 0], sizes = [1, 32], strides = [1, 1]} : vector<32x32xf32> to vector<1x32xf32>
    %447 = vector.extract_strided_slice %445 {offsets = [16, 0], sizes = [1, 32], strides = [1, 1]} : vector<32x32xf32> to vector<1x32xf32>
    %448 = tpu.concatenate %446, %447 in 0 : vector<1x32xf32>, vector<1x32xf32> -> vector<2x32xf32>
    %449 = arith.truncf %448 : vector<2x32xf32> to vector<2x32xbf16>
    %c0_173 = arith.constant 0 : index
    %c0_174 = arith.constant 0 : index
    %450 = vector.load %arg21[%c0_173, %c0_174] : memref<32x32xbf16, #tpu.memory_space<vmem>>, vector<32x32xbf16>
    %cst_175 = arith.constant dense<0.000000e+00> : vector<2x32xf32>
    %451 = tpu.matmul %449, %450, %cst_175 {dimension_numbers = #tpu.dot_dimension_numbers<[1], [0], [0], [1], [0, 0, 1, 1], [], []>} : vector<2x32xbf16>, vector<32x32xbf16>, vector<2x32xf32> -> vector<2x32xf32>
    %c0_176 = arith.constant 0 : index
    %c0_177 = arith.constant 0 : index
    %452 = vector.load %arg22[%c0_176, %c0_177] : memref<1x32xf32, #tpu.memory_space<vmem>>, vector<1x32xf32>
    %453 = vector.broadcast %452 : vector<1x32xf32> to vector<2x32xf32>
    %454 = arith.addf %451, %453 : vector<2x32xf32>
    %455 = math.tanh %454 : vector<2x32xf32>
    %c0_178 = arith.constant 0 : index
    %c0_179 = arith.constant 0 : index
    %456 = vector.load %arg23[%c0_178, %c0_179] : memref<2x32xf32, #tpu.memory_space<vmem>>, vector<2x32xf32>
    tpu.vector_store %arg23[%c0_178, %c0_179], %455 {strides = array<i32>} : memref<2x32xf32, #tpu.memory_space<vmem>>, vector<2x32xf32>,
    return
  }
  func.func @transform_0(%arg0: i32) -> (i32, i32) {
    %c0_i32 = arith.constant 0 : i32
    %c0_i32_0 = arith.constant 0 : i32
    %c0_i32_1 = arith.constant 0 : i32
    return %c0_i32, %c0_i32_0 : i32, i32
  }
  func.func @transform_1(%arg0: i32) -> (i32, i32) {
    %c0_i32 = arith.constant 0 : i32
    %c0_i32_0 = arith.constant 0 : i32
    %c0_i32_1 = arith.constant 0 : i32
    return %c0_i32, %c0_i32_0 : i32, i32
  }
  func.func @transform_2(%arg0: i32) -> (i32, i32) {
    %c0_i32 = arith.constant 0 : i32
    %c0_i32_0 = arith.constant 0 : i32
    %c0_i32_1 = arith.constant 0 : i32
    return %c0_i32, %c0_i32_0 : i32, i32
  }
  func.func @transform_3(%arg0: i32) -> (i32, i32) {
    %c0_i32 = arith.constant 0 : i32
    %c0_i32_0 = arith.constant 0 : i32
    %c0_i32_1 = arith.constant 0 : i32
    return %c0_i32, %c0_i32_0 : i32, i32
  }
  func.func @transform_4(%arg0: i32) -> (i32, i32) {
    %c0_i32 = arith.constant 0 : i32
    %c0_i32_0 = arith.constant 0 : i32
    %c0_i32_1 = arith.constant 0 : i32
    return %c0_i32, %c0_i32_0 : i32, i32
  }
  func.func @transform_5(%arg0: i32) -> (i32, i32) {
    %c0_i32 = arith.constant 0 : i32
    %c0_i32_0 = arith.constant 0 : i32
    %c0_i32_1 = arith.constant 0 : i32
    return %c0_i32, %c0_i32_0 : i32, i32
  }
  func.func @transform_6(%arg0: i32) -> (i32, i32) {
    %c0_i32 = arith.constant 0 : i32
    %c0_i32_0 = arith.constant 0 : i32
    %c0_i32_1 = arith.constant 0 : i32
    return %c0_i32, %c0_i32_0 : i32, i32
  }
  func.func @transform_7(%arg0: i32) -> (i32, i32) {
    %c0_i32 = arith.constant 0 : i32
    %c0_i32_0 = arith.constant 0 : i32
    %c0_i32_1 = arith.constant 0 : i32
    return %c0_i32, %c0_i32_0 : i32, i32
  }
  func.func @transform_8(%arg0: i32) -> (i32, i32, i32) {
    %c0_i32 = arith.constant 0 : i32
    %c0_i32_0 = arith.constant 0 : i32
    %c0_i32_1 = arith.constant 0 : i32
    %c0_i32_2 = arith.constant 0 : i32
    return %c0_i32, %c0_i32_0, %c0_i32_1 : i32, i32, i32
  }
  func.func @transform_9(%arg0: i32) -> (i32, i32, i32) {
    %c0_i32 = arith.constant 0 : i32
    %c0_i32_0 = arith.constant 0 : i32
    %c0_i32_1 = arith.constant 0 : i32
    %c0_i32_2 = arith.constant 0 : i32
    return %c0_i32, %c0_i32_0, %c0_i32_1 : i32, i32, i32
  }
  func.func @transform_10(%arg0: i32) -> (i32, i32, i32) {
    %c0_i32 = arith.constant 0 : i32
    %c0_i32_0 = arith.constant 0 : i32
    %c0_i32_1 = arith.constant 0 : i32
    %c0_i32_2 = arith.constant 0 : i32
    return %c0_i32, %c0_i32_0, %c0_i32_1 : i32, i32, i32
  }
  func.func @transform_11(%arg0: i32) -> (i32, i32, i32) {
    %c0_i32 = arith.constant 0 : i32
    %c0_i32_0 = arith.constant 0 : i32
    %c0_i32_1 = arith.constant 0 : i32
    %c0_i32_2 = arith.constant 0 : i32
    return %c0_i32, %c0_i32_0, %c0_i32_1 : i32, i32, i32
  }
  func.func @transform_12(%arg0: i32) -> (i32, i32, i32) {
    %c0_i32 = arith.constant 0 : i32
    %c0_i32_0 = arith.constant 0 : i32
    %c0_i32_1 = arith.constant 0 : i32
    %c0_i32_2 = arith.constant 0 : i32
    return %c0_i32, %c0_i32_0, %c0_i32_1 : i32, i32, i32
  }
  func.func @transform_13(%arg0: i32) -> (i32, i32, i32) {
    %c0_i32 = arith.constant 0 : i32
    %c0_i32_0 = arith.constant 0 : i32
    %c0_i32_1 = arith.constant 0 : i32
    %c0_i32_2 = arith.constant 0 : i32
    return %c0_i32, %c0_i32_0, %c0_i32_1 : i32, i32, i32
  }
  func.func @transform_14(%arg0: i32) -> (i32, i32, i32) {
    %c0_i32 = arith.constant 0 : i32
    %c0_i32_0 = arith.constant 0 : i32
    %c0_i32_1 = arith.constant 0 : i32
    %c0_i32_2 = arith.constant 0 : i32
    return %c0_i32, %c0_i32_0, %c0_i32_1 : i32, i32, i32
  }
  func.func @transform_15(%arg0: i32) -> (i32, i32, i32) {
    %c0_i32 = arith.constant 0 : i32
    %c0_i32_0 = arith.constant 0 : i32
    %c0_i32_1 = arith.constant 0 : i32
    %c0_i32_2 = arith.constant 0 : i32
    return %c0_i32, %c0_i32_0, %c0_i32_1 : i32, i32, i32
  }
  func.func @transform_16(%arg0: i32) -> (i32, i32, i32) {
    %c0_i32 = arith.constant 0 : i32
    %c0_i32_0 = arith.constant 0 : i32
    %c0_i32_1 = arith.constant 0 : i32
    %c0_i32_2 = arith.constant 0 : i32
    return %c0_i32, %c0_i32_0, %c0_i32_1 : i32, i32, i32
  }
  func.func @transform_17(%arg0: i32) -> (i32, i32, i32) {
    %c0_i32 = arith.constant 0 : i32
    %c0_i32_0 = arith.constant 0 : i32
    %c0_i32_1 = arith.constant 0 : i32
    %c0_i32_2 = arith.constant 0 : i32
    return %c0_i32, %c0_i32_0, %c0_i32_1 : i32, i32, i32
  }
  func.func @transform_18(%arg0: i32) -> (i32, i32, i32) {
    %c0_i32 = arith.constant 0 : i32
    %c0_i32_0 = arith.constant 0 : i32
    %c0_i32_1 = arith.constant 0 : i32
    %c0_i32_2 = arith.constant 0 : i32
    return %c0_i32, %c0_i32_0, %c0_i32_1 : i32, i32, i32
  }
  func.func @transform_19(%arg0: i32) -> (i32, i32, i32) {
    %c0_i32 = arith.constant 0 : i32
    %c0_i32_0 = arith.constant 0 : i32
    %c0_i32_1 = arith.constant 0 : i32
    %c0_i32_2 = arith.constant 0 : i32
    return %c0_i32, %c0_i32_0, %c0_i32_1 : i32, i32, i32
  }
  func.func @transform_20(%arg0: i32) -> (i32, i32) {
    %c0_i32 = arith.constant 0 : i32
    %c0_i32_0 = arith.constant 0 : i32
    %c0_i32_1 = arith.constant 0 : i32
    return %c0_i32, %c0_i32_0 : i32, i32
  }
  func.func @transform_21(%arg0: i32) -> (i32, i32) {
    %c0_i32 = arith.constant 0 : i32
    %c0_i32_0 = arith.constant 0 : i32
    %c0_i32_1 = arith.constant 0 : i32
    return %c0_i32, %c0_i32_0 : i32, i32
  }
  func.func @transform_22(%arg0: i32) -> (i32, i32) {
    %c0_i32 = arith.constant 0 : i32
    %c0_i32_0 = arith.constant 0 : i32
    %c0_i32_1 = arith.constant 0 : i32
    return %c0_i32, %c0_i32_0 : i32, i32
  }
}

</mosaic_0001>

<bundles_post_ra>
// kernel: graphcodebert_forward.1
= control target key start
LH: loop header
LB: loop body
LE: loop exit
PB: predicated region body
PF: predicated region fallthrough
CT: control target
= control target key end

     0   :  { %s4741_s0 = inlined_call_operand.vmem [shape: s32[32,1], index: 0, kind: input, shape index: {}]   ;;  %s4742_s1 = inlined_call_operand.vmem [shape: s32[1,32], index: 1, kind: input, shape index: {}]   ;;  %s4743_s2 = inlined_call_operand.vmem [shape: f32[32,32], index: 2, kind: input, shape index: {}]   ;;  %s4744_s3 = inlined_call_operand.vmem [shape: f32[32,32], index: 3, kind: input, shape index: {}]   ;;  %s4745_s4 = inlined_call_operand.vmem [shape: f32[32,32], index: 4, kind: input, shape index: {}]   ;;  %s4746_s5 = inlined_call_operand.vmem [shape: f32[1,32], index: 5, kind: input, shape index: {}]   ;;  %s4747_s6 = inlined_call_operand.vmem [shape: f32[1,32], index: 6, kind: input, shape index: {}]   ;;  %s4748_s7 = inlined_call_operand.vmem [shape: f32[1,32], index: 7, kind: input, shape index: {}]   ;;  %s4749_s8 = inlined_call_operand.vmem [shape: bf16[2,32,96], index: 8, kind: input, shape index: {}]   ;;  %s4750_s9 = inlined_call_operand.vmem [shape: f32[2,1,96], index: 9, kind: input, shape index: {}]   ;;  %s4751_s10 = inlined_call_operand.vmem [shape: bf16[2,32,32], index: 10, kind: input, shape index: {}]   ;;  %s4752_s11 = inlined_call_operand.vmem [shape: f32[2,1,32], index: 11, kind: input, shape index: {}]   ;;  %s4753_s12 = inlined_call_operand.vmem [shape: f32[2,1,32], index: 12, kind: input, shape index: {}]   ;;  %s4754_s13 = inlined_call_operand.vmem [shape: f32[2,1,32], index: 13, kind: input, shape index: {}]   ;;  %s4755_s14 = inlined_call_operand.vmem [shape: bf16[2,32,64], index: 14, kind: input, shape index: {}]   ;;  %s4756_s15 = inlined_call_operand.vmem [shape: f32[2,1,64], index: 15, kind: input, shape index: {}]   ;;  %s4757_s16 = inlined_call_operand.vmem [shape: bf16[2,64,32], index: 16, kind: input, shape index: {}]   ;;  %s4758_s17 = inlined_call_operand.vmem [shape: f32[2,1,32], index: 17, kind: input, shape index: {}]   ;;  %s4759_s18 = inlined_call_operand.vmem [shape: f32[2,1,32], index: 18, kind: input, shape index: {}]   ;;  %s4760_s19 = inlined_call_operand.vmem [shape: f32[2,1,32], index: 19, kind: input, shape index: {}]   ;;  %s4761_s20 = inlined_call_operand.vmem [shape: bf16[32,32], index: 20, kind: input, shape index: {}]   ;;  %s4762_s21 = inlined_call_operand.vmem [shape: f32[1,32], index: 21, kind: input, shape index: {}]   ;;  %s4763_s22 = inlined_call_operand.hbm [shape: f32[2,32], index: 22, kind: output, shape index: {}]  }
   0x1   :  { %4780 = sst [smem:[#allocation5_spill]] %s4741_s0 }
   0x2   :  { %4781 = sst [smem:[#allocation6_spill]] %s4742_s1 }
   0x3   :  { %4782 = sst [smem:[#allocation7_spill]] %s4743_s2 }
   0x4   :  { %4783 = sst [smem:[#allocation8_spill]] %s4744_s3 }
   0x5   :  { %4784 = sst [smem:[#allocation9_spill]] %s4745_s4 }
   0x6   :  { %4785 = sst [smem:[#allocation10_spill]] %s4746_s5 }
   0x7   :  { %4786 = sst [smem:[#allocation11_spill]] %s4747_s6 }
   0x8   :  { %s4787_s29 = sld [smem:[#allocation5_spill]]  ;;  %v3881_v3 = vmov 0   ;;  %v3882_v5 = vmov 0.0  }
   0x9   :  { %3575 = vset.pattern.permute.xlu0 %v3881_v3  ;;  %3586 = vset.pattern.permute.xlu1 %v3881_v3 }
   0xe   :  { %v81_v0 = vld [vmem:[%s4787_s29] sm:$0xff]  ;;  %v82_v1 = vld [vmem:[%s4787_s29 + $0x8] sm:$0xff]  ;;  %v83_v2 = vld [vmem:[%s4787_s29 + $0x10] sm:$0xff] }
   0xf   :  { %vm85_vm0 = vcmp.eq.s32.totalorder %v81_v0, 0  ;;  %vm86_vm1 = vcmp.eq.s32.totalorder %v82_v1, 0  ;;  %v84_v4 = vld [vmem:[%s4787_s29 + $0x18] sm:$0xff]  ;;  %vm87_vm2 = vcmp.eq.s32.totalorder %v83_v2, 0 }
  0x10   :  { %v4027_v6 = vsel %vm85_vm0, 1.0, %v3882_v5  ;;  %v4030_v7 = vsel %vm86_vm1, 1.0, %v3882_v5  ;;  %vm88_vm3 = vcmp.eq.s32.totalorder %v84_v4, 0  ;;  %v4033_v8 = vsel %vm87_vm2, 1.0, %v3882_v5 }
  0x11   :  { %v3576_v9 = vpack.i.bf16 %v4030_v7, %v4027_v6  ;;  %v4038_v10 = vsel %vm88_vm3, 1.0, %v3882_v5 }
  0x12   :  { %v3581_v11 = vpack.i.bf16 %v4038_v10, %v4033_v8 }
  0x13   :  { %3577 = vperm.xlu0 %3575, %v3576_v9  }
  0x17   :  { %3582 = vperm.xlu0 %3575, %v3581_v11  }
  0x18   :  { %27 = vsyncpa [#allocation3], 0  ;;  %v122_v12 = vlaneseq  ;;  %s4788_s25 = sld [smem:[#allocation6_spill]]  ;;  %vm147_vm8 = vcmask 261120   ;;  %v231_v47 = vsub.f32 1.0, %v4027_v6  ;;  %v232_v51 = vsub.f32 1.0, %v4030_v7 }
  0x19   :  { %s4789_s27 = sld [smem:[#allocation7_spill]]  ;;  %v233_v52 = vsub.f32 1.0, %v4033_v8  ;;  %v234_v53 = vsub.f32 1.0, %v4038_v10  ;;  %vm457_vm10 = vcmask 64512   ;;  %s3885_s24 = smov 88   ;;  %vm1238_vm11 = vcmask 130048  }
  0x1a   :  { %v123_v14 = vshrl.u32 %v122_v12, 7  ;;  %s4790_s5 = sld [smem:[#allocation8_spill]]  ;;  %s3886_s6 = smov 120   ;;  %vm1243_vm12 = vcmask 195584   ;;  %vm1563_vm13 = vcmask 523264   ;;  %vm3897_vm14 = vmmov 0  }
  0x1b   :  { %s4791_s29 = sld [smem:[#allocation9_spill]]  ;;  %s3888_s26 = smov 80   ;;  %vm3002_vm15 = vcmask 1040384   ;;  %vm3072_vm0 = vcmask 254976  }
  0x1c   :  { %v124_v15 = vsub.s32 0, %v123_v14  ;;  %s4792_s1 = sld [smem:[#allocation10_spill]]  ;;  %s3889_s2 = smov 112  }
  0x1d   :  { %s4793_s30 = sld [smem:[#allocation11_spill]]  ;;  %s4778_s3 = smov 72  }
  0x1e   :  { %v97_v13 = vld [vmem:[%s4788_s25] sm:$0x1]  ;;  %s3887_s25 = smov 56   ;;  %s4776_s28 = smov 104  }
  0x1f   :  { %vm98_vm4 = vcmp.ge.s32.totalorder %v97_v13, 2  ;;  %v4048_v16 = vld [vmem:[%s4789_s27] sm:$0xff]  ;;  %v4054_v18 = vld [vmem:[%s4789_s27 + $0x8] sm:$0xff]  ;;  %v4062_v21 = vld [vmem:[%s4789_s27 + $0x10] sm:$0xff]  ;;  %s4768_s4 = smov 16  }
  0x20   :  { %v3092_v17 = vsel %vm98_vm4, 1.0, %v3882_v5  ;;  %vm131_vm5 = vcmp.ne.f32.partialorder %v4048_v16, 0.0  ;;  %vm132_vm6 = vcmp.ne.f32.partialorder %v4054_v18, 0.0  ;;  %v4071_v25 = vld [vmem:[%s4789_s27 + $0x18] sm:$0xff]  ;;  %vm133_vm7 = vcmp.ne.f32.partialorder %v4062_v21, 0.0  ;;  %v79_v44 = vld [vmem:[%s4790_s5 + $0x10] sm:$0xff] }
  0x21   :  { %v125_v19 = vrot.slane %v3092_v17, %v124_v15  ;;  %v3093_v24 = vsel %vm131_vm5, 1.0, %v3882_v5  ;;  %v3094_v29 = vsel %vm132_vm6, 1.0, %v3882_v5  ;;  %vm134_vm9 = vcmp.ne.f32.partialorder %v4071_v25, 0.0  ;;  %v80_v45 = vld [vmem:[%s4790_s5 + $0x18] sm:$0xff]  ;;  %v77_v46 = vld [vmem:[%s4790_s5] sm:$0xff]  ;;  %v78_v49 = vld [vmem:[%s4790_s5 + $0x8] sm:$0xff] }
  0x22   :  { %v3095_v33 = vsel %vm133_vm7, 1.0, %v3882_v5  ;;  %v3096_v38 = vsel %vm134_vm9, 1.0, %v3882_v5  ;;  %v175_v48 = vpack.c.bf16 %v80_v45, %v79_v44  ;;  %v174_v50 = vpack.c.bf16 %v78_v49, %v77_v46  ;;  %s3884_s5 = smov 64   ;;  %s3890_s27 = smov 48  }
  0x24   :  { %3325 = vmatprep.subr.bf16.mxu0 %v175_v48 }
  0x25   :  { %3326 = vmatpush3.bf16.msra.mxu0 %v175_v48 }
  0x26   :  { %3327 = vmatprep.subr.bf16.mxu0 %v174_v50 }
  0x29   :  { %3328 = vmatpush3.bf16.msra.mxu0 %v174_v50 }
  0x8e   :  { %v4057_v20 = vpop.permute.xlu0 %3577 }
  0x8f   :  { %v3580_v22 = vunpack.i.h.bf16 %v4057_v20  ;;  %v3579_v23 = vunpack.i.l.bf16 %v4057_v20 }
  0x91   :  { %v127_v26 = vmul.f32 %v3579_v23, %v125_v19  ;;  %v128_v27 = vmul.f32 %v3580_v22, %v125_v19 }
  0x92   :  { %v4078_v28 = vpop.permute.xlu0 %3582 }
  0x93   :  { %v3585_v30 = vunpack.i.h.bf16 %v4078_v28  ;;  %v3584_v31 = vunpack.i.l.bf16 %v4078_v28  ;;  %v143_v32 = vmul.f32 %v3093_v24, %v127_v26  ;;  %v144_v36 = vmul.f32 %v3094_v29, %v128_v27  ;;  %v267_v29 = vld [vmem:[%s4791_s29] sm:$0xff]  ;;  %v270_v28 = vld [vmem:[%s4791_s29 + $0x18] sm:$0xff] }
  0x95   :  { %v148_v34 = vsel %vm147_vm8, %v143_v32, 0.0  ;;  %v129_v35 = vmul.f32 %v3584_v31, %v125_v19  ;;  %v130_v37 = vmul.f32 %v3585_v30, %v125_v19  ;;  %v151_v41 = vsel %vm147_vm8, %v144_v36, 0.0 }
  0x96   :  { %149 = vadd.xlane.f32.xlu1 %v148_v34 }
  0x97   :  { %v145_v39 = vmul.f32 %v3095_v33, %v129_v35  ;;  %v146_v42 = vmul.f32 %v3096_v38, %v130_v37 }
  0x99   :  { %v154_v40 = vsel %vm147_vm8, %v145_v39, 0.0  ;;  %v157_v43 = vsel %vm147_vm8, %v146_v42, 0.0 }
  0x9a   :  { %155 = vadd.xlane.f32.xlu0 %v154_v40  ;;  %152 = vadd.xlane.f32.xlu1 %v151_v41  ;;  %v3099_v40 = vld [vmem:[%s4792_s1] ss:$0 sm:$0xff]  ;;  %v268_v41 = vld [vmem:[%s4791_s29 + $0x8] sm:$0xff]  ;;  %s3883_s1 = smov 96  }
  0x9e   :  { %158 = vadd.xlane.f32.xlu1 %v157_v43 }
  0xaf   :  { %237 = vperm.xlu1 %3586, %v231_v47  }
  0xb3   :  { %242 = vperm.xlu1 %3586, %v232_v51  }
  0xb7   :  { %247 = vperm.xlu1 %3586, %v233_v52  }
  0xbb   :  { %252 = vperm.xlu1 %3586, %v234_v53  }
 0x11f   :  { %v150_v54 = vpop.xlane.xlu1 %149 }
 0x120   :  { %v160_v55 = vadd.f32 1e-10, %v150_v54 }
 0x122   :  { %3669 = vrcp.f32 %v160_v55 }
 0x123   :  { %v156_v56 = vpop.xlane.xlu0 %155  ;;  %v153_v57 = vpop.xlane.xlu1 %152 }
 0x124   :  { %v162_v58 = vadd.f32 1e-10, %v156_v56  ;;  %v161_v59 = vadd.f32 1e-10, %v153_v57 }
 0x126   :  { %3671 = vrcp.f32 %v161_v59 }
 0x127   :  { %v159_v60 = vpop.xlane.xlu1 %158  ;;  %3673 = vrcp.f32 %v162_v58 }
 0x128   :  { %v163_v61 = vadd.f32 1e-10, %v159_v60 }
 0x12a   :  { %3675 = vrcp.f32 %v163_v61 }
 0x12b   :  { %v238_v9 = vpop.permute.xlu1 %237 }
 0x12c   :  { %v255_v19 = vmul.f32 %v238_v9, %v77_v46 }
 0x12f   :  { %v3670_v62 = vpop.eup %3669  ;;  %v243_v10 = vpop.permute.xlu1 %242 }
 0x130   :  { %v168_v1 = vmul.f32 %v3670_v62, %v143_v32  ;;  %v269_v32 = vld [vmem:[%s4791_s29 + $0x10] sm:$0xff]  ;;  %v256_v35 = vmul.f32 %v243_v10, %v78_v49  ;;  %s4774_s29 = smov 40  }
 0x133   :  { %v3672_v63 = vpop.eup %3671  ;;  %v248_v11 = vpop.permute.xlu1 %247 }
 0x134   :  { %v3674_v0 = vpop.eup %3673  ;;  %v169_v2 = vmul.f32 %v3672_v63, %v144_v36  ;;  %v257_v13 = vmul.f32 %v248_v11, %v79_v44 }
 0x135   :  { %v170_v6 = vmul.f32 %v3674_v0, %v145_v39 }
 0x136   :  { %v172_v4 = vpack.c.bf16 %v169_v2, %v168_v1 }
 0x137   :  { %v3676_v3 = vpop.eup %3675  ;;  %v253_v15 = vpop.permute.xlu1 %252 }
 0x138   :  { %v171_v7 = vmul.f32 %v3676_v3, %v146_v42  ;;  %3329 = vmatprep.mubr.msk.bf16.mxu0 %vm147_vm8, %v172_v4  ;;  %v258_v33 = vmul.f32 %v253_v15, %v80_v45 }
 0x13a   :  { %v173_v8 = vpack.c.bf16 %v171_v7, %v170_v6  ;;  %v3647_v7 = vld [vmem:[%s4749_s8 + $0x8] sm:$0xff]  }
 0x13b   :  { %3333 = vmatprep.subr.bf16.mxu1 %v3647_v7 }
 0x13c   :  { %3330 = vmatmul.mubr.msk.bf16.vlgmr.msra.gmra.mxu0 %vm147_vm8, %v173_v8  ;;  %v3648_v8 = vld [vmem:[%s4749_s8] sm:$0xff]   ;;  %3334 = vmatpush3.bf16.msra.mxu1 %v3647_v7 }
 0x13d   :  { %3335 = vmatprep.subr.bf16.mxu1 %v3648_v8 }
 0x140   :  { %3336 = vmatpush3.bf16.msra.mxu1 %v3648_v8 }
 0x1fc   :  { %v3331_v12 = vpop.f32.mrf.mxu0 }
 0x1fd   :  { %v261_v14 = vmul.f32 %v3584_v31, %v3331_v12 }
 0x1fe   :  { %v216_v17 = vpop.f32.mrf.mxu0 }
 0x1ff   :  { %v265_v24 = vadd.f32 %v261_v14, %v257_v13  ;;  %v259_v26 = vmul.f32 %v3579_v23, %v216_v17 }
 0x200   :  { %v3332_v27 = vpop.f32.mrf.mxu0 }
 0x201   :  { %v263_v34 = vadd.f32 %v259_v26, %v255_v19  ;;  %v262_v31 = vmul.f32 %v3585_v30, %v3332_v27  ;;  %v273_v39 = vadd.f32 %v269_v32, %v265_v24 }
 0x202   :  { %v219_v36 = vpop.f32.mrf.mxu0 }
 0x203   :  { %v266_v37 = vadd.f32 %v262_v31, %v258_v33  ;;  %v260_v23 = vmul.f32 %v3580_v22, %v219_v36  ;;  %v271_v38 = vadd.f32 %v267_v29, %v263_v34  ;;  %v284_v22 = vadd.f32 %v3099_v40, %v273_v39  ;;  %v3100_v31 = vld [vmem:[%s4793_s30] ss:$0 sm:$0xff]  ;;  %s4770_s30 = smov 8  }
 0x204   :  { %v3101_v39 = vld [vmem:[%s4748_s7] ss:$0 sm:$0xff] }
 0x205   :  { %v264_v30 = vadd.f32 %v260_v23, %v256_v35  ;;  %v282_v42 = vadd.f32 %v3099_v40, %v271_v38  ;;  %v274_v44 = vadd.f32 %v270_v28, %v266_v37  ;;  %v294_v47 = vsel %vm147_vm8, %v284_v22, 0.0 }
 0x207   :  { %v288_v43 = vsel %vm147_vm8, %v282_v42, 0.0  ;;  %v272_v20 = vadd.f32 %v268_v41, %v264_v30  ;;  %v285_v48 = vadd.f32 %v3099_v40, %v274_v44 }
 0x208   :  { %289 = vadd.xlane.f32.xlu0 %v288_v43 }
 0x209   :  { %v283_v45 = vadd.f32 %v3099_v40, %v272_v20  ;;  %v297_v49 = vsel %vm147_vm8, %v285_v48, 0.0 }
 0x20b   :  { %v291_v46 = vsel %vm147_vm8, %v283_v45, 0.0 }
 0x20c   :  { %292 = vadd.xlane.f32.xlu1 %v291_v46  ;;  %295 = vadd.xlane.f32.xlu0 %v294_v47  ;;  %v3102_v46 = vld [vmem:[%s4750_s9] ss:$0 sm:$0xff] }
 0x210   :  { %298 = vadd.xlane.f32.xlu0 %v297_v49 }
 0x291   :  { %v290_v50 = vpop.xlane.xlu0 %289 }
 0x292   :  { %v301_v51 = vmul.f32 0.03125, %v290_v50 }
 0x294   :  { %v305_v55 = vsub.f32 %v282_v42, %v301_v51 }
 0x295   :  { %v296_v52 = vpop.xlane.xlu0 %295  ;;  %v293_v53 = vpop.xlane.xlu1 %292 }
 0x296   :  { %v303_v54 = vmul.f32 0.03125, %v296_v52  ;;  %v302_v57 = vmul.f32 0.03125, %v293_v53  ;;  %v309_v63 = vmul.f32 %v305_v55, %v305_v55 }
 0x298   :  { %v307_v56 = vsub.f32 %v284_v22, %v303_v54  ;;  %v306_v60 = vsub.f32 %v283_v45, %v302_v57  ;;  %v313_v1 = vsel %vm147_vm8, %v309_v63, 0.0 }
 0x299   :  { %v299_v58 = vpop.xlane.xlu0 %298 }
 0x29a   :  { %v311_v59 = vmul.f32 %v307_v56, %v307_v56  ;;  %v304_v61 = vmul.f32 0.03125, %v299_v58  ;;  %v310_v2 = vmul.f32 %v306_v60, %v306_v60 }
 0x29c   :  { %v319_v62 = vsel %vm147_vm8, %v311_v59, 0.0  ;;  %v308_v0 = vsub.f32 %v285_v48, %v304_v61  ;;  %v316_v3 = vsel %vm147_vm8, %v310_v2, 0.0  ;;  %v363_v61 = vsub.f32 1.0, %v4062_v21 }
 0x29d   :  { %320 = vadd.xlane.f32.xlu0 %v319_v62 }
 0x29e   :  { %v312_v4 = vmul.f32 %v308_v0, %v308_v0 }
 0x2a0   :  { %v322_v6 = vsel %vm147_vm8, %v312_v4, 0.0 }
 0x2a1   :  { %314 = vadd.xlane.f32.xlu0 %v313_v1  ;;  %v364_v1 = vsub.f32 1.0, %v4071_v25 }
 0x2a5   :  { %317 = vadd.xlane.f32.xlu0 %v316_v3  ;;  %v4194_v3 = vmul.f32 -10000.0, %v363_v61 }
 0x2a9   :  { %323 = vadd.xlane.f32.xlu0 %v322_v6 }
 0x326   :  { %v321_v9 = vpop.xlane.xlu0 %320 }
 0x327   :  { %v327_v10 = vmul.f32 0.03125, %v321_v9 }
 0x329   :  { %v331_v13 = vadd.f32 1e-05, %v327_v10 }
 0x32a   :  { %v315_v11 = vpop.xlane.xlu0 %314 }
 0x32b   :  { %v325_v12 = vmul.f32 0.03125, %v315_v11 }
 0x32d   :  { %v329_v14 = vadd.f32 1e-05, %v325_v12 }
 0x32e   :  { %v318_v15 = vpop.xlane.xlu0 %317 }
 0x32f   :  { %3677 = vrsqrt.f32 %v329_v14  ;;  %v326_v17 = vmul.f32 0.03125, %v318_v15 }
 0x330   :  { %3679 = vrsqrt.f32 %v331_v13 }
 0x331   :  { %v330_v19 = vadd.f32 1e-05, %v326_v17 }
 0x332   :  { %v324_v24 = vpop.xlane.xlu0 %323 }
 0x333   :  { %3681 = vrsqrt.f32 %v330_v19  ;;  %v328_v26 = vmul.f32 0.03125, %v324_v24 }
 0x335   :  { %v332_v27 = vadd.f32 1e-05, %v328_v26 }
 0x337   :  { %3683 = vrsqrt.f32 %v332_v27 }
 0x33c   :  { %v3678_v29 = vpop.eup %3677 }
 0x33d   :  { %v337_v32 = vmul.f32 %v3678_v29, %v305_v55  ;;  %v3680_v33 = vpop.eup %3679 }
 0x33e   :  { %v339_v37 = vmul.f32 %v3680_v33, %v307_v56 }
 0x33f   :  { %v347_v36 = vmul.f32 %v3100_v31, %v337_v32 }
 0x340   :  { %v3682_v34 = vpop.eup %3681  ;;  %v349_v30 = vmul.f32 %v3100_v31, %v339_v37 }
 0x341   :  { %v338_v35 = vmul.f32 %v3682_v34, %v306_v60  ;;  %v4155_v40 = vadd.f32 %v3101_v39, %v347_v36  ;;  %v361_v60 = vsub.f32 1.0, %v4048_v16  ;;  %v4199_v16 = vmul.f32 -10000.0, %v364_v1 }
 0x342   :  { %v4162_v20 = vadd.f32 %v3101_v39, %v349_v30 }
 0x343   :  { %v348_v23 = vmul.f32 %v3100_v31, %v338_v35  ;;  %v4190_v63 = vmul.f32 -10000.0, %v361_v60 }
 0x344   :  { %v3684_v38 = vpop.eup %3683 }
 0x345   :  { %v4157_v41 = vadd.f32 %v3101_v39, %v348_v23  ;;  %v340_v28 = vmul.f32 %v3684_v38, %v308_v0  ;;  %v362_v0 = vsub.f32 1.0, %v4054_v18 }
 0x347   :  { %v369_v42 = vpack.c.bf16 %v4157_v41, %v4155_v40  ;;  %v350_v43 = vmul.f32 %v3100_v31, %v340_v28  ;;  %v4196_v8 = vmul.f32 -10000.0, %v362_v0 }
 0x349   :  { %3337 = vmatprep.mubr.msk.bf16.mxu1 %vm147_vm8, %v369_v42  ;;  %v4164_v22 = vadd.f32 %v3101_v39, %v350_v43 }
 0x34b   :  { %v370_v44 = vpack.c.bf16 %v4164_v22, %v4162_v20 }
 0x34d   :  { %3338 = vmatmul.mubr.msk.bf16.vlgmr.msra.gmra.mxu1 %vm147_vm8, %v370_v44 }
 0x40d   :  { %v3339_v45 = vpop.f32.mrf.mxu1 }
 0x40e   :  { %v443_v49 = vadd.f32 %v3339_v45, %v3102_v46 }
 0x40f   :  { %v434_v47 = vpop.f32.mrf.mxu1 }
 0x410   :  { %v435_v52 = vadd.f32 %v3102_v46, %v434_v47 }
 0x411   :  { %v3340_v48 = vpop.f32.mrf.mxu1 }
 0x412   :  { %v446_v50 = vadd.f32 %v3340_v48, %v3102_v46 }
 0x413   :  { %v437_v51 = vpop.f32.mrf.mxu1 }
 0x414   :  { %v4172_v53 = vpack.c.bf16 %v446_v50, %v443_v49  ;;  %v438_v54 = vadd.f32 %v3102_v46, %v437_v51 }
 0x416   :  { %v4174_v55 = vpack.c.bf16 %v438_v54, %v435_v52  ;;  %455 = vrot.lane.b32.xlu0 %v4172_v53, %s3883_s1 }
 0x418   :  { %453 = vrot.lane.b32.xlu1 %v4174_v55, %s3883_s1  ;;  %3345 = vmatprep.mubr.msk.bf16.mxu0 %vm457_vm10, %v4174_v55 }
 0x488   :  { %v456_v56 = vpop.permute.xlu0 %455 }
 0x489   :  { %3541 = vmatprep.subr.msk.bf16.mxu0 %vm457_vm10, %v456_v56  ;;  %v468_v57 = vsel %vm457_vm10, %v456_v56, 0 }
 0x48a   :  { %3342 = vmatpush3.bf16.xpose.msra.mxu0 %v468_v57  ;;  %v454_v58 = vpop.permute.xlu1 %453 }
 0x48b   :  { %3542 = vmatprep.subr.msk.bf16.mxu0 %vm457_vm10, %v454_v58  ;;  %v465_v59 = vsel %vm457_vm10, %v454_v58, 0 }
 0x492   :  { %3344 = vmatpush3.bf16.xpose.msra.mxu0 %v465_v59 }
 0x499   :  { %3346 = vmatmul.mubr.msk.bf16.vlgmr.msra.gmra.mxu0 %vm457_vm10, %v4172_v53 }
 0x559   :  { %v3347_v62 = vpop.f32.mrf.mxu0 }
 0x55a   :  { %v521_v4 = vmul.f32 0.35355338, %v3347_v62 }
 0x55b   :  { %v504_v2 = vpop.f32.mrf.mxu0 }
 0x55c   :  { %v519_v6 = vmul.f32 0.35355338, %v504_v2  ;;  %v525_v18 = vadd.f32 %v521_v4, %v4194_v3 }
 0x55d   :  { %v3348_v7 = vpop.f32.mrf.mxu0 }
 0x55e   :  { %v523_v9 = vadd.f32 %v519_v6, %v4190_v63  ;;  %v522_v10 = vmul.f32 0.35355338, %v3348_v7  ;;  %v533_v13 = vsel %vm147_vm8, %v525_v18, -inf }
 0x55f   :  { %v507_v21 = vpop.f32.mrf.mxu0 }
 0x560   :  { %v520_v11 = vmul.f32 0.35355338, %v507_v21  ;;  %v527_v12 = vsel %vm147_vm8, %v523_v9, -inf  ;;  %v526_v15 = vadd.f32 %v522_v10, %v4199_v16 }
 0x561   :  { %528 = vmax.xlane.f32.xlu0 %v527_v12 }
 0x562   :  { %v524_v25 = vadd.f32 %v520_v11, %v4196_v8  ;;  %v536_v17 = vsel %vm147_vm8, %v526_v15, -inf }
 0x564   :  { %v530_v14 = vsel %vm147_vm8, %v524_v25, -inf }
 0x565   :  { %534 = vmax.xlane.f32.xlu0 %v533_v13  ;;  %531 = vmax.xlane.f32.xlu1 %v530_v14 }
 0x569   :  { %537 = vmax.xlane.f32.xlu0 %v536_v17 }
 0x576   :  { %573 = vrot.lane.b32.xlu1 %v4174_v55, %s3884_s5 }
 0x5ea   :  { %v529_v19 = vpop.xlane.xlu0 %528 }
 0x5eb   :  { %v539_v24 = vsub.f32 %v523_v9, %v529_v19 }
 0x5ed   :  { %v543_v32 = vmul.f32 1.442695, %v539_v24 }
 0x5ee   :  { %v535_v26 = vpop.xlane.xlu0 %534  ;;  %v532_v27 = vpop.xlane.xlu1 %531 }
 0x5ef   :  { %v541_v29 = vsub.f32 %v525_v18, %v535_v26  ;;  %v540_v34 = vsub.f32 %v524_v25, %v532_v27 }
 0x5f1   :  { %v547_v33 = vmul.f32 1.442695, %v541_v29  ;;  %v545_v36 = vmul.f32 1.442695, %v540_v34 }
 0x5f2   :  { %v538_v31 = vpop.xlane.xlu0 %537  ;;  %v574_v45 = vpop.permute.xlu1 %573 }
 0x5f3   :  { %3685 = vpow2.f32 %v547_v33  ;;  %v542_v35 = vsub.f32 %v526_v15, %v538_v31 }
 0x5f4   :  { %3687 = vpow2.f32 %v543_v32 }
 0x5f5   :  { %v549_v37 = vmul.f32 1.442695, %v542_v35 }
 0x5f7   :  { %3689 = vpow2.f32 %v549_v37 }
 0x5f8   :  { %3691 = vpow2.f32 %v545_v36 }
 0x600   :  { %v3686_v23 = vpop.eup %3685 }
 0x601   :  { %v557_v38 = vsel %vm147_vm8, %v3686_v23, 0.0  ;;  %v3688_v39 = vpop.eup %3687 }
 0x602   :  { %558 = vadd.xlane.f32.xlu0 %v557_v38  ;;  %v551_v30 = vsel %vm147_vm8, %v3688_v39, 0.0 }
 0x604   :  { %v3690_v28 = vpop.eup %3689 }
 0x605   :  { %v560_v42 = vsel %vm147_vm8, %v3690_v28, 0.0  ;;  %v3692_v43 = vpop.eup %3691 }
 0x606   :  { %552 = vadd.xlane.f32.xlu0 %v551_v30  ;;  %561 = vadd.xlane.f32.xlu1 %v560_v42  ;;  %v554_v44 = vsel %vm147_vm8, %v3692_v43, 0.0 }
 0x60a   :  { %555 = vadd.xlane.f32.xlu1 %v554_v44 }
 0x61b   :  { %640 = vrot.lane.b32.xlu1 %v4172_v53, %s3885_s24 }
 0x61c   :  { %575 = vrot.lane.b32.xlu0 %v4172_v53, %s3884_s5 }
 0x61f   :  { %634 = vrot.lane.b32.xlu1 %v4174_v55, %s3886_s6 }
 0x620   :  { %638 = vrot.lane.b32.xlu0 %v4174_v55, %s3885_s24 }
 0x624   :  { %636 = vrot.lane.b32.xlu0 %v4172_v53, %s3886_s6 }
 0x68b   :  { %v559_v46 = vpop.xlane.xlu0 %558 }
 0x68f   :  { %v553_v47 = vpop.xlane.xlu0 %552  ;;  %v562_v48 = vpop.xlane.xlu1 %561 }
 0x690   :  { %3693 = vrcp.f32 %v562_v48 }
 0x691   :  { %3695 = vrcp.f32 %v553_v47 }
 0x692   :  { %3697 = vrcp.f32 %v559_v46 }
 0x693   :  { %v576_v49 = vpop.permute.xlu0 %575  ;;  %v556_v50 = vpop.xlane.xlu1 %555 }
 0x694   :  { %3699 = vrcp.f32 %v556_v50  ;;  %3349 = vmatprep.subr.bf16.mxu1 %v576_v49 }
 0x695   :  { %3350 = vmatpush3.bf16.msra.mxu1 %v576_v49 }
 0x696   :  { %3351 = vmatprep.subr.bf16.mxu1 %v574_v45 }
 0x697   :  { %v641_v51 = vpop.permute.xlu1 %640  ;;  %v639_v4 = vpop.permute.xlu0 %638 }
 0x698   :  { %v652_v2 = vsel %vm457_vm10, %v641_v51, 0  ;;  %v649_v6 = vsel %vm457_vm10, %v639_v4, 0 }
 0x699   :  { %3352 = vmatpush3.bf16.msra.mxu1 %v574_v45 }
 0x69a   :  { %3543 = vmatprep.subr.msk.bf16.mxu1 %vm457_vm10, %v641_v51 }
 0x69b   :  { %v635_v1 = vpop.permute.xlu1 %634  ;;  %v637_v7 = vpop.permute.xlu0 %636 }
 0x69d   :  { %v3694_v52 = vpop.eup %3693 }
 0x69e   :  { %v3696_v54 = vpop.eup %3695  ;;  %v570_v58 = vmul.f32 %v3694_v52, %v3690_v28 }
 0x69f   :  { %v3698_v56 = vpop.eup %3697  ;;  %v567_v59 = vmul.f32 %v3696_v54, %v3688_v39 }
 0x6a0   :  { %v569_v61 = vmul.f32 %v3698_v56, %v3686_v23 }
 0x6a1   :  { %v3700_v57 = vpop.eup %3699 }
 0x6a2   :  { %v568_v60 = vmul.f32 %v3700_v57, %v3692_v43  ;;  %v572_v0 = vpack.c.bf16 %v570_v58, %v569_v61 }
 0x6a4   :  { %v571_v62 = vpack.c.bf16 %v568_v60, %v567_v59 }
 0x6a6   :  { %3353 = vmatprep.mubr.msk.bf16.mxu1 %vm147_vm8, %v571_v62 }
 0x6a7   :  { %3354 = vmatmul.mubr.msk.bf16.vlgmr.msra.gmra.mxu1 %vm147_vm8, %v572_v0 }
 0x6a8   :  { %3358 = vmatpush3.bf16.xpose.msra.mxu1 %v652_v2  ;;  %3361 = vmatprep.mubr.msk.bf16.mxu1 %vm457_vm10, %v635_v1 }
 0x6a9   :  { %3544 = vmatprep.subr.msk.bf16.mxu1 %vm457_vm10, %v639_v4 }
 0x6b0   :  { %3360 = vmatpush3.bf16.xpose.msra.mxu1 %v649_v6 }
 0x6b7   :  { %3362 = vmatmul.mubr.msk.bf16.vlgmr.msra.gmra.mxu1 %vm457_vm10, %v637_v7 }
 0x767   :  { %v4232_v9 = vpop.f32.mrf.mxu1 }
 0x769   :  { %v4234_v21 = vpop.f32.mrf.mxu1 }
 0x76b   :  { %v4236_v10 = vpop.f32.mrf.mxu1 }
 0x76d   :  { %v4238_v11 = vpop.f32.mrf.mxu1 }
 0x777   :  { %v3363_v12 = vpop.f32.mrf.mxu1 }
 0x778   :  { %v705_v19 = vmul.f32 0.35355338, %v3363_v12 }
 0x779   :  { %v688_v18 = vpop.f32.mrf.mxu1 }
 0x77a   :  { %v703_v25 = vmul.f32 0.35355338, %v688_v18  ;;  %v709_v34 = vadd.f32 %v705_v19, %v4194_v3 }
 0x77b   :  { %v3364_v13 = vpop.f32.mrf.mxu1 }
 0x77c   :  { %v706_v14 = vmul.f32 0.35355338, %v3364_v13  ;;  %v707_v15 = vadd.f32 %v703_v25, %v4190_v63  ;;  %v717_v31 = vsel %vm147_vm8, %v709_v34, -inf }
 0x77d   :  { %v691_v17 = vpop.f32.mrf.mxu1 }
 0x77e   :  { %v704_v24 = vmul.f32 0.35355338, %v691_v17  ;;  %v711_v26 = vsel %vm147_vm8, %v707_v15, -inf  ;;  %v710_v27 = vadd.f32 %v706_v14, %v4199_v16 }
 0x77f   :  { %712 = vmax.xlane.f32.xlu1 %v711_v26 }
 0x780   :  { %v708_v29 = vadd.f32 %v704_v24, %v4196_v8  ;;  %v720_v32 = vsel %vm147_vm8, %v710_v27, -inf }
 0x782   :  { %v714_v33 = vsel %vm147_vm8, %v708_v29, -inf }
 0x783   :  { %721 = vmax.xlane.f32.xlu1 %v720_v32  ;;  %715 = vmax.xlane.f32.xlu0 %v714_v33 }
 0x787   :  { %718 = vmax.xlane.f32.xlu0 %v717_v31 }
 0x794   :  { %757 = vrot.lane.b32.xlu1 %v4174_v55, %s3887_s25 }
 0x808   :  { %v713_v35 = vpop.xlane.xlu1 %712 }
 0x809   :  { %v723_v39 = vsub.f32 %v707_v15, %v713_v35 }
 0x80b   :  { %v727_v44 = vmul.f32 1.442695, %v723_v39 }
 0x80c   :  { %v722_v36 = vpop.xlane.xlu1 %721  ;;  %v716_v37 = vpop.xlane.xlu0 %715 }
 0x80d   :  { %v726_v23 = vsub.f32 %v710_v27, %v722_v36  ;;  %v724_v38 = vsub.f32 %v708_v29, %v716_v37 }
 0x80f   :  { %v733_v28 = vmul.f32 1.442695, %v726_v23  ;;  %v729_v30 = vmul.f32 1.442695, %v724_v38 }
 0x810   :  { %v719_v42 = vpop.xlane.xlu0 %718  ;;  %v758_v56 = vpop.permute.xlu1 %757 }
 0x811   :  { %3701 = vpow2.f32 %v733_v28  ;;  %v725_v43 = vsub.f32 %v709_v34, %v719_v42 }
 0x812   :  { %3703 = vpow2.f32 %v729_v30 }
 0x813   :  { %v731_v45 = vmul.f32 1.442695, %v725_v43 }
 0x815   :  { %3705 = vpow2.f32 %v731_v45 }
 0x816   :  { %3707 = vpow2.f32 %v727_v44 }
 0x81e   :  { %v3702_v46 = vpop.eup %3701 }
 0x81f   :  { %v744_v47 = vsel %vm147_vm8, %v3702_v46, 0.0  ;;  %v3704_v48 = vpop.eup %3703 }
 0x820   :  { %745 = vadd.xlane.f32.xlu1 %v744_v47  ;;  %v738_v50 = vsel %vm147_vm8, %v3704_v48, 0.0 }
 0x822   :  { %v3706_v49 = vpop.eup %3705 }
 0x823   :  { %v741_v51 = vsel %vm147_vm8, %v3706_v49, 0.0  ;;  %v3708_v52 = vpop.eup %3707 }
 0x824   :  { %739 = vadd.xlane.f32.xlu1 %v738_v50  ;;  %742 = vadd.xlane.f32.xlu0 %v741_v51  ;;  %v735_v54 = vsel %vm147_vm8, %v3708_v52, 0.0 }
 0x828   :  { %736 = vadd.xlane.f32.xlu0 %v735_v54 }
 0x835   :  { %824 = vrot.lane.b32.xlu1 %v4172_v53, %s3888_s26 }
 0x839   :  { %818 = vrot.lane.b32.xlu1 %v4174_v55, %s3889_s2 }
 0x83e   :  { %759 = vrot.lane.b32.xlu0 %v4172_v53, %s3887_s25 }
 0x842   :  { %822 = vrot.lane.b32.xlu0 %v4174_v55, %s3888_s26 }
 0x846   :  { %820 = vrot.lane.b32.xlu0 %v4172_v53, %s3889_s2 }
 0x8a9   :  { %v746_v57 = vpop.xlane.xlu1 %745 }
 0x8ad   :  { %v740_v58 = vpop.xlane.xlu1 %739  ;;  %v743_v59 = vpop.xlane.xlu0 %742 }
 0x8ae   :  { %3709 = vrcp.f32 %v743_v59 }
 0x8af   :  { %3711 = vrcp.f32 %v740_v58 }
 0x8b0   :  { %3713 = vrcp.f32 %v746_v57 }
 0x8b1   :  { %v737_v60 = vpop.xlane.xlu0 %736  ;;  %v825_v62 = vpop.permute.xlu1 %824 }
 0x8b2   :  { %3715 = vrcp.f32 %v737_v60  ;;  %v836_v15 = vsel %vm457_vm10, %v825_v62, 0 }
 0x8b5   :  { %v760_v61 = vpop.permute.xlu0 %759  ;;  %v819_v14 = vpop.permute.xlu1 %818 }
 0x8b6   :  { %3365 = vmatprep.subr.bf16.mxu0 %v760_v61 }
 0x8b7   :  { %3366 = vmatpush3.bf16.msra.mxu0 %v760_v61 }
 0x8b8   :  { %3367 = vmatprep.subr.bf16.mxu0 %v758_v56 }
 0x8b9   :  { %v823_v17 = vpop.permute.xlu0 %822 }
 0x8ba   :  { %v833_v19 = vsel %vm457_vm10, %v823_v17, 0 }
 0x8bb   :  { %3368 = vmatpush3.bf16.msra.mxu0 %v758_v56  ;;  %v3710_v0 = vpop.eup %3709 }
 0x8bc   :  { %3545 = vmatprep.subr.msk.bf16.mxu0 %vm457_vm10, %v825_v62  ;;  %v3712_v1 = vpop.eup %3711  ;;  %v753_v6 = vmul.f32 %v3710_v0, %v3706_v49 }
 0x8bd   :  { %v3714_v2 = vpop.eup %3713  ;;  %v752_v12 = vmul.f32 %v3712_v1, %v3704_v48  ;;  %v821_v24 = vpop.permute.xlu0 %820 }
 0x8be   :  { %v754_v18 = vmul.f32 %v3714_v2, %v3702_v46 }
 0x8bf   :  { %v3716_v4 = vpop.eup %3715 }
 0x8c0   :  { %v751_v7 = vmul.f32 %v3716_v4, %v3708_v52  ;;  %v756_v13 = vpack.c.bf16 %v754_v18, %v753_v6 }
 0x8c2   :  { %v755_v25 = vpack.c.bf16 %v752_v12, %v751_v7 }
 0x8c4   :  { %3369 = vmatprep.mubr.msk.bf16.mxu0 %vm147_vm8, %v755_v25 }
 0x8c5   :  { %3370 = vmatmul.mubr.msk.bf16.vlgmr.msra.gmra.mxu0 %vm147_vm8, %v756_v13 }
 0x8c6   :  { %3374 = vmatpush3.bf16.xpose.msra.mxu0 %v836_v15  ;;  %3377 = vmatprep.mubr.msk.bf16.mxu0 %vm457_vm10, %v819_v14 }
 0x8c7   :  { %3546 = vmatprep.subr.msk.bf16.mxu0 %vm457_vm10, %v823_v17 }
 0x8ce   :  { %3376 = vmatpush3.bf16.xpose.msra.mxu0 %v833_v19 }
 0x8d5   :  { %3378 = vmatmul.mubr.msk.bf16.vlgmr.msra.gmra.mxu0 %vm457_vm10, %v821_v24 }
 0x985   :  { %v4272_v26 = vpop.f32.mrf.mxu0 }
 0x987   :  { %v4274_v27 = vpop.f32.mrf.mxu0 }
 0x989   :  { %v4276_v29 = vpop.f32.mrf.mxu0 }
 0x98a   :  { %v3592_v32 = vpack.i.bf16 %v4276_v29, %v4272_v26 }
 0x98b   :  { %v4280_v33 = vpop.f32.mrf.mxu0 }
 0x98c   :  { %v3587_v34 = vpack.i.bf16 %v4280_v33, %v4274_v27 }
 0x995   :  { %v3379_v31 = vpop.f32.mrf.mxu0 }
 0x996   :  { %v889_v28 = vmul.f32 0.35355338, %v3379_v31 }
 0x997   :  { %v872_v35 = vpop.f32.mrf.mxu0 }
 0x998   :  { %v887_v36 = vmul.f32 0.35355338, %v872_v35  ;;  %v893_v47 = vadd.f32 %v889_v28, %v4194_v3 }
 0x999   :  { %v3380_v37 = vpop.f32.mrf.mxu0 }
 0x99a   :  { %v890_v23 = vmul.f32 0.35355338, %v3380_v37  ;;  %v891_v38 = vadd.f32 %v887_v36, %v4190_v63  ;;  %v901_v48 = vsel %vm147_vm8, %v893_v47, -inf }
 0x99b   :  { %v875_v39 = vpop.f32.mrf.mxu0 }
 0x99c   :  { %v888_v30 = vmul.f32 0.35355338, %v875_v39  ;;  %v895_v42 = vsel %vm147_vm8, %v891_v38, -inf  ;;  %v894_v43 = vadd.f32 %v890_v23, %v4199_v16 }
 0x99d   :  { %896 = vmax.xlane.f32.xlu1 %v895_v42 }
 0x99e   :  { %v892_v44 = vadd.f32 %v888_v30, %v4196_v8  ;;  %v904_v45 = vsel %vm147_vm8, %v894_v43, -inf }
 0x9a0   :  { %v898_v46 = vsel %vm147_vm8, %v892_v44, -inf }
 0x9a1   :  { %905 = vmax.xlane.f32.xlu1 %v904_v45  ;;  %899 = vmax.xlane.f32.xlu0 %v898_v46 }
 0x9a5   :  { %902 = vmax.xlane.f32.xlu0 %v901_v48 }
 0x9b2   :  { %941 = vrot.lane.b32.xlu1 %v4174_v55, %s3890_s27 }
 0xa26   :  { %v897_v49 = vpop.xlane.xlu1 %896 }
 0xa27   :  { %v907_v56 = vsub.f32 %v891_v38, %v897_v49 }
 0xa29   :  { %v911_v61 = vmul.f32 1.442695, %v907_v56 }
 0xa2a   :  { %v906_v50 = vpop.xlane.xlu1 %905  ;;  %v900_v51 = vpop.xlane.xlu0 %899 }
 0xa2b   :  { %v910_v52 = vsub.f32 %v894_v43, %v906_v50  ;;  %v908_v54 = vsub.f32 %v892_v44, %v900_v51 }
 0xa2d   :  { %v917_v57 = vmul.f32 1.442695, %v910_v52  ;;  %v913_v58 = vmul.f32 1.442695, %v908_v54 }
 0xa2e   :  { %v903_v59 = vpop.xlane.xlu0 %902  ;;  %v942_v25 = vpop.permute.xlu1 %941 }
 0xa2f   :  { %3717 = vpow2.f32 %v917_v57  ;;  %v909_v60 = vsub.f32 %v893_v47, %v903_v59 }
 0xa30   :  { %3719 = vpow2.f32 %v913_v58 }
 0xa31   :  { %v915_v62 = vmul.f32 1.442695, %v909_v60 }
 0xa33   :  { %3721 = vpow2.f32 %v915_v62 }
 0xa34   :  { %3723 = vpow2.f32 %v911_v61 }
 0xa3c   :  { %v3718_v0 = vpop.eup %3717 }
 0xa3d   :  { %v928_v1 = vsel %vm147_vm8, %v3718_v0, 0.0  ;;  %v3720_v2 = vpop.eup %3719 }
 0xa3e   :  { %929 = vadd.xlane.f32.xlu1 %v928_v1  ;;  %v922_v6 = vsel %vm147_vm8, %v3720_v2, 0.0 }
 0xa40   :  { %v3722_v4 = vpop.eup %3721 }
 0xa41   :  { %v925_v7 = vsel %vm147_vm8, %v3722_v4, 0.0  ;;  %v3724_v12 = vpop.eup %3723 }
 0xa42   :  { %923 = vadd.xlane.f32.xlu1 %v922_v6  ;;  %926 = vadd.xlane.f32.xlu0 %v925_v7  ;;  %v919_v18 = vsel %vm147_vm8, %v3724_v12, 0.0 }
 0xa46   :  { %920 = vadd.xlane.f32.xlu0 %v919_v18 }
 0xa53   :  { %1008 = vrot.lane.b32.xlu1 %v4172_v53, %s4778_s3 }
 0xa57   :  { %1002 = vrot.lane.b32.xlu1 %v4174_v55, %s4776_s28 }
 0xa5c   :  { %943 = vrot.lane.b32.xlu0 %v4172_v53, %s3890_s27 }
 0xa60   :  { %1006 = vrot.lane.b32.xlu0 %v4174_v55, %s4778_s3 }
 0xa64   :  { %1004 = vrot.lane.b32.xlu0 %v4172_v53, %s4776_s28 }
 0xac7   :  { %v930_v13 = vpop.xlane.xlu1 %929 }
 0xacb   :  { %v924_v14 = vpop.xlane.xlu1 %923  ;;  %v927_v15 = vpop.xlane.xlu0 %926 }
 0xacc   :  { %3725 = vrcp.f32 %v927_v15 }
 0xacd   :  { %3727 = vrcp.f32 %v924_v14 }
 0xace   :  { %3729 = vrcp.f32 %v930_v13 }
 0xacf   :  { %v921_v17 = vpop.xlane.xlu0 %920  ;;  %v1009_v24 = vpop.permute.xlu1 %1008 }
 0xad0   :  { %3731 = vrcp.f32 %v921_v17  ;;  %v1020_v44 = vsel %vm457_vm10, %v1009_v24, 0 }
 0xad3   :  { %v944_v19 = vpop.permute.xlu0 %943  ;;  %v1003_v43 = vpop.permute.xlu1 %1002 }
 0xad4   :  { %3381 = vmatprep.subr.bf16.mxu1 %v944_v19 }
 0xad5   :  { %3382 = vmatpush3.bf16.msra.mxu1 %v944_v19 }
 0xad6   :  { %3383 = vmatprep.subr.bf16.mxu1 %v942_v25 }
 0xad7   :  { %v1007_v45 = vpop.permute.xlu0 %1006 }
 0xad8   :  { %v1017_v46 = vsel %vm457_vm10, %v1007_v45, 0 }
 0xad9   :  { %3384 = vmatpush3.bf16.msra.mxu1 %v942_v25  ;;  %v3726_v31 = vpop.eup %3725 }
 0xada   :  { %3547 = vmatprep.subr.msk.bf16.mxu1 %vm457_vm10, %v1009_v24  ;;  %v3728_v35 = vpop.eup %3727  ;;  %v937_v23 = vmul.f32 %v3726_v31, %v3722_v4 }
 0xadb   :  { %v3730_v36 = vpop.eup %3729  ;;  %v936_v39 = vmul.f32 %v3728_v35, %v3720_v2  ;;  %v1005_v47 = vpop.permute.xlu0 %1004 }
 0xadc   :  { %v938_v28 = vmul.f32 %v3730_v36, %v3718_v0 }
 0xadd   :  { %v3732_v37 = vpop.eup %3731 }
 0xade   :  { %v935_v38 = vmul.f32 %v3732_v37, %v3724_v12  ;;  %v940_v42 = vpack.c.bf16 %v938_v28, %v937_v23 }
 0xae0   :  { %v939_v30 = vpack.c.bf16 %v936_v39, %v935_v38 }
 0xae2   :  { %3385 = vmatprep.mubr.msk.bf16.mxu1 %vm147_vm8, %v939_v30 }
 0xae3   :  { %3386 = vmatmul.mubr.msk.bf16.vlgmr.msra.gmra.mxu1 %vm147_vm8, %v940_v42 }
 0xae4   :  { %3390 = vmatpush3.bf16.xpose.msra.mxu1 %v1020_v44  ;;  %3393 = vmatprep.mubr.msk.bf16.mxu1 %vm457_vm10, %v1003_v43 }
 0xae5   :  { %3548 = vmatprep.subr.msk.bf16.mxu1 %vm457_vm10, %v1007_v45 }
 0xaec   :  { %3392 = vmatpush3.bf16.xpose.msra.mxu1 %v1017_v46 }
 0xaf3   :  { %3394 = vmatmul.mubr.msk.bf16.vlgmr.msra.gmra.mxu1 %vm457_vm10, %v1005_v47 }
 0xba3   :  { %v3387_v48 = vpop.f32.mrf.mxu1 }
 0xba5   :  { %v987_v49 = vpop.f32.mrf.mxu1 }
 0xba7   :  { %v3388_v50 = vpop.f32.mrf.mxu1 }
 0xba8   :  { %v3602_v51 = vpack.i.bf16 %v3388_v50, %v3387_v48 }
 0xba9   :  { %v990_v52 = vpop.f32.mrf.mxu1 }
 0xbaa   :  { %v3597_v54 = vpack.i.bf16 %v990_v52, %v987_v49 }
 0xbb3   :  { %v3395_v56 = vpop.f32.mrf.mxu1 }
 0xbb4   :  { %v1073_v0 = vmul.f32 0.35355338, %v3395_v56 }
 0xbb5   :  { %v1056_v57 = vpop.f32.mrf.mxu1 }
 0xbb6   :  { %v1071_v58 = vmul.f32 0.35355338, %v1056_v57  ;;  %v1077_v18 = vadd.f32 %v1073_v0, %v4194_v3  ;;  %v3649_v57 = vld [vmem:[%s4751_s10 + $0x8] sm:$0xff]  }
 0xbb7   :  { %v3396_v59 = vpop.f32.mrf.mxu1 }
 0xbb8   :  { %v1074_v60 = vmul.f32 0.35355338, %v3396_v59  ;;  %v1075_v61 = vadd.f32 %v1071_v58, %v4190_v63  ;;  %v1085_v25 = vsel %vm147_vm8, %v1077_v18, -inf  ;;  %v3650_v58 = vld [vmem:[%s4751_s10] sm:$0xff]  }
 0xbb9   :  { %v1059_v62 = vpop.f32.mrf.mxu1 }
 0xbba   :  { %v1072_v1 = vmul.f32 0.35355338, %v1059_v62  ;;  %v1079_v2 = vsel %vm147_vm8, %v1075_v61, -inf  ;;  %v1078_v4 = vadd.f32 %v1074_v60, %v4199_v16 }
 0xbbb   :  { %1080 = vmax.xlane.f32.xlu1 %v1079_v2 }
 0xbbc   :  { %v1076_v6 = vadd.f32 %v1072_v1, %v4196_v8  ;;  %v1088_v7 = vsel %vm147_vm8, %v1078_v4, -inf }
 0xbbe   :  { %v1082_v12 = vsel %vm147_vm8, %v1076_v6, -inf }
 0xbbf   :  { %1089 = vmax.xlane.f32.xlu1 %v1088_v7  ;;  %1083 = vmax.xlane.f32.xlu0 %v1082_v12 }
 0xbc3   :  { %1086 = vmax.xlane.f32.xlu0 %v1085_v25 }
 0xc44   :  { %v1081_v13 = vpop.xlane.xlu1 %1080 }
 0xc45   :  { %v1091_v24 = vsub.f32 %v1075_v61, %v1081_v13 }
 0xc47   :  { %v1095_v23 = vmul.f32 1.442695, %v1091_v24 }
 0xc48   :  { %v1090_v14 = vpop.xlane.xlu1 %1089  ;;  %v1084_v15 = vpop.xlane.xlu0 %1083 }
 0xc49   :  { %v1094_v17 = vsub.f32 %v1078_v4, %v1090_v14  ;;  %v1092_v19 = vsub.f32 %v1076_v6, %v1084_v15 }
 0xc4b   :  { %v1101_v31 = vmul.f32 1.442695, %v1094_v17  ;;  %v1097_v35 = vmul.f32 1.442695, %v1092_v19 }
 0xc4c   :  { %v1087_v36 = vpop.xlane.xlu0 %1086 }
 0xc4d   :  { %3733 = vpow2.f32 %v1101_v31  ;;  %v1093_v37 = vsub.f32 %v1077_v18, %v1087_v36 }
 0xc4e   :  { %3735 = vpow2.f32 %v1097_v35 }
 0xc4f   :  { %v1099_v38 = vmul.f32 1.442695, %v1093_v37 }
 0xc51   :  { %3737 = vpow2.f32 %v1099_v38 }
 0xc52   :  { %3739 = vpow2.f32 %v1095_v23 }
 0xc5a   :  { %v3734_v39 = vpop.eup %3733 }
 0xc5b   :  { %v1112_v28 = vsel %vm147_vm8, %v3734_v39, 0.0  ;;  %v3736_v30 = vpop.eup %3735 }
 0xc5c   :  { %1113 = vadd.xlane.f32.xlu1 %v1112_v28  ;;  %v1106_v43 = vsel %vm147_vm8, %v3736_v30, 0.0 }
 0xc5e   :  { %v3738_v42 = vpop.eup %3737 }
 0xc5f   :  { %v1109_v44 = vsel %vm147_vm8, %v3738_v42, 0.0  ;;  %v3740_v45 = vpop.eup %3739 }
 0xc60   :  { %1107 = vadd.xlane.f32.xlu1 %v1106_v43  ;;  %1110 = vadd.xlane.f32.xlu0 %v1109_v44  ;;  %v1103_v46 = vsel %vm147_vm8, %v3740_v45, 0.0 }
 0xc64   :  { %1104 = vadd.xlane.f32.xlu0 %v1103_v46 }
 0xc71   :  { %1125 = vrot.lane.b32.xlu1 %v4174_v55, %s4774_s29 }
 0xc75   :  { %3588 = vrot.lane.b32.xlu1 %v3587_v34, %s4770_s30 }
 0xc79   :  { %3598 = vrot.lane.b32.xlu1 %v3597_v54, %s4768_s4 }
 0xc7a   :  { %1127 = vrot.lane.b32.xlu0 %v4172_v53, %s4774_s29 }
 0xc7e   :  { %3593 = vrot.lane.b32.xlu0 %v3592_v32, %s4770_s30  ;;  %s4772_s30 = smov 24  }
 0xc82   :  { %3603 = vrot.lane.b32.xlu0 %v3602_v51, %s4768_s4 }
 0xce5   :  { %v1114_v55 = vpop.xlane.xlu1 %1113 }
 0xce9   :  { %v1108_v47 = vpop.xlane.xlu1 %1107  ;;  %v1111_v48 = vpop.xlane.xlu0 %1110 }
 0xcea   :  { %3741 = vrcp.f32 %v1111_v48  ;;  %v3123_v48 = vld [vmem:[%s4752_s11] ss:$0 sm:$0xff] }
 0xceb   :  { %3743 = vrcp.f32 %v1108_v47 }
 0xcec   :  { %3745 = vrcp.f32 %v1114_v55 }
 0xced   :  { %v1105_v27 = vpop.xlane.xlu0 %1104  ;;  %v1126_v34 = vpop.permute.xlu1 %1125 }
 0xcee   :  { %3747 = vrcp.f32 %v1105_v27 }
 0xcf1   :  { %v1128_v33 = vpop.permute.xlu0 %1127  ;;  %v3589_v4 = vpop.permute.xlu1 %3588 }
 0xcf2   :  { %3397 = vmatprep.subr.bf16.mxu0 %v1128_v33  ;;  %v3591_v12 = vunpack.i.h.bf16 %v3589_v4  ;;  %v3590_v18 = vunpack.i.l.bf16 %v3589_v4 }
 0xcf3   :  { %3398 = vmatpush3.bf16.msra.mxu0 %v1128_v33 }
 0xcf4   :  { %3399 = vmatprep.subr.bf16.mxu0 %v1126_v34  ;;  %v1235_v36 = vsel %vm457_vm10, %v4238_v11, %v3591_v12  ;;  %v1234_v37 = vsel %vm457_vm10, %v4234_v21, %v3590_v18 }
 0xcf5   :  { %v3594_v2 = vpop.permute.xlu0 %3593  ;;  %v3599_v7 = vpop.permute.xlu1 %3598 }
 0xcf6   :  { %v3596_v25 = vunpack.i.h.bf16 %v3594_v2  ;;  %v3595_v13 = vunpack.i.l.bf16 %v3594_v2  ;;  %v3601_v17 = vunpack.i.h.bf16 %v3599_v7  ;;  %v3600_v19 = vunpack.i.l.bf16 %v3599_v7 }
 0xcf7   :  { %3400 = vmatpush3.bf16.msra.mxu0 %v1126_v34  ;;  %v3742_v53 = vpop.eup %3741 }
 0xcf8   :  { %v3744_v49 = vpop.eup %3743  ;;  %v1121_v32 = vmul.f32 %v3742_v53, %v3738_v42  ;;  %3405 = vmatprep.subr.bf16.mxu0 %v3649_v57  ;;  %v1237_v23 = vsel %vm457_vm10, %v4236_v10, %v3596_v25  ;;  %v1236_v38 = vsel %vm457_vm10, %v4232_v9, %v3595_v13  ;;  %v1239_v44 = vsel %vm1238_vm11, %v1234_v37, %v3600_v19  ;;  %v3652_v19 = vld [vmem:[%s4755_s14] sm:$0xff]  }
 0xcf9   :  { %v3746_v26 = vpop.eup %3745  ;;  %v1120_v51 = vmul.f32 %v3744_v49, %v3736_v30  ;;  %v3604_v6 = vpop.permute.xlu0 %3603  ;;  %v1240_v11 = vsel %vm1238_vm11, %v1235_v36, %v3601_v17  ;;  %v3651_v17 = vld [vmem:[%s4755_s14 + $0x8] sm:$0xff]  }
 0xcfa   :  { %v1122_v52 = vmul.f32 %v3746_v26, %v3734_v39  ;;  %v3606_v14 = vunpack.i.h.bf16 %v3604_v6  ;;  %v3605_v15 = vunpack.i.l.bf16 %v3604_v6  ;;  %3413 = vmatprep.subr.bf16.mxu1 %v3651_v17 }
 0xcfb   :  { %v3748_v29 = vpop.eup %3747  ;;  %3414 = vmatpush3.bf16.msra.mxu1 %v3651_v17 }
 0xcfc   :  { %v1119_v50 = vmul.f32 %v3748_v29, %v3740_v45  ;;  %v1124_v56 = vpack.c.bf16 %v1122_v52, %v1121_v32  ;;  %v1241_v28 = vsel %vm1238_vm11, %v1236_v38, %v3605_v15  ;;  %v1242_v30 = vsel %vm1238_vm11, %v1237_v23, %v3606_v14  ;;  %3415 = vmatprep.subr.bf16.mxu1 %v3652_v19 }
 0xcfe   :  { %v1123_v54 = vpack.c.bf16 %v1120_v51, %v1119_v50 }
 0xcff   :  { %3416 = vmatpush3.bf16.msra.mxu1 %v3652_v19 }
 0xd00   :  { %3401 = vmatprep.mubr.msk.bf16.mxu0 %vm147_vm8, %v1123_v54 }
 0xd01   :  { %3402 = vmatmul.mubr.msk.bf16.vlgmr.msra.gmra.mxu0 %vm147_vm8, %v1124_v56 }
 0xd02   :  { %3406 = vmatpush3.bf16.msra.mxu0 %v3649_v57 }
 0xd03   :  { %3407 = vmatprep.subr.bf16.mxu0 %v3650_v58 }
 0xd06   :  { %3408 = vmatpush3.bf16.msra.mxu0 %v3650_v58 }
 0xdc1   :  { %v3403_v59 = vpop.f32.mrf.mxu0 }
 0xdc3   :  { %v1171_v60 = vpop.f32.mrf.mxu0 }
 0xdc5   :  { %v3404_v61 = vpop.f32.mrf.mxu0 }
 0xdc6   :  { %v3612_v62 = vpack.i.bf16 %v3404_v61, %v3403_v59 }
 0xdc7   :  { %v1174_v0 = vpop.f32.mrf.mxu0 }
 0xdc8   :  { %v3607_v1 = vpack.i.bf16 %v1174_v0, %v1171_v60  ;;  %3613 = vrot.lane.b32.xlu0 %v3612_v62, %s4772_s30 }
 0xdca   :  { %3608 = vrot.lane.b32.xlu1 %v3607_v1, %s4772_s30  ;;  %s4799_s30 = smov 24  }
 0xe3a   :  { %v3614_v24 = vpop.permute.xlu0 %3613 }
 0xe3b   :  { %v3616_v31 = vunpack.i.h.bf16 %v3614_v24  ;;  %v3615_v35 = vunpack.i.l.bf16 %v3614_v24 }
 0xe3c   :  { %v3609_v39 = vpop.permute.xlu1 %3608 }
 0xe3d   :  { %v3611_v42 = vunpack.i.h.bf16 %v3609_v39  ;;  %v3610_v43 = vunpack.i.l.bf16 %v3609_v39  ;;  %v1246_v45 = vsel %vm1243_vm12, %v1241_v28, %v3615_v35  ;;  %v1247_v21 = vsel %vm1243_vm12, %v1242_v30, %v3616_v31 }
 0xe3e   :  { %v1249_v55 = vpack.c.bf16 %v1247_v21, %v1246_v45  ;;  %v3128_v45 = vld [vmem:[%s4753_s12] ss:$0 sm:$0xff] }
 0xe3f   :  { %v1245_v10 = vsel %vm1243_vm12, %v1240_v11, %v3611_v42  ;;  %v1244_v46 = vsel %vm1243_vm12, %v1239_v44, %v3610_v43 }
 0xe40   :  { %v1248_v9 = vpack.c.bf16 %v1245_v10, %v1244_v46 }
 0xe42   :  { %3409 = vmatprep.mubr.msk.bf16.mxu0 %vm147_vm8, %v1248_v9  ;;  %v3129_v9 = vld [vmem:[%s4754_s13] ss:$0 sm:$0xff] }
 0xe43   :  { %3410 = vmatmul.mubr.msk.bf16.vlgmr.msra.gmra.mxu0 %vm147_vm8, %v1249_v55 }
 0xf03   :  { %v3411_v47 = vpop.f32.mrf.mxu0 }
 0xf04   :  { %v1322_v29 = vadd.f32 %v3411_v47, %v3123_v48 }
 0xf05   :  { %v1313_v27 = vpop.f32.mrf.mxu0 }
 0xf06   :  { %v1314_v33 = vadd.f32 %v3123_v48, %v1313_v27  ;;  %v1330_v57 = vadd.f32 %v1322_v29, %v4162_v20 }
 0xf07   :  { %v3412_v34 = vpop.f32.mrf.mxu0 }
 0xf08   :  { %v1325_v53 = vadd.f32 %v3412_v34, %v3123_v48  ;;  %v1328_v49 = vadd.f32 %v1314_v33, %v4155_v40  ;;  %v1340_v40 = vsel %vm147_vm8, %v1330_v57, 0.0 }
 0xf09   :  { %v1316_v26 = vpop.f32.mrf.mxu0 }
 0xf0a   :  { %v1317_v32 = vadd.f32 %v3123_v48, %v1316_v26  ;;  %v1334_v50 = vsel %vm147_vm8, %v1328_v49, 0.0  ;;  %v1331_v51 = vadd.f32 %v1325_v53, %v4164_v22 }
 0xf0b   :  { %1335 = vadd.xlane.f32.xlu1 %v1334_v50 }
 0xf0c   :  { %v1329_v52 = vadd.f32 %v1317_v32, %v4157_v41  ;;  %v1343_v56 = vsel %vm147_vm8, %v1331_v51, 0.0 }
 0xf0e   :  { %v1337_v54 = vsel %vm147_vm8, %v1329_v52, 0.0 }
 0xf0f   :  { %1338 = vadd.xlane.f32.xlu0 %v1337_v54  ;;  %1344 = vadd.xlane.f32.xlu1 %v1343_v56  ;;  %v3654_v54 = vld [vmem:[%s4757_s16 + $0x10] sm:$0xff]   ;;  %v3655_v56 = vld [vmem:[%s4757_s16 + $0x8] sm:$0xff]  }
 0xf13   :  { %1341 = vadd.xlane.f32.xlu0 %v1340_v40  ;;  %v3130_v40 = vld [vmem:[%s4756_s15] ss:$0 sm:$0xff] }
 0xf94   :  { %v1336_v58 = vpop.xlane.xlu1 %1335 }
 0xf95   :  { %v1346_v59 = vmul.f32 0.03125, %v1336_v58 }
 0xf97   :  { %v1350_v60 = vsub.f32 %v1328_v49, %v1346_v59 }
 0xf98   :  { %v1339_v61 = vpop.xlane.xlu0 %1338  ;;  %v1345_v62 = vpop.xlane.xlu1 %1344 }
 0xf99   :  { %v1347_v22 = vmul.f32 0.03125, %v1339_v61  ;;  %v1349_v0 = vmul.f32 0.03125, %v1345_v62  ;;  %v1354_v1 = vmul.f32 %v1350_v60, %v1350_v60 }
 0xf9b   :  { %v1351_v41 = vsub.f32 %v1329_v52, %v1347_v22  ;;  %v1353_v2 = vsub.f32 %v1331_v51, %v1349_v0  ;;  %v1358_v4 = vsel %vm147_vm8, %v1354_v1, 0.0  ;;  %v3653_v52 = vld [vmem:[%s4757_s16 + $0x18] sm:$0xff]  }
 0xf9c   :  { %v1342_v6 = vpop.xlane.xlu0 %1341  ;;  %1359 = vadd.xlane.f32.xlu0 %v1358_v4  ;;  %3421 = vmatprep.subr.bf16.mxu0 %v3653_v52 }
 0xf9d   :  { %v1348_v20 = vmul.f32 0.03125, %v1342_v6  ;;  %v1355_v7 = vmul.f32 %v1351_v41, %v1351_v41  ;;  %v1357_v25 = vmul.f32 %v1353_v2, %v1353_v2  ;;  %3422 = vmatpush3.bf16.msra.mxu0 %v3653_v52 }
 0xf9e   :  { %3423 = vmatprep.subr.bf16.mxu0 %v3654_v54 }
 0xf9f   :  { %v1352_v12 = vsub.f32 %v1330_v57, %v1348_v20  ;;  %v1361_v18 = vsel %vm147_vm8, %v1355_v7, 0.0  ;;  %v1367_v15 = vsel %vm147_vm8, %v1357_v25, 0.0  ;;  %v3656_v57 = vld [vmem:[%s4757_s16] sm:$0xff]  }
 0xfa0   :  { %1362 = vadd.xlane.f32.xlu1 %v1361_v18 }
 0xfa1   :  { %v1356_v13 = vmul.f32 %v1352_v12, %v1352_v12  ;;  %3424 = vmatpush3.bf16.msra.mxu0 %v3654_v54 }
 0xfa2   :  { %3425 = vmatprep.subr.bf16.mxu0 %v3655_v56 }
 0xfa3   :  { %v1364_v14 = vsel %vm147_vm8, %v1356_v13, 0.0 }
 0xfa4   :  { %1365 = vadd.xlane.f32.xlu0 %v1364_v14  ;;  %1368 = vadd.xlane.f32.xlu1 %v1367_v15 }
 0xfa5   :  { %3426 = vmatpush3.bf16.msra.mxu0 %v3655_v56 }
 0xfa6   :  { %3427 = vmatprep.subr.bf16.mxu0 %v3656_v57 }
 0xfa9   :  { %3428 = vmatpush3.bf16.msra.mxu0 %v3656_v57 }
0x1025   :  { %v1360_v24 = vpop.xlane.xlu0 %1359 }
0x1026   :  { %v1370_v31 = vmul.f32 0.03125, %v1360_v24 }
0x1028   :  { %v1374_v35 = vadd.f32 1e-05, %v1370_v31 }
0x1029   :  { %v1363_v36 = vpop.xlane.xlu1 %1362 }
0x102a   :  { %3749 = vrsqrt.f32 %v1374_v35  ;;  %v1371_v37 = vmul.f32 0.03125, %v1363_v36 }
0x102c   :  { %v1375_v23 = vadd.f32 1e-05, %v1371_v37 }
0x102d   :  { %v1366_v38 = vpop.xlane.xlu0 %1365  ;;  %v1369_v39 = vpop.xlane.xlu1 %1368 }
0x102e   :  { %3751 = vrsqrt.f32 %v1375_v23  ;;  %v1372_v28 = vmul.f32 0.03125, %v1366_v38  ;;  %v1373_v30 = vmul.f32 0.03125, %v1369_v39 }
0x1030   :  { %v1376_v42 = vadd.f32 1e-05, %v1372_v28  ;;  %v1377_v43 = vadd.f32 1e-05, %v1373_v30 }
0x1032   :  { %3753 = vrsqrt.f32 %v1376_v42 }
0x1033   :  { %3755 = vrsqrt.f32 %v1377_v43 }
0x1037   :  { %v3750_v44 = vpop.eup %3749 }
0x1038   :  { %v1382_v11 = vmul.f32 %v3750_v44, %v1350_v60 }
0x103a   :  { %v1392_v46 = vmul.f32 %v3128_v45, %v1382_v11 }
0x103b   :  { %v3752_v21 = vpop.eup %3751 }
0x103c   :  { %v1383_v10 = vmul.f32 %v3752_v21, %v1351_v41  ;;  %v4397_v33 = vadd.f32 %v3129_v9, %v1392_v46 }
0x103e   :  { %v1393_v55 = vmul.f32 %v3128_v45, %v1383_v10 }
0x103f   :  { %v3754_v47 = vpop.eup %3753 }
0x1040   :  { %v3756_v48 = vpop.eup %3755  ;;  %v1384_v27 = vmul.f32 %v3754_v47, %v1352_v12  ;;  %v4399_v34 = vadd.f32 %v3129_v9, %v1393_v55 }
0x1041   :  { %v1385_v53 = vmul.f32 %v3756_v48, %v1353_v2 }
0x1042   :  { %v1406_v49 = vpack.c.bf16 %v4399_v34, %v4397_v33  ;;  %v1394_v26 = vmul.f32 %v3128_v45, %v1384_v27 }
0x1043   :  { %v1395_v29 = vmul.f32 %v3128_v45, %v1385_v53 }
0x1044   :  { %3417 = vmatprep.mubr.msk.bf16.mxu1 %vm147_vm8, %v1406_v49  ;;  %v4404_v32 = vadd.f32 %v3129_v9, %v1394_v26  ;;  %v3135_v26 = vld [vmem:[%s4758_s17] ss:$0 sm:$0xff] }
0x1045   :  { %v4406_v50 = vadd.f32 %v3129_v9, %v1395_v29 }
0x1047   :  { %v1407_v51 = vpack.c.bf16 %v4406_v50, %v4404_v32 }
0x1049   :  { %3418 = vmatmul.mubr.msk.bf16.vlgmr.msra.gmra.mxu1 %vm147_vm8, %v1407_v51 }
0x1109   :  { %v3419_v58 = vpop.f32.mrf.mxu1 }
0x110a   :  { %v1480_v59 = vadd.f32 %v3419_v58, %v3130_v40 }
0x110b   :  { %v1471_v60 = vpop.f32.mrf.mxu1 }
0x110c   :  { %v1492_v61 = vmul.f32 0.044715, %v1480_v59  ;;  %v1472_v62 = vadd.f32 %v3130_v40, %v1471_v60  ;;  %v1488_v46 = vmul.f32 0.5, %v1480_v59 }
0x110d   :  { %v3420_v22 = vpop.f32.mrf.mxu1 }
0x110e   :  { %v1496_v0 = vmul.f32 %v1492_v61, %v1480_v59  ;;  %v1490_v1 = vmul.f32 0.044715, %v1472_v62  ;;  %v1483_v41 = vadd.f32 %v3420_v22, %v3130_v40  ;;  %v1486_v45 = vmul.f32 0.5, %v1472_v62 }
0x110f   :  { %v1474_v2 = vpop.f32.mrf.mxu1 }
0x1110   :  { %v1500_v4 = vmul.f32 %v1496_v0, %v1480_v59  ;;  %v1494_v6 = vmul.f32 %v1490_v1, %v1472_v62  ;;  %v1493_v20 = vmul.f32 0.044715, %v1483_v41  ;;  %v1475_v7 = vadd.f32 %v3130_v40, %v1474_v2 }
0x1111   :  { %v1489_v44 = vmul.f32 0.5, %v1483_v41 }
0x1112   :  { %v1504_v12 = vadd.f32 %v1500_v4, %v1480_v59  ;;  %v1498_v18 = vmul.f32 %v1494_v6, %v1472_v62  ;;  %v1497_v25 = vmul.f32 %v1493_v20, %v1483_v41  ;;  %v1491_v13 = vmul.f32 0.044715, %v1475_v7 }
0x1113   :  { %v1487_v21 = vmul.f32 0.5, %v1475_v7 }
0x1114   :  { %v1508_v14 = vmul.f32 0.7978846, %v1504_v12  ;;  %v1502_v15 = vadd.f32 %v1498_v18, %v1472_v62  ;;  %v1501_v17 = vmul.f32 %v1497_v25, %v1483_v41  ;;  %v1495_v19 = vmul.f32 %v1491_v13, %v1475_v7 }
0x1116   :  { %v1506_v24 = vmul.f32 0.7978846, %v1502_v15  ;;  %v1505_v31 = vadd.f32 %v1501_v17, %v1483_v41  ;;  %v1499_v35 = vmul.f32 %v1495_v19, %v1475_v7  ;;  %3757 = vtanh.f32 %v1508_v14 }
0x1118   :  { %v1509_v36 = vmul.f32 0.7978846, %v1505_v31  ;;  %3759 = vtanh.f32 %v1506_v24  ;;  %v1503_v37 = vadd.f32 %v1499_v35, %v1475_v7  ;;  %v3657_v35 = vld [vmem:[%s4749_s8 + $0x18] sm:$0xff]  }
0x1119   :  { %3433 = vmatprep.subr.bf16.mxu1 %v3657_v35 }
0x111a   :  { %3761 = vtanh.f32 %v1509_v36  ;;  %v1507_v23 = vmul.f32 0.7978846, %v1503_v37  ;;  %v3658_v36 = vld [vmem:[%s4749_s8 + $0x10] sm:$0xff]   ;;  %3434 = vmatpush3.bf16.msra.mxu1 %v3657_v35 }
0x111b   :  { %3435 = vmatprep.subr.bf16.mxu1 %v3658_v36 }
0x111c   :  { %3763 = vtanh.f32 %v1507_v23 }
0x111e   :  { %3436 = vmatpush3.bf16.msra.mxu1 %v3658_v36 }
0x1123   :  { %v3758_v38 = vpop.eup %3757 }
0x1124   :  { %v1516_v11 = vadd.f32 1.0, %v3758_v38 }
0x1125   :  { %v3760_v39 = vpop.eup %3759 }
0x1126   :  { %v1514_v42 = vadd.f32 1.0, %v3760_v39  ;;  %v1520_v48 = vmul.f32 %v1516_v11, %v1488_v46 }
0x1127   :  { %v3762_v28 = vpop.eup %3761 }
0x1128   :  { %v1517_v30 = vadd.f32 1.0, %v3762_v28  ;;  %v1518_v55 = vmul.f32 %v1514_v42, %v1486_v45 }
0x1129   :  { %v3764_v43 = vpop.eup %3763 }
0x112a   :  { %v1515_v10 = vadd.f32 1.0, %v3764_v43  ;;  %v1521_v9 = vmul.f32 %v1517_v30, %v1489_v44 }
0x112c   :  { %v1519_v47 = vmul.f32 %v1515_v10, %v1487_v21  ;;  %v1523_v53 = vpack.c.bf16 %v1521_v9, %v1520_v48  ;;  %v3142_v9 = vld [vmem:[%s4759_s18] ss:$0 sm:$0xff] }
0x112e   :  { %v1522_v27 = vpack.c.bf16 %v1519_v47, %v1518_v55 }
0x1130   :  { %3429 = vmatprep.mubr.msk.bf16.mxu0 %vm1563_vm13, %v1522_v27 }
0x1131   :  { %3430 = vmatmul.mubr.msk.bf16.vlgmr.msra.gmra.mxu0 %vm1563_vm13, %v1523_v53 }
0x11f1   :  { %v3431_v49 = vpop.f32.mrf.mxu0 }
0x11f2   :  { %v1613_v51 = vadd.f32 %v3431_v49, %v3135_v26  ;;  %v3143_v49 = vld [vmem:[%s4760_s19] ss:$0 sm:$0xff] }
0x11f3   :  { %v1604_v29 = vpop.f32.mrf.mxu0 }
0x11f4   :  { %v1605_v52 = vadd.f32 %v3135_v26, %v1604_v29  ;;  %v1621_v60 = vadd.f32 %v1613_v51, %v4404_v32 }
0x11f5   :  { %v3432_v54 = vpop.f32.mrf.mxu0 }
0x11f6   :  { %v1619_v56 = vadd.f32 %v1605_v52, %v4397_v33  ;;  %v1616_v40 = vadd.f32 %v3432_v54, %v3135_v26  ;;  %v1631_v22 = vsel %vm147_vm8, %v1621_v60, 0.0 }
0x11f7   :  { %v1607_v57 = vpop.f32.mrf.mxu0 }
0x11f8   :  { %v1608_v58 = vadd.f32 %v3135_v26, %v1607_v57  ;;  %v1625_v59 = vsel %vm147_vm8, %v1619_v56, 0.0  ;;  %v1622_v0 = vadd.f32 %v1616_v40, %v4406_v50 }
0x11f9   :  { %1626 = vadd.xlane.f32.xlu0 %v1625_v59 }
0x11fa   :  { %v1620_v61 = vadd.f32 %v1608_v58, %v4399_v34  ;;  %v1634_v33 = vsel %vm147_vm8, %v1622_v0, 0.0 }
0x11fc   :  { %v1628_v62 = vsel %vm147_vm8, %v1620_v61, 0.0 }
0x11fd   :  { %1629 = vadd.xlane.f32.xlu1 %v1628_v62  ;;  %1632 = vadd.xlane.f32.xlu0 %v1631_v22  ;;  %v3149_v62 = vld [vmem:[%s4750_s9 + $0x1] ss:$0 sm:$0xff]  ;;  %s4794_s9 = smov 72  }
0x1201   :  { %1635 = vadd.xlane.f32.xlu1 %v1634_v33 }
0x1282   :  { %v1627_v1 = vpop.xlane.xlu0 %1626 }
0x1283   :  { %v1637_v41 = vmul.f32 0.03125, %v1627_v1 }
0x1285   :  { %v1641_v2 = vsub.f32 %v1619_v56, %v1637_v41 }
0x1286   :  { %v1630_v4 = vpop.xlane.xlu1 %1629  ;;  %v1633_v6 = vpop.xlane.xlu0 %1632 }
0x1287   :  { %v1638_v32 = vmul.f32 0.03125, %v1630_v4  ;;  %v1639_v20 = vmul.f32 0.03125, %v1633_v6  ;;  %v1645_v7 = vmul.f32 %v1641_v2, %v1641_v2 }
0x1289   :  { %v1642_v34 = vsub.f32 %v1620_v61, %v1638_v32  ;;  %v1643_v12 = vsub.f32 %v1621_v60, %v1639_v20  ;;  %v1649_v18 = vsel %vm147_vm8, %v1645_v7, 0.0 }
0x128a   :  { %v1636_v25 = vpop.xlane.xlu1 %1635  ;;  %1650 = vadd.xlane.f32.xlu0 %v1649_v18 }
0x128b   :  { %v1640_v50 = vmul.f32 0.03125, %v1636_v25  ;;  %v1646_v13 = vmul.f32 %v1642_v34, %v1642_v34  ;;  %v1647_v14 = vmul.f32 %v1643_v12, %v1643_v12 }
0x128d   :  { %v1644_v15 = vsub.f32 %v1622_v0, %v1640_v50  ;;  %v1652_v17 = vsel %vm147_vm8, %v1646_v13, 0.0  ;;  %v1655_v19 = vsel %vm147_vm8, %v1647_v14, 0.0 }
0x128e   :  { %1653 = vadd.xlane.f32.xlu1 %v1652_v17  ;;  %1656 = vadd.xlane.f32.xlu0 %v1655_v19 }
0x128f   :  { %v1648_v24 = vmul.f32 %v1644_v15, %v1644_v15 }
0x1291   :  { %v1658_v31 = vsel %vm147_vm8, %v1648_v24, 0.0 }
0x1292   :  { %1659 = vadd.xlane.f32.xlu1 %v1658_v31 }
0x1313   :  { %v1651_v37 = vpop.xlane.xlu0 %1650 }
0x1314   :  { %v1661_v23 = vmul.f32 0.03125, %v1651_v37 }
0x1316   :  { %v1665_v38 = vadd.f32 1e-05, %v1661_v23 }
0x1317   :  { %v1654_v39 = vpop.xlane.xlu1 %1653  ;;  %v1657_v28 = vpop.xlane.xlu0 %1656 }
0x1318   :  { %3765 = vrsqrt.f32 %v1665_v38  ;;  %v1662_v30 = vmul.f32 0.03125, %v1654_v39  ;;  %v1663_v42 = vmul.f32 0.03125, %v1657_v28 }
0x131a   :  { %v1666_v43 = vadd.f32 1e-05, %v1662_v30  ;;  %v1667_v44 = vadd.f32 1e-05, %v1663_v42 }
0x131b   :  { %v1660_v11 = vpop.xlane.xlu1 %1659 }
0x131c   :  { %3767 = vrsqrt.f32 %v1666_v43  ;;  %v1664_v45 = vmul.f32 0.03125, %v1660_v11 }
0x131d   :  { %3769 = vrsqrt.f32 %v1667_v44 }
0x131e   :  { %v1668_v21 = vadd.f32 1e-05, %v1664_v45 }
0x1320   :  { %3771 = vrsqrt.f32 %v1668_v21 }
0x1325   :  { %v3766_v10 = vpop.eup %3765 }
0x1326   :  { %v1673_v46 = vmul.f32 %v3766_v10, %v1641_v2 }
0x1328   :  { %v1683_v27 = vmul.f32 %v3142_v9, %v1673_v46 }
0x1329   :  { %v3768_v55 = vpop.eup %3767 }
0x132a   :  { %v3770_v47 = vpop.eup %3769  ;;  %v1674_v48 = vmul.f32 %v3768_v55, %v1642_v34  ;;  %v4455_v52 = vadd.f32 %v3143_v49, %v1683_v27 }
0x132b   :  { %v1675_v53 = vmul.f32 %v3770_v47, %v1643_v12 }
0x132c   :  { %v1684_v26 = vmul.f32 %v3142_v9, %v1674_v48 }
0x132d   :  { %v3772_v29 = vpop.eup %3771  ;;  %v1685_v56 = vmul.f32 %v3142_v9, %v1675_v53 }
0x132e   :  { %v1676_v51 = vmul.f32 %v3772_v29, %v1644_v15  ;;  %v4457_v54 = vadd.f32 %v3143_v49, %v1684_v26 }
0x132f   :  { %v4462_v58 = vadd.f32 %v3143_v49, %v1685_v56 }
0x1330   :  { %v1697_v57 = vpack.c.bf16 %v4457_v54, %v4455_v52  ;;  %v1686_v40 = vmul.f32 %v3142_v9, %v1676_v51 }
0x1332   :  { %3437 = vmatprep.mubr.msk.bf16.mxu1 %vm147_vm8, %v1697_v57  ;;  %v4464_v59 = vadd.f32 %v3143_v49, %v1686_v40 }
0x1334   :  { %v1698_v60 = vpack.c.bf16 %v4464_v59, %v4462_v58 }
0x1336   :  { %3438 = vmatmul.mubr.msk.bf16.vlgmr.msra.gmra.mxu1 %vm147_vm8, %v1698_v60 }
0x13f6   :  { %v3439_v61 = vpop.f32.mrf.mxu1 }
0x13f7   :  { %v1773_v33 = vadd.f32 %v3439_v61, %v3149_v62 }
0x13f8   :  { %v1764_v22 = vpop.f32.mrf.mxu1 }
0x13f9   :  { %v1765_v2 = vadd.f32 %v3149_v62, %v1764_v22 }
0x13fa   :  { %v3440_v0 = vpop.f32.mrf.mxu1 }
0x13fb   :  { %v1776_v1 = vadd.f32 %v3440_v0, %v3149_v62 }
0x13fc   :  { %v1767_v41 = vpop.f32.mrf.mxu1 }
0x13fd   :  { %v4472_v4 = vpack.c.bf16 %v1776_v1, %v1773_v33  ;;  %v1768_v6 = vadd.f32 %v3149_v62, %v1767_v41 }
0x13ff   :  { %v4474_v32 = vpack.c.bf16 %v1768_v6, %v1765_v2  ;;  %1785 = vrot.lane.b32.xlu0 %v4472_v4, %s3883_s1 }
0x1401   :  { %1783 = vrot.lane.b32.xlu1 %v4474_v32, %s3883_s1  ;;  %3445 = vmatprep.mubr.msk.bf16.mxu1 %vm457_vm10, %v4474_v32  ;;  %s4795_s1 = smov 104  }
0x1471   :  { %v1786_v20 = vpop.permute.xlu0 %1785 }
0x1472   :  { %v1797_v7 = vsel %vm457_vm10, %v1786_v20, 0  ;;  %3549 = vmatprep.subr.msk.bf16.mxu1 %vm457_vm10, %v1786_v20 }
0x1473   :  { %3442 = vmatpush3.bf16.xpose.msra.mxu1 %v1797_v7  ;;  %v1784_v34 = vpop.permute.xlu1 %1783 }
0x1474   :  { %3550 = vmatprep.subr.msk.bf16.mxu1 %vm457_vm10, %v1784_v34  ;;  %v1794_v12 = vsel %vm457_vm10, %v1784_v34, 0 }
0x147b   :  { %3444 = vmatpush3.bf16.xpose.msra.mxu1 %v1794_v12 }
0x1482   :  { %3446 = vmatmul.mubr.msk.bf16.vlgmr.msra.gmra.mxu1 %vm457_vm10, %v4472_v4 }
0x1542   :  { %v3447_v18 = vpop.f32.mrf.mxu1 }
0x1543   :  { %v1850_v19 = vmul.f32 0.35355338, %v3447_v18 }
0x1544   :  { %v1833_v25 = vpop.f32.mrf.mxu1 }
0x1545   :  { %v1848_v50 = vmul.f32 0.35355338, %v1833_v25  ;;  %v1854_v37 = vadd.f32 %v1850_v19, %v4194_v3 }
0x1546   :  { %v3448_v13 = vpop.f32.mrf.mxu1 }
0x1547   :  { %v1851_v14 = vmul.f32 0.35355338, %v3448_v13  ;;  %v1852_v15 = vadd.f32 %v1848_v50, %v4190_v63  ;;  %v1862_v39 = vsel %vm147_vm8, %v1854_v37, -inf }
0x1548   :  { %v1836_v17 = vpop.f32.mrf.mxu1 }
0x1549   :  { %v1849_v24 = vmul.f32 0.35355338, %v1836_v17  ;;  %v1856_v31 = vsel %vm147_vm8, %v1852_v15, -inf  ;;  %v1855_v35 = vadd.f32 %v1851_v14, %v4199_v16 }
0x154a   :  { %1857 = vmax.xlane.f32.xlu1 %v1856_v31 }
0x154b   :  { %v1853_v36 = vadd.f32 %v1849_v24, %v4196_v8  ;;  %v1865_v23 = vsel %vm147_vm8, %v1855_v35, -inf }
0x154d   :  { %v1859_v38 = vsel %vm147_vm8, %v1853_v36, -inf }
0x154e   :  { %1866 = vmax.xlane.f32.xlu1 %v1865_v23  ;;  %1860 = vmax.xlane.f32.xlu0 %v1859_v38 }
0x1552   :  { %1863 = vmax.xlane.f32.xlu0 %v1862_v39 }
0x155f   :  { %1902 = vrot.lane.b32.xlu1 %v4474_v32, %s3884_s5 }
0x15d3   :  { %v1858_v28 = vpop.xlane.xlu1 %1857 }
0x15d4   :  { %v1868_v11 = vsub.f32 %v1852_v15, %v1858_v28 }
0x15d6   :  { %v1872_v9 = vmul.f32 1.442695, %v1868_v11 }
0x15d7   :  { %v1867_v30 = vpop.xlane.xlu1 %1866  ;;  %v1861_v42 = vpop.xlane.xlu0 %1860 }
0x15d8   :  { %v1871_v43 = vsub.f32 %v1855_v35, %v1867_v30  ;;  %v1869_v44 = vsub.f32 %v1853_v36, %v1861_v42 }
0x15da   :  { %v1878_v45 = vmul.f32 1.442695, %v1871_v43  ;;  %v1874_v21 = vmul.f32 1.442695, %v1869_v44 }
0x15db   :  { %v1864_v10 = vpop.xlane.xlu0 %1863  ;;  %v1903_v56 = vpop.permute.xlu1 %1902 }
0x15dc   :  { %3773 = vpow2.f32 %v1878_v45  ;;  %v1870_v46 = vsub.f32 %v1854_v37, %v1864_v10 }
0x15dd   :  { %3775 = vpow2.f32 %v1874_v21 }
0x15de   :  { %v1876_v55 = vmul.f32 1.442695, %v1870_v46 }
0x15e0   :  { %3777 = vpow2.f32 %v1876_v55 }
0x15e1   :  { %3779 = vpow2.f32 %v1872_v9 }
0x15e9   :  { %v3774_v47 = vpop.eup %3773 }
0x15ea   :  { %v1889_v48 = vsel %vm147_vm8, %v3774_v47, 0.0  ;;  %v3776_v27 = vpop.eup %3775 }
0x15eb   :  { %1890 = vadd.xlane.f32.xlu1 %v1889_v48  ;;  %v1883_v49 = vsel %vm147_vm8, %v3776_v27, 0.0 }
0x15ed   :  { %v3778_v53 = vpop.eup %3777 }
0x15ee   :  { %v1886_v26 = vsel %vm147_vm8, %v3778_v53, 0.0  ;;  %v3780_v29 = vpop.eup %3779 }
0x15ef   :  { %1884 = vadd.xlane.f32.xlu1 %v1883_v49  ;;  %1887 = vadd.xlane.f32.xlu0 %v1886_v26  ;;  %v1880_v51 = vsel %vm147_vm8, %v3780_v29, 0.0 }
0x15f3   :  { %1881 = vadd.xlane.f32.xlu0 %v1880_v51 }
0x1600   :  { %1969 = vrot.lane.b32.xlu1 %v4472_v4, %s3885_s24 }
0x1604   :  { %1963 = vrot.lane.b32.xlu1 %v4474_v32, %s3886_s6 }
0x1609   :  { %1904 = vrot.lane.b32.xlu0 %v4472_v4, %s3884_s5  ;;  %s4796_s5 = smov 40  }
0x160d   :  { %1967 = vrot.lane.b32.xlu0 %v4474_v32, %s3885_s24  ;;  %s4797_s24 = smov 8  }
0x1611   :  { %1965 = vrot.lane.b32.xlu0 %v4472_v4, %s3886_s6  ;;  %s4798_s6 = smov 16  }
0x1674   :  { %v1891_v57 = vpop.xlane.xlu1 %1890 }
0x1678   :  { %v1885_v40 = vpop.xlane.xlu1 %1884  ;;  %v1888_v60 = vpop.xlane.xlu0 %1887 }
0x1679   :  { %3781 = vrcp.f32 %v1888_v60 }
0x167a   :  { %3783 = vrcp.f32 %v1885_v40 }
0x167b   :  { %3785 = vrcp.f32 %v1891_v57 }
0x167c   :  { %v1882_v61 = vpop.xlane.xlu0 %1881  ;;  %v1970_v22 = vpop.permute.xlu1 %1969 }
0x167d   :  { %3787 = vrcp.f32 %v1882_v61  ;;  %v1981_v18 = vsel %vm457_vm10, %v1970_v22, 0 }
0x1680   :  { %v1905_v62 = vpop.permute.xlu0 %1904  ;;  %v1964_v25 = vpop.permute.xlu1 %1963 }
0x1681   :  { %3449 = vmatprep.subr.bf16.mxu0 %v1905_v62 }
0x1682   :  { %3450 = vmatpush3.bf16.msra.mxu0 %v1905_v62 }
0x1683   :  { %3451 = vmatprep.subr.bf16.mxu0 %v1903_v56 }
0x1684   :  { %v1968_v50 = vpop.permute.xlu0 %1967 }
0x1685   :  { %v1978_v13 = vsel %vm457_vm10, %v1968_v50, 0 }
0x1686   :  { %3452 = vmatpush3.bf16.msra.mxu0 %v1903_v56  ;;  %v3782_v0 = vpop.eup %3781 }
0x1687   :  { %3551 = vmatprep.subr.msk.bf16.mxu0 %vm457_vm10, %v1970_v22  ;;  %v3784_v33 = vpop.eup %3783  ;;  %v1898_v2 = vmul.f32 %v3782_v0, %v3778_v53 }
0x1688   :  { %v3786_v1 = vpop.eup %3785  ;;  %v1897_v20 = vmul.f32 %v3784_v33, %v3776_v27  ;;  %v1966_v14 = vpop.permute.xlu0 %1965 }
0x1689   :  { %v1899_v7 = vmul.f32 %v3786_v1, %v3774_v47 }
0x168a   :  { %v3788_v41 = vpop.eup %3787 }
0x168b   :  { %v1896_v6 = vmul.f32 %v3788_v41, %v3780_v29  ;;  %v1901_v12 = vpack.c.bf16 %v1899_v7, %v1898_v2 }
0x168d   :  { %v1900_v34 = vpack.c.bf16 %v1897_v20, %v1896_v6 }
0x168f   :  { %3453 = vmatprep.mubr.msk.bf16.mxu0 %vm147_vm8, %v1900_v34 }
0x1690   :  { %3454 = vmatmul.mubr.msk.bf16.vlgmr.msra.gmra.mxu0 %vm147_vm8, %v1901_v12 }
0x1691   :  { %3458 = vmatpush3.bf16.xpose.msra.mxu0 %v1981_v18  ;;  %3461 = vmatprep.mubr.msk.bf16.mxu0 %vm457_vm10, %v1964_v25 }
0x1692   :  { %3552 = vmatprep.subr.msk.bf16.mxu0 %vm457_vm10, %v1968_v50 }
0x1699   :  { %3460 = vmatpush3.bf16.xpose.msra.mxu0 %v1978_v13 }
0x16a0   :  { %3462 = vmatmul.mubr.msk.bf16.vlgmr.msra.gmra.mxu0 %vm457_vm10, %v1966_v14 }
0x1750   :  { %v4520_v15 = vpop.f32.mrf.mxu0 }
0x1752   :  { %v4522_v17 = vpop.f32.mrf.mxu0 }
0x1754   :  { %v4524_v19 = vpop.f32.mrf.mxu0 }
0x1756   :  { %v4526_v24 = vpop.f32.mrf.mxu0 }
0x1760   :  { %v3463_v31 = vpop.f32.mrf.mxu0 }
0x1761   :  { %v2034_v28 = vmul.f32 0.35355338, %v3463_v31 }
0x1762   :  { %v2017_v35 = vpop.f32.mrf.mxu0 }
0x1763   :  { %v2032_v36 = vmul.f32 0.35355338, %v2017_v35  ;;  %v2038_v11 = vadd.f32 %v2034_v28, %v4194_v3 }
0x1764   :  { %v3464_v37 = vpop.f32.mrf.mxu0 }
0x1765   :  { %v2036_v23 = vadd.f32 %v2032_v36, %v4190_v63  ;;  %v2035_v38 = vmul.f32 0.35355338, %v3464_v37  ;;  %v2046_v10 = vsel %vm147_vm8, %v2038_v11, -inf }
0x1766   :  { %v2020_v39 = vpop.f32.mrf.mxu0 }
0x1767   :  { %v2039_v30 = vadd.f32 %v2035_v38, %v4199_v16  ;;  %v2033_v42 = vmul.f32 0.35355338, %v2020_v39  ;;  %v2040_v43 = vsel %vm147_vm8, %v2036_v23, -inf }
0x1768   :  { %2041 = vmax.xlane.f32.xlu1 %v2040_v43 }
0x1769   :  { %v2037_v44 = vadd.f32 %v2033_v42, %v4196_v8  ;;  %v2049_v45 = vsel %vm147_vm8, %v2039_v30, -inf }
0x176b   :  { %v2043_v21 = vsel %vm147_vm8, %v2037_v44, -inf }
0x176c   :  { %2050 = vmax.xlane.f32.xlu1 %v2049_v45  ;;  %2044 = vmax.xlane.f32.xlu0 %v2043_v21 }
0x1770   :  { %2047 = vmax.xlane.f32.xlu0 %v2046_v10 }
0x177d   :  { %2086 = vrot.lane.b32.xlu1 %v4474_v32, %s3887_s25 }
0x17f1   :  { %v2042_v46 = vpop.xlane.xlu1 %2041 }
0x17f2   :  { %v2052_v27 = vsub.f32 %v2036_v23, %v2042_v46 }
0x17f4   :  { %v2056_v51 = vmul.f32 1.442695, %v2052_v27 }
0x17f5   :  { %v2051_v9 = vpop.xlane.xlu1 %2050  ;;  %v2045_v55 = vpop.xlane.xlu0 %2044 }
0x17f6   :  { %v2055_v47 = vsub.f32 %v2039_v30, %v2051_v9  ;;  %v2053_v48 = vsub.f32 %v2037_v44, %v2045_v55 }
0x17f8   :  { %v2062_v53 = vmul.f32 1.442695, %v2055_v47  ;;  %v2058_v49 = vmul.f32 1.442695, %v2053_v48 }
0x17f9   :  { %v2048_v26 = vpop.xlane.xlu0 %2047  ;;  %v2087_v1 = vpop.permute.xlu1 %2086 }
0x17fa   :  { %3789 = vpow2.f32 %v2062_v53  ;;  %v2054_v29 = vsub.f32 %v2038_v11, %v2048_v26 }
0x17fb   :  { %3791 = vpow2.f32 %v2058_v49 }
0x17fc   :  { %v2060_v56 = vmul.f32 1.442695, %v2054_v29 }
0x17fe   :  { %3793 = vpow2.f32 %v2060_v56 }
0x17ff   :  { %3795 = vpow2.f32 %v2056_v51 }
0x1807   :  { %v3790_v57 = vpop.eup %3789 }
0x1808   :  { %v2073_v40 = vsel %vm147_vm8, %v3790_v57, 0.0  ;;  %v3792_v60 = vpop.eup %3791 }
0x1809   :  { %2074 = vadd.xlane.f32.xlu1 %v2073_v40  ;;  %v2067_v62 = vsel %vm147_vm8, %v3792_v60, 0.0 }
0x180b   :  { %v3794_v61 = vpop.eup %3793 }
0x180c   :  { %v2070_v22 = vsel %vm147_vm8, %v3794_v61, 0.0  ;;  %v3796_v0 = vpop.eup %3795 }
0x180d   :  { %2068 = vadd.xlane.f32.xlu1 %v2067_v62  ;;  %2071 = vadd.xlane.f32.xlu0 %v2070_v22  ;;  %v2064_v33 = vsel %vm147_vm8, %v3796_v0, 0.0 }
0x1811   :  { %2065 = vadd.xlane.f32.xlu0 %v2064_v33 }
0x181e   :  { %2153 = vrot.lane.b32.xlu1 %v4472_v4, %s3888_s26 }
0x1822   :  { %2147 = vrot.lane.b32.xlu1 %v4474_v32, %s3889_s2 }
0x1827   :  { %2088 = vrot.lane.b32.xlu0 %v4472_v4, %s3887_s25 }
0x182b   :  { %2151 = vrot.lane.b32.xlu0 %v4474_v32, %s3888_s26 }
0x182f   :  { %2149 = vrot.lane.b32.xlu0 %v4472_v4, %s3889_s2 }
0x1892   :  { %v2075_v41 = vpop.xlane.xlu1 %2074 }
0x1896   :  { %v2069_v2 = vpop.xlane.xlu1 %2068  ;;  %v2072_v6 = vpop.xlane.xlu0 %2071 }
0x1897   :  { %3797 = vrcp.f32 %v2072_v6 }
0x1898   :  { %3799 = vrcp.f32 %v2069_v2 }
0x1899   :  { %3801 = vrcp.f32 %v2075_v41 }
0x189a   :  { %v2066_v20 = vpop.xlane.xlu0 %2065  ;;  %v2154_v34 = vpop.permute.xlu1 %2153 }
0x189b   :  { %3803 = vrcp.f32 %v2066_v20  ;;  %v2165_v23 = vsel %vm457_vm10, %v2154_v34, 0 }
0x189e   :  { %v2089_v7 = vpop.permute.xlu0 %2088  ;;  %v2148_v38 = vpop.permute.xlu1 %2147 }
0x189f   :  { %3465 = vmatprep.subr.bf16.mxu1 %v2089_v7 }
0x18a0   :  { %3466 = vmatpush3.bf16.msra.mxu1 %v2089_v7 }
0x18a1   :  { %3467 = vmatprep.subr.bf16.mxu1 %v2087_v1 }
0x18a2   :  { %v2152_v39 = vpop.permute.xlu0 %2151 }
0x18a3   :  { %v2162_v28 = vsel %vm457_vm10, %v2152_v39, 0 }
0x18a4   :  { %3468 = vmatpush3.bf16.msra.mxu1 %v2087_v1  ;;  %v3798_v12 = vpop.eup %3797 }
0x18a5   :  { %3553 = vmatprep.subr.msk.bf16.mxu1 %vm457_vm10, %v2154_v34  ;;  %v3800_v18 = vpop.eup %3799  ;;  %v2082_v13 = vmul.f32 %v3798_v12, %v3794_v61 }
0x18a6   :  { %v3802_v25 = vpop.eup %3801  ;;  %v2081_v31 = vmul.f32 %v3800_v18, %v3792_v60  ;;  %v2150_v30 = vpop.permute.xlu0 %2149 }
0x18a7   :  { %v2083_v35 = vmul.f32 %v3802_v25, %v3790_v57 }
0x18a8   :  { %v3804_v50 = vpop.eup %3803 }
0x18a9   :  { %v2080_v14 = vmul.f32 %v3804_v50, %v3796_v0  ;;  %v2085_v37 = vpack.c.bf16 %v2083_v35, %v2082_v13 }
0x18ab   :  { %v2084_v36 = vpack.c.bf16 %v2081_v31, %v2080_v14 }
0x18ad   :  { %3469 = vmatprep.mubr.msk.bf16.mxu1 %vm147_vm8, %v2084_v36 }
0x18ae   :  { %3470 = vmatmul.mubr.msk.bf16.vlgmr.msra.gmra.mxu1 %vm147_vm8, %v2085_v37 }
0x18af   :  { %3474 = vmatpush3.bf16.xpose.msra.mxu1 %v2165_v23  ;;  %3477 = vmatprep.mubr.msk.bf16.mxu1 %vm457_vm10, %v2148_v38 }
0x18b0   :  { %3554 = vmatprep.subr.msk.bf16.mxu1 %vm457_vm10, %v2152_v39 }
0x18b7   :  { %3476 = vmatpush3.bf16.xpose.msra.mxu1 %v2162_v28 }
0x18be   :  { %3478 = vmatmul.mubr.msk.bf16.vlgmr.msra.gmra.mxu1 %vm457_vm10, %v2150_v30 }
0x196e   :  { %v4560_v42 = vpop.f32.mrf.mxu1 }
0x1970   :  { %v4562_v43 = vpop.f32.mrf.mxu1 }
0x1972   :  { %v4564_v44 = vpop.f32.mrf.mxu1 }
0x1973   :  { %v3622_v11 = vpack.i.bf16 %v4564_v44, %v4560_v42 }
0x1974   :  { %v4568_v45 = vpop.f32.mrf.mxu1 }
0x1975   :  { %v3617_v21 = vpack.i.bf16 %v4568_v45, %v4562_v43 }
0x197e   :  { %v3479_v10 = vpop.f32.mrf.mxu1 }
0x197f   :  { %v2218_v53 = vmul.f32 0.35355338, %v3479_v10 }
0x1980   :  { %v2201_v46 = vpop.f32.mrf.mxu1 }
0x1981   :  { %v2216_v9 = vmul.f32 0.35355338, %v2201_v46  ;;  %v2222_v56 = vadd.f32 %v2218_v53, %v4194_v3 }
0x1982   :  { %v3480_v55 = vpop.f32.mrf.mxu1 }
0x1983   :  { %v2220_v47 = vadd.f32 %v2216_v9, %v4190_v63  ;;  %v2219_v48 = vmul.f32 0.35355338, %v3480_v55  ;;  %v2230_v60 = vsel %vm147_vm8, %v2222_v56, -inf }
0x1984   :  { %v2204_v27 = vpop.f32.mrf.mxu1 }
0x1985   :  { %v2223_v49 = vadd.f32 %v2219_v48, %v4199_v16  ;;  %v2217_v26 = vmul.f32 0.35355338, %v2204_v27  ;;  %v2224_v29 = vsel %vm147_vm8, %v2220_v47, -inf }
0x1986   :  { %2225 = vmax.xlane.f32.xlu1 %v2224_v29 }
0x1987   :  { %v2221_v51 = vadd.f32 %v2217_v26, %v4196_v8  ;;  %v2233_v57 = vsel %vm147_vm8, %v2223_v49, -inf }
0x1989   :  { %v2227_v40 = vsel %vm147_vm8, %v2221_v51, -inf }
0x198a   :  { %2234 = vmax.xlane.f32.xlu1 %v2233_v57  ;;  %2228 = vmax.xlane.f32.xlu0 %v2227_v40 }
0x198e   :  { %2231 = vmax.xlane.f32.xlu0 %v2230_v60 }
0x199b   :  { %2270 = vrot.lane.b32.xlu1 %v4474_v32, %s3890_s27 }
0x1a0f   :  { %v2226_v61 = vpop.xlane.xlu1 %2225 }
0x1a10   :  { %v2236_v1 = vsub.f32 %v2220_v47, %v2226_v61 }
0x1a12   :  { %v2240_v7 = vmul.f32 1.442695, %v2236_v1 }
0x1a13   :  { %v2235_v62 = vpop.xlane.xlu1 %2234  ;;  %v2229_v22 = vpop.xlane.xlu0 %2228 }
0x1a14   :  { %v2239_v0 = vsub.f32 %v2223_v49, %v2235_v62  ;;  %v2237_v33 = vsub.f32 %v2221_v51, %v2229_v22 }
0x1a16   :  { %v2246_v41 = vmul.f32 1.442695, %v2239_v0  ;;  %v2242_v2 = vmul.f32 1.442695, %v2237_v33 }
0x1a17   :  { %v2232_v6 = vpop.xlane.xlu0 %2231  ;;  %v2271_v36 = vpop.permute.xlu1 %2270 }
0x1a18   :  { %3805 = vpow2.f32 %v2246_v41  ;;  %v2238_v20 = vsub.f32 %v2222_v56, %v2232_v6 }
0x1a19   :  { %3807 = vpow2.f32 %v2242_v2 }
0x1a1a   :  { %v2244_v34 = vmul.f32 1.442695, %v2238_v20 }
0x1a1c   :  { %3809 = vpow2.f32 %v2244_v34 }
0x1a1d   :  { %3811 = vpow2.f32 %v2240_v7 }
0x1a25   :  { %v3806_v12 = vpop.eup %3805 }
0x1a26   :  { %v2257_v18 = vsel %vm147_vm8, %v3806_v12, 0.0  ;;  %v3808_v25 = vpop.eup %3807 }
0x1a27   :  { %2258 = vadd.xlane.f32.xlu1 %v2257_v18  ;;  %v2251_v13 = vsel %vm147_vm8, %v3808_v25, 0.0 }
0x1a29   :  { %v3810_v50 = vpop.eup %3809 }
0x1a2a   :  { %v2254_v14 = vsel %vm147_vm8, %v3810_v50, 0.0  ;;  %v3812_v31 = vpop.eup %3811 }
0x1a2b   :  { %2252 = vadd.xlane.f32.xlu1 %v2251_v13  ;;  %2255 = vadd.xlane.f32.xlu0 %v2254_v14  ;;  %v2248_v35 = vsel %vm147_vm8, %v3812_v31, 0.0 }
0x1a2f   :  { %2249 = vadd.xlane.f32.xlu0 %v2248_v35 }
0x1a3c   :  { %2337 = vrot.lane.b32.xlu1 %v4472_v4, %s4794_s9 }
0x1a40   :  { %2331 = vrot.lane.b32.xlu1 %v4474_v32, %s4795_s1 }
0x1a45   :  { %2272 = vrot.lane.b32.xlu0 %v4472_v4, %s3890_s27 }
0x1a49   :  { %2335 = vrot.lane.b32.xlu0 %v4474_v32, %s4794_s9 }
0x1a4d   :  { %2333 = vrot.lane.b32.xlu0 %v4472_v4, %s4795_s1 }
0x1ab0   :  { %v2259_v37 = vpop.xlane.xlu1 %2258 }
0x1ab4   :  { %v2253_v23 = vpop.xlane.xlu1 %2252  ;;  %v2256_v38 = vpop.xlane.xlu0 %2255 }
0x1ab5   :  { %3813 = vrcp.f32 %v2256_v38 }
0x1ab6   :  { %3815 = vrcp.f32 %v2253_v23 }
0x1ab7   :  { %3817 = vrcp.f32 %v2259_v37 }
0x1ab8   :  { %v2250_v39 = vpop.xlane.xlu0 %2249  ;;  %v2338_v30 = vpop.permute.xlu1 %2337 }
0x1ab9   :  { %3819 = vrcp.f32 %v2250_v39  ;;  %v2349_v29 = vsel %vm457_vm10, %v2338_v30, 0 }
0x1abc   :  { %v2273_v28 = vpop.permute.xlu0 %2272  ;;  %v2332_v51 = vpop.permute.xlu1 %2331 }
0x1abd   :  { %3481 = vmatprep.subr.bf16.mxu0 %v2273_v28 }
0x1abe   :  { %3482 = vmatpush3.bf16.msra.mxu0 %v2273_v28 }
0x1abf   :  { %3483 = vmatprep.subr.bf16.mxu0 %v2271_v36 }
0x1ac0   :  { %v2336_v56 = vpop.permute.xlu0 %2335 }
0x1ac1   :  { %v2346_v57 = vsel %vm457_vm10, %v2336_v56, 0 }
0x1ac2   :  { %3484 = vmatpush3.bf16.msra.mxu0 %v2271_v36  ;;  %v3814_v10 = vpop.eup %3813 }
0x1ac3   :  { %3555 = vmatprep.subr.msk.bf16.mxu0 %vm457_vm10, %v2338_v30  ;;  %v3816_v46 = vpop.eup %3815  ;;  %v2266_v47 = vmul.f32 %v3814_v10, %v3810_v50 }
0x1ac4   :  { %v3818_v9 = vpop.eup %3817  ;;  %v2265_v27 = vmul.f32 %v3816_v46, %v3808_v25  ;;  %v2334_v40 = vpop.permute.xlu0 %2333 }
0x1ac5   :  { %v2267_v53 = vmul.f32 %v3818_v9, %v3806_v12 }
0x1ac6   :  { %v3820_v55 = vpop.eup %3819 }
0x1ac7   :  { %v2264_v48 = vmul.f32 %v3820_v55, %v3812_v31  ;;  %v2269_v26 = vpack.c.bf16 %v2267_v53, %v2266_v47 }
0x1ac9   :  { %v2268_v49 = vpack.c.bf16 %v2265_v27, %v2264_v48 }
0x1acb   :  { %3485 = vmatprep.mubr.msk.bf16.mxu0 %vm147_vm8, %v2268_v49 }
0x1acc   :  { %3486 = vmatmul.mubr.msk.bf16.vlgmr.msra.gmra.mxu0 %vm147_vm8, %v2269_v26 }
0x1acd   :  { %3490 = vmatpush3.bf16.xpose.msra.mxu0 %v2349_v29  ;;  %3493 = vmatprep.mubr.msk.bf16.mxu0 %vm457_vm10, %v2332_v51 }
0x1ace   :  { %3556 = vmatprep.subr.msk.bf16.mxu0 %vm457_vm10, %v2336_v56 }
0x1ad5   :  { %3492 = vmatpush3.bf16.xpose.msra.mxu0 %v2346_v57 }
0x1adc   :  { %3494 = vmatmul.mubr.msk.bf16.vlgmr.msra.gmra.mxu0 %vm457_vm10, %v2334_v40 }
0x1b8c   :  { %v3487_v60 = vpop.f32.mrf.mxu0 }
0x1b8e   :  { %v2316_v61 = vpop.f32.mrf.mxu0 }
0x1b90   :  { %v3488_v62 = vpop.f32.mrf.mxu0 }
0x1b91   :  { %v3632_v22 = vpack.i.bf16 %v3488_v62, %v3487_v60 }
0x1b92   :  { %v2319_v0 = vpop.f32.mrf.mxu0 }
0x1b93   :  { %v3627_v33 = vpack.i.bf16 %v2319_v0, %v2316_v61  ;;  %v3660_v0 = vld [vmem:[%s4751_s10 + $0x10] sm:$0xff]  }
0x1b9c   :  { %v3495_v1 = vpop.f32.mrf.mxu0 }
0x1b9d   :  { %v2402_v12 = vmul.f32 0.35355338, %v3495_v1 }
0x1b9e   :  { %v2385_v41 = vpop.f32.mrf.mxu0 }
0x1b9f   :  { %v2400_v2 = vmul.f32 0.35355338, %v2385_v41  ;;  %v2406_v14 = vadd.f32 %v2402_v12, %v4194_v3 }
0x1ba0   :  { %v3496_v6 = vpop.f32.mrf.mxu0 }
0x1ba1   :  { %v2404_v20 = vadd.f32 %v2400_v2, %v4190_v63  ;;  %v2403_v7 = vmul.f32 0.35355338, %v3496_v6  ;;  %v2414_v63 = vsel %vm147_vm8, %v2406_v14, -inf }
0x1ba2   :  { %v2388_v34 = vpop.f32.mrf.mxu0 }
0x1ba3   :  { %v2407_v18 = vadd.f32 %v2403_v7, %v4199_v16  ;;  %v2401_v25 = vmul.f32 0.35355338, %v2388_v34  ;;  %v2408_v50 = vsel %vm147_vm8, %v2404_v20, -inf }
0x1ba4   :  { %2409 = vmax.xlane.f32.xlu1 %v2408_v50 }
0x1ba5   :  { %v2405_v13 = vadd.f32 %v2401_v25, %v4196_v8  ;;  %v2417_v31 = vsel %vm147_vm8, %v2407_v18, -inf }
0x1ba7   :  { %v2411_v35 = vsel %vm147_vm8, %v2405_v13, -inf }
0x1ba8   :  { %2418 = vmax.xlane.f32.xlu1 %v2417_v31  ;;  %2412 = vmax.xlane.f32.xlu0 %v2411_v35 }
0x1bac   :  { %2415 = vmax.xlane.f32.xlu0 %v2414_v63 }
0x1c2d   :  { %v2410_v36 = vpop.xlane.xlu1 %2409 }
0x1c2e   :  { %v2420_v39 = vsub.f32 %v2404_v20, %v2410_v36 }
0x1c30   :  { %v2424_v10 = vmul.f32 1.442695, %v2420_v39 }
0x1c31   :  { %v2419_v37 = vpop.xlane.xlu1 %2418  ;;  %v2413_v16 = vpop.xlane.xlu0 %2412 }
0x1c32   :  { %v2423_v23 = vsub.f32 %v2407_v18, %v2419_v37  ;;  %v2421_v38 = vsub.f32 %v2405_v13, %v2413_v16 }
0x1c34   :  { %v2430_v28 = vmul.f32 1.442695, %v2423_v23  ;;  %v2426_v30 = vmul.f32 1.442695, %v2421_v38 }
0x1c35   :  { %v2416_v8 = vpop.xlane.xlu0 %2415 }
0x1c36   :  { %3821 = vpow2.f32 %v2430_v28  ;;  %v2422_v3 = vsub.f32 %v2406_v14, %v2416_v8 }
0x1c37   :  { %3823 = vpow2.f32 %v2426_v30 }
0x1c38   :  { %v2428_v46 = vmul.f32 1.442695, %v2422_v3 }
0x1c3a   :  { %3825 = vpow2.f32 %v2428_v46 }
0x1c3b   :  { %3827 = vpow2.f32 %v2424_v10 }
0x1c43   :  { %v3822_v9 = vpop.eup %3821 }
0x1c44   :  { %v2441_v55 = vsel %vm147_vm8, %v3822_v9, 0.0  ;;  %v3824_v47 = vpop.eup %3823 }
0x1c45   :  { %2442 = vadd.xlane.f32.xlu1 %v2441_v55  ;;  %v2435_v27 = vsel %vm147_vm8, %v3824_v47, 0.0 }
0x1c47   :  { %v3826_v48 = vpop.eup %3825 }
0x1c48   :  { %v2438_v53 = vsel %vm147_vm8, %v3826_v48, 0.0  ;;  %v3828_v49 = vpop.eup %3827 }
0x1c49   :  { %2436 = vadd.xlane.f32.xlu1 %v2435_v27  ;;  %2439 = vadd.xlane.f32.xlu0 %v2438_v53  ;;  %v2432_v26 = vsel %vm147_vm8, %v3828_v49, 0.0 }
0x1c4d   :  { %2433 = vadd.xlane.f32.xlu0 %v2432_v26 }
0x1c5a   :  { %2454 = vrot.lane.b32.xlu1 %v4474_v32, %s4796_s5 }
0x1c5e   :  { %3618 = vrot.lane.b32.xlu1 %v3617_v21, %s4797_s24 }
0x1c62   :  { %3628 = vrot.lane.b32.xlu1 %v3627_v33, %s4798_s6 }
0x1c63   :  { %2456 = vrot.lane.b32.xlu0 %v4472_v4, %s4796_s5 }
0x1c67   :  { %3623 = vrot.lane.b32.xlu0 %v3622_v11, %s4797_s24 }
0x1c6b   :  { %3633 = vrot.lane.b32.xlu0 %v3632_v22, %s4798_s6  ;;  %v3659_v22 = vld [vmem:[%s4751_s10 + $0x18] sm:$0xff]  }
0x1cce   :  { %v2443_v29 = vpop.xlane.xlu1 %2442 }
0x1cd2   :  { %v2437_v51 = vpop.xlane.xlu1 %2436  ;;  %v2440_v32 = vpop.xlane.xlu0 %2439 }
0x1cd3   :  { %3829 = vrcp.f32 %v2440_v32 }
0x1cd4   :  { %3831 = vrcp.f32 %v2437_v51 }
0x1cd5   :  { %3833 = vrcp.f32 %v2443_v29 }
0x1cd6   :  { %v2434_v43 = vpop.xlane.xlu0 %2433  ;;  %v2455_v21 = vpop.permute.xlu1 %2454 }
0x1cd7   :  { %3835 = vrcp.f32 %v2434_v43 }
0x1cda   :  { %v2457_v45 = vpop.permute.xlu0 %2456  ;;  %v3619_v34 = vpop.permute.xlu1 %3618 }
0x1cdb   :  { %3497 = vmatprep.subr.bf16.mxu1 %v2457_v45  ;;  %v3621_v25 = vunpack.i.h.bf16 %v3619_v34  ;;  %v3620_v50 = vunpack.i.l.bf16 %v3619_v34 }
0x1cdc   :  { %3498 = vmatpush3.bf16.msra.mxu1 %v2457_v45 }
0x1cdd   :  { %3499 = vmatprep.subr.bf16.mxu1 %v2455_v21  ;;  %v2564_v38 = vsel %vm457_vm10, %v4526_v24, %v3621_v25  ;;  %v2563_v39 = vsel %vm457_vm10, %v4522_v17, %v3620_v50 }
0x1cde   :  { %v3624_v7 = vpop.permute.xlu0 %3623  ;;  %v3629_v18 = vpop.permute.xlu1 %3628 }
0x1cdf   :  { %v3626_v13 = vunpack.i.h.bf16 %v3624_v7  ;;  %v3625_v14 = vunpack.i.l.bf16 %v3624_v7  ;;  %v3631_v63 = vunpack.i.h.bf16 %v3629_v18  ;;  %v3630_v36 = vunpack.i.l.bf16 %v3629_v18 }
0x1ce0   :  { %3500 = vmatpush3.bf16.msra.mxu1 %v2455_v21  ;;  %v3830_v4 = vpop.eup %3829 }
0x1ce1   :  { %v3832_v56 = vpop.eup %3831  ;;  %v2450_v11 = vmul.f32 %v3830_v4, %v3826_v48  ;;  %3505 = vmatprep.subr.bf16.mxu1 %v3659_v22  ;;  %v2566_v28 = vsel %vm457_vm10, %v4524_v19, %v3626_v13  ;;  %v2565_v30 = vsel %vm457_vm10, %v4520_v15, %v3625_v14  ;;  %v2567_v55 = vsel %vm1238_vm11, %v2563_v39, %v3630_v36  ;;  %v3661_v13 = vld [vmem:[%s4755_s14 + $0x18] sm:$0xff]   ;;  %v3662_v14 = vld [vmem:[%s4755_s14 + $0x10] sm:$0xff]  }
0x1ce2   :  { %v3834_v42 = vpop.eup %3833  ;;  %v2449_v40 = vmul.f32 %v3832_v56, %v3824_v47  ;;  %v3634_v12 = vpop.permute.xlu0 %3633  ;;  %v2568_v24 = vsel %vm1238_vm11, %v2564_v38, %v3631_v63  ;;  %3513 = vmatprep.subr.bf16.mxu0 %v3661_v13 }
0x1ce3   :  { %v2451_v60 = vmul.f32 %v3834_v42, %v3822_v9  ;;  %v3636_v31 = vunpack.i.h.bf16 %v3634_v12  ;;  %v3635_v35 = vunpack.i.l.bf16 %v3634_v12  ;;  %3514 = vmatpush3.bf16.msra.mxu0 %v3661_v13 }
0x1ce4   :  { %v3836_v44 = vpop.eup %3835  ;;  %3515 = vmatprep.subr.bf16.mxu0 %v3662_v14 }
0x1ce5   :  { %v2448_v57 = vmul.f32 %v3836_v44, %v3828_v49  ;;  %v2453_v62 = vpack.c.bf16 %v2451_v60, %v2450_v11  ;;  %v2569_v3 = vsel %vm1238_vm11, %v2565_v30, %v3635_v35  ;;  %v2570_v10 = vsel %vm1238_vm11, %v2566_v28, %v3636_v31  ;;  %v3175_v49 = vld [vmem:[%s4752_s11 + $0x1] ss:$0 sm:$0xff] }
0x1ce7   :  { %v2452_v61 = vpack.c.bf16 %v2449_v40, %v2448_v57  ;;  %3516 = vmatpush3.bf16.msra.mxu0 %v3662_v14 }
0x1ce8   :  { %3533 = vmatprep.subr.bf16.mxu0 %v3882_v5 }
0x1ce9   :  { %3501 = vmatprep.mubr.msk.bf16.mxu1 %vm147_vm8, %v2452_v61 }
0x1cea   :  { %3502 = vmatmul.mubr.msk.bf16.vlgmr.msra.gmra.mxu1 %vm147_vm8, %v2453_v62 }
0x1ceb   :  { %3506 = vmatpush3.bf16.msra.mxu1 %v3659_v22 }
0x1cec   :  { %3507 = vmatprep.subr.bf16.mxu1 %v3660_v0 }
0x1cef   :  { %3508 = vmatpush3.bf16.msra.mxu1 %v3660_v0 }
0x1daa   :  { %v3503_v33 = vpop.f32.mrf.mxu1 }
0x1dac   :  { %v2500_v1 = vpop.f32.mrf.mxu1 }
0x1dae   :  { %v3504_v41 = vpop.f32.mrf.mxu1 }
0x1daf   :  { %v3642_v2 = vpack.i.bf16 %v3504_v41, %v3503_v33 }
0x1db0   :  { %v2503_v6 = vpop.f32.mrf.mxu1 }
0x1db1   :  { %v3637_v20 = vpack.i.bf16 %v2503_v6, %v2500_v1  ;;  %3643 = vrot.lane.b32.xlu0 %v3642_v2, %s4799_s30 }
0x1db3   :  { %3638 = vrot.lane.b32.xlu1 %v3637_v20, %s4799_s30 }
0x1e23   :  { %v3644_v37 = vpop.permute.xlu0 %3643 }
0x1e24   :  { %v3646_v16 = vunpack.i.h.bf16 %v3644_v37  ;;  %v3645_v23 = vunpack.i.l.bf16 %v3644_v37 }
0x1e25   :  { %v3639_v8 = vpop.permute.xlu1 %3638 }
0x1e26   :  { %v3641_v46 = vunpack.i.h.bf16 %v3639_v8  ;;  %v3640_v9 = vunpack.i.l.bf16 %v3639_v8  ;;  %v2573_v47 = vsel %vm1243_vm12, %v2569_v3, %v3645_v23  ;;  %v2574_v17 = vsel %vm1243_vm12, %v2570_v10, %v3646_v16 }
0x1e27   :  { %v2576_v27 = vpack.c.bf16 %v2574_v17, %v2573_v47  ;;  %v3183_v47 = vld [vmem:[%s4754_s13 + $0x1] ss:$0 sm:$0xff] }
0x1e28   :  { %v2572_v19 = vsel %vm1243_vm12, %v2568_v24, %v3641_v46  ;;  %v2571_v48 = vsel %vm1243_vm12, %v2567_v55, %v3640_v9  ;;  %v3182_v46 = vld [vmem:[%s4753_s12 + $0x1] ss:$0 sm:$0xff] }
0x1e29   :  { %v2575_v15 = vpack.c.bf16 %v2572_v19, %v2571_v48 }
0x1e2b   :  { %3509 = vmatprep.mubr.msk.bf16.mxu1 %vm147_vm8, %v2575_v15 }
0x1e2c   :  { %3510 = vmatmul.mubr.msk.bf16.vlgmr.msra.gmra.mxu1 %vm147_vm8, %v2576_v27 }
0x1eec   :  { %v3511_v53 = vpop.f32.mrf.mxu1 }
0x1eed   :  { %v2651_v21 = vadd.f32 %v3511_v53, %v3175_v49 }
0x1eee   :  { %v2642_v26 = vpop.f32.mrf.mxu1 }
0x1eef   :  { %v2643_v29 = vadd.f32 %v3175_v49, %v2642_v26  ;;  %v2659_v11 = vadd.f32 %v2651_v21, %v4462_v58  ;;  %v3663_v21 = vld [vmem:[%s4757_s16 + $0x38] sm:$0xff]  }
0x1ef0   :  { %v3512_v51 = vpop.f32.mrf.mxu1  ;;  %3521 = vmatprep.subr.bf16.mxu1 %v3663_v21 }
0x1ef1   :  { %v2657_v32 = vadd.f32 %v2643_v29, %v4455_v52  ;;  %v2654_v43 = vadd.f32 %v3512_v51, %v3175_v49  ;;  %v2671_v52 = vsel %vm147_vm8, %v2659_v11, 0.0  ;;  %3522 = vmatpush3.bf16.msra.mxu1 %v3663_v21 }
0x1ef2   :  { %v2645_v45 = vpop.f32.mrf.mxu1 }
0x1ef3   :  { %v2660_v4 = vadd.f32 %v2654_v43, %v4464_v59  ;;  %v2646_v56 = vadd.f32 %v3175_v49, %v2645_v45  ;;  %v2665_v42 = vsel %vm147_vm8, %v2657_v32, 0.0 }
0x1ef4   :  { %2666 = vadd.xlane.f32.xlu1 %v2665_v42  ;;  %v3666_v42 = vld [vmem:[%s4757_s16 + $0x20] sm:$0xff]  }
0x1ef5   :  { %v2658_v44 = vadd.f32 %v2646_v56, %v4457_v54  ;;  %v2674_v40 = vsel %vm147_vm8, %v2660_v4, 0.0  ;;  %v3665_v56 = vld [vmem:[%s4757_s16 + $0x28] sm:$0xff]  }
0x1ef7   :  { %v2668_v57 = vsel %vm147_vm8, %v2658_v44, 0.0 }
0x1ef8   :  { %2669 = vadd.xlane.f32.xlu0 %v2668_v57  ;;  %2675 = vadd.xlane.f32.xlu1 %v2674_v40 }
0x1efc   :  { %2672 = vadd.xlane.f32.xlu0 %v2671_v52 }
0x1f7d   :  { %v2667_v60 = vpop.xlane.xlu1 %2666 }
0x1f7e   :  { %v2677_v61 = vmul.f32 0.03125, %v2667_v60 }
0x1f80   :  { %v2681_v59 = vsub.f32 %v2657_v32, %v2677_v61 }
0x1f81   :  { %v2670_v62 = vpop.xlane.xlu0 %2669  ;;  %v2676_v22 = vpop.xlane.xlu1 %2675 }
0x1f82   :  { %v2678_v0 = vmul.f32 0.03125, %v2670_v62  ;;  %v2680_v33 = vmul.f32 0.03125, %v2676_v22  ;;  %v2685_v1 = vmul.f32 %v2681_v59, %v2681_v59 }
0x1f84   :  { %v2682_v54 = vsub.f32 %v2658_v44, %v2678_v0  ;;  %v2684_v41 = vsub.f32 %v2660_v4, %v2680_v33  ;;  %v2689_v58 = vsel %vm147_vm8, %v2685_v1, 0.0  ;;  %v3664_v4 = vld [vmem:[%s4757_s16 + $0x30] sm:$0xff]   ;;  %v3189_v44 = vld [vmem:[%s4756_s15 + $0x1] ss:$0 sm:$0xff] }
0x1f85   :  { %v2673_v2 = vpop.xlane.xlu0 %2672  ;;  %2690 = vadd.xlane.f32.xlu0 %v2689_v58  ;;  %3523 = vmatprep.subr.bf16.mxu1 %v3664_v4 }
0x1f86   :  { %v2679_v6 = vmul.f32 0.03125, %v2673_v2  ;;  %v2686_v20 = vmul.f32 %v2682_v54, %v2682_v54  ;;  %v2688_v12 = vmul.f32 %v2684_v41, %v2684_v41  ;;  %3524 = vmatpush3.bf16.msra.mxu1 %v3664_v4 }
0x1f87   :  { %3525 = vmatprep.subr.bf16.mxu1 %v3665_v56 }
0x1f88   :  { %v2683_v7 = vsub.f32 %v2659_v11, %v2679_v6  ;;  %v2692_v34 = vsel %vm147_vm8, %v2686_v20, 0.0  ;;  %v2698_v50 = vsel %vm147_vm8, %v2688_v12, 0.0 }
0x1f89   :  { %2693 = vadd.xlane.f32.xlu1 %v2692_v34 }
0x1f8a   :  { %v2687_v18 = vmul.f32 %v2683_v7, %v2683_v7  ;;  %3526 = vmatpush3.bf16.msra.mxu1 %v3665_v56 }
0x1f8b   :  { %3527 = vmatprep.subr.bf16.mxu1 %v3666_v42 }
0x1f8c   :  { %v2695_v25 = vsel %vm147_vm8, %v2687_v18, 0.0 }
0x1f8d   :  { %2696 = vadd.xlane.f32.xlu0 %v2695_v25  ;;  %2699 = vadd.xlane.f32.xlu1 %v2698_v50 }
0x1f8e   :  { %3528 = vmatpush3.bf16.msra.mxu1 %v3666_v42 }
0x200e   :  { %v2691_v31 = vpop.xlane.xlu0 %2690 }
0x200f   :  { %v2701_v35 = vmul.f32 0.03125, %v2691_v31 }
0x2011   :  { %v2705_v63 = vadd.f32 1e-05, %v2701_v35 }
0x2012   :  { %v2694_v36 = vpop.xlane.xlu1 %2693 }
0x2013   :  { %3837 = vrsqrt.f32 %v2705_v63  ;;  %v2702_v37 = vmul.f32 0.03125, %v2694_v36 }
0x2015   :  { %v2706_v16 = vadd.f32 1e-05, %v2702_v37 }
0x2016   :  { %v2697_v23 = vpop.xlane.xlu0 %2696  ;;  %v2700_v38 = vpop.xlane.xlu1 %2699 }
0x2017   :  { %3839 = vrsqrt.f32 %v2706_v16  ;;  %v2703_v39 = vmul.f32 0.03125, %v2697_v23  ;;  %v2704_v28 = vmul.f32 0.03125, %v2700_v38 }
0x2019   :  { %v2707_v30 = vadd.f32 1e-05, %v2703_v39  ;;  %v2708_v8 = vadd.f32 1e-05, %v2704_v28 }
0x201b   :  { %3841 = vrsqrt.f32 %v2707_v30 }
0x201c   :  { %3843 = vrsqrt.f32 %v2708_v8 }
0x2020   :  { %v3838_v3 = vpop.eup %3837 }
0x2021   :  { %v2713_v10 = vmul.f32 %v3838_v3, %v2681_v59 }
0x2023   :  { %v2723_v24 = vmul.f32 %v3182_v46, %v2713_v10 }
0x2024   :  { %v3840_v9 = vpop.eup %3839 }
0x2025   :  { %v2714_v55 = vmul.f32 %v3840_v9, %v2682_v54  ;;  %v4686_v27 = vadd.f32 %v3183_v47, %v2723_v24 }
0x2027   :  { %v2724_v17 = vmul.f32 %v3182_v46, %v2714_v55 }
0x2028   :  { %v3842_v19 = vpop.eup %3841 }
0x2029   :  { %v3844_v48 = vpop.eup %3843  ;;  %v2715_v15 = vmul.f32 %v3842_v19, %v2683_v7  ;;  %v2734_v53 = vadd.f32 %v3183_v47, %v2724_v17  ;;  %v3203_v19 = vld [vmem:[%s4758_s17 + $0x1] ss:$0 sm:$0xff] }
0x202a   :  { %v2716_v49 = vmul.f32 %v3844_v48, %v2684_v41 }
0x202b   :  { %v2737_v26 = vpack.c.bf16 %v2734_v53, %v4686_v27  ;;  %v2725_v29 = vmul.f32 %v3182_v46, %v2715_v15 }
0x202c   :  { %v2726_v51 = vmul.f32 %v3182_v46, %v2716_v49 }
0x202d   :  { %3517 = vmatprep.mubr.msk.bf16.mxu0 %vm147_vm8, %v2737_v26  ;;  %v4690_v32 = vadd.f32 %v3183_v47, %v2725_v29 }
0x202e   :  { %v2736_v43 = vadd.f32 %v3183_v47, %v2726_v51 }
0x2030   :  { %v2738_v45 = vpack.c.bf16 %v2736_v43, %v4690_v32 }
0x2032   :  { %3518 = vmatmul.mubr.msk.bf16.vlgmr.msra.gmra.mxu0 %vm147_vm8, %v2738_v45 }
0x2033   :  { %3537 = vmatprep.mubr.msk.bf16.mxu0 %vm3897_vm14, %v3882_v5 }
0x20f2   :  { %v3519_v11 = vpop.f32.mrf.mxu0 }
0x20f3   :  { %v2813_v57 = vadd.f32 %v3519_v11, %v3189_v44 }
0x20f4   :  { %v2804_v40 = vpop.f32.mrf.mxu0 }
0x20f5   :  { %v2825_v52 = vmul.f32 0.044715, %v2813_v57  ;;  %v2805_v60 = vadd.f32 %v3189_v44, %v2804_v40  ;;  %v2821_v10 = vmul.f32 0.5, %v2813_v57 }
0x20f6   :  { %v3520_v61 = vpop.f32.mrf.mxu0 }
0x20f7   :  { %v2829_v59 = vmul.f32 %v2825_v52, %v2813_v57  ;;  %v2823_v62 = vmul.f32 0.044715, %v2805_v60  ;;  %v2816_v22 = vadd.f32 %v3520_v61, %v3189_v44  ;;  %v2819_v30 = vmul.f32 0.5, %v2805_v60  ;;  %v3668_v61 = vld [vmem:[%s4761_s20] sm:$0xff]  }
0x20f8   :  { %v2807_v0 = vpop.f32.mrf.mxu0 }
0x20f9   :  { %v2833_v33 = vmul.f32 %v2829_v59, %v2813_v57  ;;  %v2827_v1 = vmul.f32 %v2823_v62, %v2805_v60  ;;  %v2826_v54 = vmul.f32 0.044715, %v2816_v22  ;;  %v2808_v41 = vadd.f32 %v3189_v44, %v2807_v0 }
0x20fa   :  { %v2822_v39 = vmul.f32 0.5, %v2816_v22 }
0x20fb   :  { %v2837_v58 = vadd.f32 %v2833_v33, %v2813_v57  ;;  %v2831_v2 = vmul.f32 %v2827_v1, %v2805_v60  ;;  %v2830_v6 = vmul.f32 %v2826_v54, %v2816_v22  ;;  %v2824_v20 = vmul.f32 0.044715, %v2808_v41 }
0x20fc   :  { %v2820_v8 = vmul.f32 0.5, %v2808_v41 }
0x20fd   :  { %v2841_v7 = vmul.f32 0.7978846, %v2837_v58  ;;  %v2835_v34 = vadd.f32 %v2831_v2, %v2805_v60  ;;  %v2834_v12 = vmul.f32 %v2830_v6, %v2816_v22  ;;  %v2828_v18 = vmul.f32 %v2824_v20, %v2808_v41  ;;  %v3667_v60 = vld [vmem:[%s4761_s20 + $0x8] sm:$0xff]  }
0x20fe   :  { %3534 = vmatpush3.bf16.msra.mxu0 %v3667_v60 }
0x20ff   :  { %v2839_v25 = vmul.f32 0.7978846, %v2835_v34  ;;  %v2838_v50 = vadd.f32 %v2834_v12, %v2816_v22  ;;  %v2832_v13 = vmul.f32 %v2828_v18, %v2808_v41  ;;  %3845 = vtanh.f32 %v2841_v7  ;;  %3535 = vmatprep.subr.bf16.mxu0 %v3882_v5  ;;  %v3213_v5 = vld [vmem:[%s4760_s19 + $0x1] ss:$0 sm:$0xff] }
0x2101   :  { %v2842_v14 = vmul.f32 0.7978846, %v2838_v50  ;;  %3847 = vtanh.f32 %v2839_v25  ;;  %v2836_v31 = vadd.f32 %v2832_v13, %v2808_v41  ;;  %v3212_v41 = vld [vmem:[%s4759_s18 + $0x1] ss:$0 sm:$0xff]  ;;  %v3214_v13 = vld [vmem:[%s4762_s21] ss:$0 sm:$0xff] }
0x2102   :  { %3536 = vmatpush3.bf16.msra.mxu0 %v3668_v61  ;;  %s3898_s18 = smov [#allocation2]  }
0x2103   :  { %3849 = vtanh.f32 %v2842_v14  ;;  %v2840_v35 = vmul.f32 0.7978846, %v2836_v31  ;;  %s3080_s19 = sshll.u32 %s3898_s18, 4  ;;  %s3081_s19 = int_to_ptr.vmem [resolvable:$true] %s3080_s19 }
0x2104   :  { %s3859_s7 = scalar_lea.vmem %s3081_s19, 32  ;;  %p3864_p1 = scmp.lt.s32.totalorder %s3081_s19, %s3081_s19 }
0x2105   :  { %3851 = vtanh.f32 %v2840_v35  ;;  %p3860_p0 = scmp.ne.s32.totalorder %s3081_s19, %s3859_s7  ;;  %p3865_p2 = scmp.lt.s32.totalorder %s3859_s7, %s3859_s7 }
0x2107   :  { %p3866_p3 = por %p3865_p2, %p3864_p1 }
0x2109   :  { %p3867_p4 = pnand %p3866_p3, %p3860_p0 }
0x210c   :  { %v3846_v63 = vpop.eup %3845 }
0x210d   :  { %v2849_v28 = vadd.f32 1.0, %v3846_v63 }
0x210e   :  { %v3848_v36 = vpop.eup %3847 }
0x210f   :  { %v2847_v23 = vadd.f32 1.0, %v3848_v36  ;;  %v2853_v24 = vmul.f32 %v2849_v28, %v2821_v10 }
0x2110   :  { %v3850_v37 = vpop.eup %3849 }
0x2111   :  { %v2850_v16 = vadd.f32 1.0, %v3850_v37  ;;  %v2851_v9 = vmul.f32 %v2847_v23, %v2819_v30 }
0x2112   :  { %v3852_v38 = vpop.eup %3851 }
0x2113   :  { %v2848_v3 = vadd.f32 1.0, %v3852_v38  ;;  %v2854_v46 = vmul.f32 %v2850_v16, %v2822_v39 }
0x2115   :  { %v2852_v55 = vmul.f32 %v2848_v3, %v2820_v8  ;;  %v2856_v17 = vpack.c.bf16 %v2854_v46, %v2853_v24 }
0x2117   :  { %v2855_v47 = vpack.c.bf16 %v2852_v55, %v2851_v9 }
0x2119   :  { %3529 = vmatprep.mubr.msk.bf16.mxu1 %vm1563_vm13, %v2855_v47 }
0x211a   :  { %3530 = vmatmul.mubr.msk.bf16.vlgmr.msra.gmra.mxu1 %vm1563_vm13, %v2856_v17 }
0x21da   :  { %v3531_v48 = vpop.f32.mrf.mxu1 }
0x21db   :  { %v2946_v15 = vadd.f32 %v3531_v48, %v3203_v19 }
0x21dc   :  { %v2938_v53 = vpop.f32.mrf.mxu1 }
0x21dd   :  { %v2952_v49 = vadd.f32 %v2946_v15, %v4690_v32  ;;  %v2939_v26 = vadd.f32 %v3203_v19, %v2938_v53 }
0x21de   :  { %v3532_v29 = vpop.f32.mrf.mxu1 }
0x21df   :  { %v2951_v51 = vadd.f32 %v2939_v26, %v4686_v27  ;;  %v2960_v43 = vsel %vm147_vm8, %v2952_v49, 0.0 }
0x21e0   :  { %2961 = vadd.xlane.f32.xlu0 %v2960_v43  ;;  %v2941_v45 = vpop.f32.mrf.mxu1 }
0x21e1   :  { %v2957_v21 = vsel %vm147_vm8, %v2951_v51, 0.0 }
0x21e2   :  { %2958 = vadd.xlane.f32.xlu1 %v2957_v21 }
0x2269   :  { %v2962_v4 = vpop.xlane.xlu0 %2961 }
0x226a   :  { %v2964_v56 = vmul.f32 0.03125, %v2962_v4 }
0x226b   :  { %v2959_v42 = vpop.xlane.xlu1 %2958 }
0x226c   :  { %v2966_v44 = vsub.f32 %v2952_v49, %v2964_v56  ;;  %v2963_v11 = vmul.f32 0.03125, %v2959_v42 }
0x226e   :  { %v2965_v57 = vsub.f32 %v2951_v51, %v2963_v11  ;;  %v2968_v40 = vmul.f32 %v2966_v44, %v2966_v44 }
0x2270   :  { %v2972_v32 = vsel %vm147_vm8, %v2968_v40, 0.0  ;;  %v2967_v52 = vmul.f32 %v2965_v57, %v2965_v57 }
0x2271   :  { %2973 = vadd.xlane.f32.xlu0 %v2972_v32 }
0x2272   :  { %v2969_v27 = vsel %vm147_vm8, %v2967_v52, 0.0 }
0x2273   :  { %2970 = vadd.xlane.f32.xlu1 %v2969_v27 }
0x22fa   :  { %v2974_v59 = vpop.xlane.xlu0 %2973 }
0x22fb   :  { %v2976_v62 = vmul.f32 0.03125, %v2974_v59 }
0x22fc   :  { %v2971_v22 = vpop.xlane.xlu1 %2970 }
0x22fd   :  { %v2978_v0 = vadd.f32 1e-05, %v2976_v62  ;;  %v2975_v33 = vmul.f32 0.03125, %v2971_v22 }
0x22ff   :  { %3853 = vrsqrt.f32 %v2978_v0  ;;  %v2977_v1 = vadd.f32 1e-05, %v2975_v33 }
0x2301   :  { %3855 = vrsqrt.f32 %v2977_v1 }
0x230c   :  { %v3854_v54 = vpop.eup %3853 }
0x230d   :  { %v2982_v58 = vmul.f32 %v3854_v54, %v2966_v44 }
0x230e   :  { %v3856_v2 = vpop.eup %3855 }
0x230f   :  { %v2990_v6 = vmul.f32 %v3212_v41, %v2982_v58  ;;  %v2981_v20 = vmul.f32 %v3856_v2, %v2965_v57 }
0x2311   :  { %v2989_v7 = vmul.f32 %v3212_v41, %v2981_v20  ;;  %v2998_v34 = vadd.f32 %v3213_v5, %v2990_v6 }
0x2313   :  { %v2997_v12 = vadd.f32 %v3213_v5, %v2989_v7  ;;  %v3000_v18 = vrot.slane %v2998_v34, 7 }
0x2315   :  { %v3003_v25 = vsel %vm3002_vm15, %v2997_v12, %v3000_v18 }
0x2316   :  { %v3004_v50 = vpack.c.bf16 %v3003_v25, %v3003_v25 }
0x2318   :  { %3538 = vmatmul.mubr.msk.bf16.vlgmr.msra.gmra.mxu0 %vm147_vm8, %v3004_v50 }
0x23d8   :  { %v3065_v14 = vpop.f32.mrf.mxu0 }
0x23d9   :  { %v3066_v31 = vadd.f32 %v3214_v13, %v3065_v14 }
0x23da   :  { %v3539_v35 = vpop.f32.mrf.mxu0 }
0x23db   :  { %3857 = vtanh.f32 %v3066_v31 }
0x23dc   :  { %v3068_v63 = vpop.f32.mrf.mxu0 }
0x23de   :  { %v3540_v36 = vpop.f32.mrf.mxu0 }
0x23e8   :  { %v3858_v37 = vpop.eup %3857 }
0x23e9   :  { %3073 = vst.msk [vmem:[#allocation2] sm:$0x3] %vm3072_vm0, %v3858_v37 }
0x23ea   :  { %3870 = shalt.err (!%p3867_p4)
}
0x23eb   :  { %3083 = dma.vmem_to_hbm [thread:$0]  %s3081_s19, 32, %s4763_s22, [#allocation3]  }
0x23ec   :  { %3879 = dma.done.wait [#allocation3], 32  }
0x23ed   :  { %3880 = vsyncadd [#allocation3], 4294967264 }
0x23ee   :  { %3087 = vsyncpa [#allocation3], 1 }

</bundles_post_ra>
